<compile_context>
chip_gen: v6e
topology: v6e:2x2x1
jax: 0.10.0
libtpu: 0.0.40
codegen_flags: <defaults>
</compile_context>

<pallas_src>
import jax
import jax.numpy as jnp
from jax.experimental import pallas as pl
from jax.experimental.pallas import tpu as pltpu


# ----------------------------------------------------------------------------
# Pallas kernels
# ----------------------------------------------------------------------------
def _conv_relu_pool_kernel(p_ref, w_ref, b_ref, pm_ref, o_ref):
    """Fused 3x3-conv-as-matmul + bias + ReLU + 2x2 avg-pool.

    Block layout (one grid step = `hb` image rows of one image x one Cout tile):
      p_ref  : (hb*W, K)                im2col patches (bf16)
      w_ref  : (K, tn)                  flattened conv weight block (bf16)
      b_ref  : (1, tn)                  bias (f32)
      pm_ref : ((hb//2)*(W//2), hb*W)   constant 2x2 avg-pool matrix (f32)
      o_ref  : ((hb//2)*(W//2), tn)     pooled output rows, channels on lanes
    """
    acc = jnp.dot(p_ref[...], w_ref[...], preferred_element_type=jnp.float32)
    r = jnp.maximum(acc + b_ref[...], 0.0)                       # (hb*W, tn) f32
    # 2x2 average pool as a small matmul (pm already holds the 0.25 weights).
    o_ref[...] = jnp.dot(pm_ref[...], r,
                         preferred_element_type=jnp.float32).astype(o_ref.dtype)


def _fc_relu_kernel(x_ref, w_ref, b_ref, o_ref):
    """K-tiled matmul accumulating directly into the resident f32 output block."""
    @pl.when(pl.program_id(1) == 0)
    def _init():
        o_ref[...] = jnp.zeros_like(o_ref)

    o_ref[...] += jnp.dot(x_ref[...], w_ref[...],
                          preferred_element_type=jnp.float32)

    @pl.when(pl.program_id(1) == pl.num_programs(1) - 1)
    def _fin():
        o_ref[...] = jnp.maximum(o_ref[...] + b_ref[...], 0.0)


# ----------------------------------------------------------------------------
# Wrappers
# ----------------------------------------------------------------------------
def _pool_matrix(hb, W):
    """Constant matrix P so that (P @ r) is the 2x2 average pool of r,
    where r rows are in (h, w) row-major order for `hb` image rows."""
    rows = (hb // 2) * (W // 2)
    cols = hb * W
    p = jnp.arange(rows, dtype=jnp.int32)
    q = jnp.arange(cols, dtype=jnp.int32)
    ph, pw = p // (W // 2), p % (W // 2)
    qh, qw = q // W, q % W
    hit = (qh[None, :] // 2 == ph[:, None]) & (qw[None, :] // 2 == pw[:, None])
    return jnp.where(hit, 0.25, 0.0).astype(jnp.float32)


def conv3x3_relu_pool(patches, w, b, *, B, H, W, tn=128, hb=8):
    """patches: (B*H*W, Cin*9) bf16; w: (Cin*9, Cout) bf16; b: (Cout,) f32.
    Returns pooled activations (B*(H//2)*(W//2), Cout) bf16 in NHWC row order."""
    M, K = patches.shape
    _, N = w.shape
    tn = min(tn, N)
    hb = min(hb, H)
    assert H % hb == 0 and hb % 2 == 0 and W % 2 == 0
    assert N % tn == 0 and M == B * H * W

    pm = _pool_matrix(hb, W)                       # ((hb//2)*(W//2), hb*W)
    mp_blk = (hb // 2) * (W // 2)
    Mp = B * (H // 2) * (W // 2)

    return pl.pallas_call(
        _conv_relu_pool_kernel,
        out_shape=jax.ShapeDtypeStruct((Mp, N), jnp.bfloat16),
        grid=(M // (hb * W), N // tn),
        in_specs=[
            pl.BlockSpec((hb * W, K), lambda i, n: (i, 0)),
            pl.BlockSpec((K, tn), lambda i, n: (0, n)),
            pl.BlockSpec((1, tn), lambda i, n: (0, n)),
            pl.BlockSpec(pm.shape, lambda i, n: (0, 0)),
        ],
        out_specs=pl.BlockSpec((mp_blk, tn), lambda i, n: (i, n)),
        compiler_params=pltpu.CompilerParams(
            dimension_semantics=("parallel", "parallel")),
    )(patches, w, b.reshape(1, N), pm)


def linear_relu(x, w, b, *, tn=256, tk=2048):
    """y = relu(x @ w + b); x: (M, K) bf16, w: (K, N) bf16, b: (N,) f32 -> f32."""
    M, K = x.shape
    _, N = w.shape
    tn = min(tn, N)
    tk = min(tk, K)
    assert N % tn == 0 and K % tk == 0
    return pl.pallas_call(
        _fc_relu_kernel,
        out_shape=jax.ShapeDtypeStruct((M, N), jnp.float32),
        grid=(N // tn, K // tk),                   # reduction axis last
        in_specs=[
            pl.BlockSpec((M, tk), lambda n, k: (0, k)),
            pl.BlockSpec((tk, tn), lambda n, k: (k, n)),
            pl.BlockSpec((1, tn), lambda n, k: (0, n)),
        ],
        out_specs=pl.BlockSpec((M, tn), lambda n, k: (0, n)),
        compiler_params=pltpu.CompilerParams(
            dimension_semantics=("parallel", "arbitrary")),
    )(x, w, b.reshape(1, N))


# ----------------------------------------------------------------------------
# im2col (XLA-side; pad=1, stride=1, 3x3) - feature order (c, kh, kw) matching
# PyTorch Conv2d weight.reshape(Cout, Cin*9)
# ----------------------------------------------------------------------------
def im2col_3x3(x_nhwc):
    B, H, W, C = x_nhwc.shape
    xp = jnp.pad(x_nhwc, ((0, 0), (1, 1), (1, 1), (0, 0)))
    taps = [xp[:, kh:kh + H, kw:kw + W, :] for kh in range(3) for kw in range(3)]
    p = jnp.stack(taps, axis=-1)                   # (B, H, W, C, 9)
    return p.reshape(B * H * W, C * 9)


# ----------------------------------------------------------------------------
# Parameters (deterministic synthetic init - shapes from the nn.Module)
# ----------------------------------------------------------------------------
def init_params(key):
    ks = jax.random.split(key, 8)

    def w(k, shape, scale=0.05):
        return scale * jax.random.normal(k, shape, jnp.float32)

    def conv_w(k, cout, cin):
        wt = w(k, (cout, cin, 3, 3))               # PyTorch Conv2d layout
        return wt.reshape(cout, cin * 9).T.astype(jnp.bfloat16)   # (cin*9, cout)

    return {
        "w1": conv_w(ks[0], 64, 3),    "b1": w(ks[1], (64,)),
        "w2": conv_w(ks[2], 128, 64),  "b2": w(ks[3], (128,)),
        "w3": conv_w(ks[4], 256, 128), "b3": w(ks[5], (256,)),
        # fc.weight is (512, 4096) in PyTorch (features in (c, h, w) order)
        "fc_w": w(ks[6], (512, 256 * 4 * 4), 0.02).T.astype(jnp.bfloat16),
        "fc_b": w(ks[7], (512,)),
    }


# ----------------------------------------------------------------------------
# Forward pass (matches CNNBranch.forward, inference semantics)
# ----------------------------------------------------------------------------
def cnn_branch_forward(x_nchw, params):
    B = x_nchw.shape[0]
    x = jnp.transpose(x_nchw, (0, 2, 3, 1)).astype(jnp.bfloat16)   # NHWC

    # conv1 + relu + pool : (B,32,32,3) -> (B,16,16,64)
    y = conv3x3_relu_pool(im2col_3x3(x), params["w1"], params["b1"],
                          B=B, H=32, W=32)
    x = y.reshape(B, 16, 16, 64)

    # conv2 + relu + pool : -> (B,8,8,128)
    y = conv3x3_relu_pool(im2col_3x3(x), params["w2"], params["b2"],
                          B=B, H=16, W=16)
    x = y.reshape(B, 8, 8, 128)

    # conv3 + relu + pool : -> (B,4,4,256)
    y = conv3x3_relu_pool(im2col_3x3(x), params["w3"], params["b3"],
                          B=B, H=8, W=8)
    x = y.reshape(B, 4, 4, 256)

    # flatten in PyTorch (C, H, W) order
    flat = jnp.transpose(x, (0, 3, 1, 2)).reshape(B, 256 * 4 * 4)

    # TODO(synk): nn.Dropout(p=0.5) is stochastic in train mode; identity here.
    return linear_relu(flat, params["fc_w"], params["fc_b"])        # (B, 512)


# ----------------------------------------------------------------------------
if __name__ == "__main__":
    # Input spatial size is fixed to 32x32x3 by fc = Linear(256*4*4, 512).
    x = jax.random.normal(jax.random.PRNGKey(0), (2, 3, 32, 32), jnp.float32)
    params = init_params(jax.random.PRNGKey(1))

    fwd = jax.jit(cnn_branch_forward)
    out = jax.block_until_ready(fwd(x, params))
    assert out.shape == (2, 512), out.shape
    assert bool(jnp.all(jnp.isfinite(out)))
    print("KERNEL_OK")
</pallas_src>

<mosaic_0001>
module attributes {stable_mosaic.version = 11 : i64} {
  func.func @_conv_relu_pool_kernel(%arg0: i32, %arg1: i32, %arg2: memref<256x27xbf16, #tpu.memory_space<vmem>>, %arg3: memref<27x64xbf16, #tpu.memory_space<vmem>>, %arg4: memref<1x64xf32, #tpu.memory_space<vmem>>, %arg5: memref<64x256xf32, #tpu.memory_space<vmem>>, %arg6: memref<64x64xbf16, #tpu.memory_space<vmem>>) attributes {dimension_semantics = [#tpu.dimension_semantics<parallel>, #tpu.dimension_semantics<parallel>], iteration_bounds = array<i64: 8, 1>, scalar_prefetch = 0 : i64, scratch_operands = 0 : i64, tpu.core_type = #tpu.core_type<tc>, window_params = [{transform_indices = @transform_0, window_bounds = array<i64: 256, 27>}, {transform_indices = @transform_1, window_bounds = array<i64: 27, 64>}, {transform_indices = @transform_2, window_bounds = array<i64: 1, 64>}, {pipeline_mode = #tpu.pipeline_mode<synchronous>, transform_indices = @transform_3, window_bounds = array<i64: 64, 256>}, {transform_indices = @transform_4, window_bounds = array<i64: 64, 64>}]} {
    %c0 = arith.constant 0 : index
    %c0_0 = arith.constant 0 : index
    %0 = vector.load %arg2[%c0, %c0_0] : memref<256x27xbf16, #tpu.memory_space<vmem>>, vector<256x27xbf16>
    %c0_1 = arith.constant 0 : index
    %c0_2 = arith.constant 0 : index
    %1 = vector.load %arg3[%c0_1, %c0_2] : memref<27x64xbf16, #tpu.memory_space<vmem>>, vector<27x64xbf16>
    %cst = arith.constant dense<0.000000e+00> : vector<256x64xf32>
    %2 = tpu.matmul %0, %1, %cst {dimension_numbers = #tpu.dot_dimension_numbers<[1], [0], [0], [1], [0, 0, 1, 1], [], []>} : vector<256x27xbf16>, vector<27x64xbf16>, vector<256x64xf32> -> vector<256x64xf32>
    %c0_3 = arith.constant 0 : index
    %c0_4 = arith.constant 0 : index
    %3 = vector.load %arg4[%c0_3, %c0_4] : memref<1x64xf32, #tpu.memory_space<vmem>>, vector<1x64xf32>
    %4 = vector.broadcast %3 : vector<1x64xf32> to vector<256x64xf32>
    %5 = arith.addf %2, %4 : vector<256x64xf32>
    %cst_5 = arith.constant 0.000000e+00 : f32
    %6 = vector.broadcast %cst_5 : f32 to vector<256x64xf32>
    %7 = arith.maximumf %5, %6 : vector<256x64xf32>
    %c0_6 = arith.constant 0 : index
    %c0_7 = arith.constant 0 : index
    %8 = vector.load %arg5[%c0_6, %c0_7] : memref<64x256xf32, #tpu.memory_space<vmem>>, vector<64x256xf32>
    %cst_8 = arith.constant dense<0.000000e+00> : vector<64x64xf32>
    %9 = tpu.matmul %8, %7, %cst_8 {dimension_numbers = #tpu.dot_dimension_numbers<[1], [0], [0], [1], [0, 0, 1, 1], [], []>} : vector<64x256xf32>, vector<256x64xf32>, vector<64x64xf32> -> vector<64x64xf32>
    %10 = arith.truncf %9 : vector<64x64xf32> to vector<64x64xbf16>
    %c0_9 = arith.constant 0 : index
    %c0_10 = arith.constant 0 : index
    %11 = vector.load %arg6[%c0_9, %c0_10] : memref<64x64xbf16, #tpu.memory_space<vmem>>, vector<64x64xbf16>
    tpu.vector_store %arg6[%c0_9, %c0_10], %10 {strides = array<i32>} : memref<64x64xbf16, #tpu.memory_space<vmem>>, vector<64x64xbf16>,
    return
  }
  func.func @transform_0(%arg0: i32, %arg1: i32) -> (i32, i32) {
    %c0_i32 = arith.constant 0 : i32
    %c0_i32_0 = arith.constant 0 : i32
    return %arg0, %c0_i32 : i32, i32
  }
  func.func @transform_1(%arg0: i32, %arg1: i32) -> (i32, i32) {
    %c0_i32 = arith.constant 0 : i32
    %c0_i32_0 = arith.constant 0 : i32
    return %c0_i32, %arg1 : i32, i32
  }
  func.func @transform_2(%arg0: i32, %arg1: i32) -> (i32, i32) {
    %c0_i32 = arith.constant 0 : i32
    %c0_i32_0 = arith.constant 0 : i32
    return %c0_i32, %arg1 : i32, i32
  }
  func.func @transform_3(%arg0: i32, %arg1: i32) -> (i32, i32) {
    %c0_i32 = arith.constant 0 : i32
    %c0_i32_0 = arith.constant 0 : i32
    %c0_i32_1 = arith.constant 0 : i32
    return %c0_i32, %c0_i32_0 : i32, i32
  }
  func.func @transform_4(%arg0: i32, %arg1: i32) -> (i32, i32) {
    %c0_i32 = arith.constant 0 : i32
    return %arg0, %arg1 : i32, i32
  }
}

module attributes {stable_mosaic.version = 11 : i64} {
  func.func @_conv_relu_pool_kernel(%arg0: i32, %arg1: i32, %arg2: memref<128x576xbf16, #tpu.memory_space<vmem>>, %arg3: memref<576x128xbf16, #tpu.memory_space<vmem>>, %arg4: memref<1x128xf32, #tpu.memory_space<vmem>>, %arg5: memref<32x128xf32, #tpu.memory_space<vmem>>, %arg6: memref<32x128xbf16, #tpu.memory_space<vmem>>) attributes {dimension_semantics = [#tpu.dimension_semantics<parallel>, #tpu.dimension_semantics<parallel>], iteration_bounds = array<i64: 4, 1>, scalar_prefetch = 0 : i64, scratch_operands = 0 : i64, tpu.core_type = #tpu.core_type<tc>, window_params = [{transform_indices = @transform_0, window_bounds = array<i64: 128, 576>}, {transform_indices = @transform_1, window_bounds = array<i64: 576, 128>}, {transform_indices = @transform_2, window_bounds = array<i64: 1, 128>}, {pipeline_mode = #tpu.pipeline_mode<synchronous>, transform_indices = @transform_3, window_bounds = array<i64: 32, 128>}, {transform_indices = @transform_4, window_bounds = array<i64: 32, 128>}]} {
    %c0 = arith.constant 0 : index
    %c0_0 = arith.constant 0 : index
    %0 = vector.load %arg2[%c0, %c0_0] : memref<128x576xbf16, #tpu.memory_space<vmem>>, vector<128x576xbf16>
    %c0_1 = arith.constant 0 : index
    %c0_2 = arith.constant 0 : index
    %1 = vector.load %arg3[%c0_1, %c0_2] : memref<576x128xbf16, #tpu.memory_space<vmem>>, vector<576x128xbf16>
    %cst = arith.constant dense<0.000000e+00> : vector<128x128xf32>
    %2 = tpu.matmul %0, %1, %cst {dimension_numbers = #tpu.dot_dimension_numbers<[1], [0], [0], [1], [0, 0, 1, 1], [], []>} : vector<128x576xbf16>, vector<576x128xbf16>, vector<128x128xf32> -> vector<128x128xf32>
    %c0_3 = arith.constant 0 : index
    %c0_4 = arith.constant 0 : index
    %3 = vector.load %arg4[%c0_3, %c0_4] : memref<1x128xf32, #tpu.memory_space<vmem>>, vector<1x128xf32>
    %4 = vector.broadcast %3 : vector<1x128xf32> to vector<128x128xf32>
    %5 = arith.addf %2, %4 : vector<128x128xf32>
    %cst_5 = arith.constant 0.000000e+00 : f32
    %6 = vector.broadcast %cst_5 : f32 to vector<128x128xf32>
    %7 = arith.maximumf %5, %6 : vector<128x128xf32>
    %c0_6 = arith.constant 0 : index
    %c0_7 = arith.constant 0 : index
    %8 = vector.load %arg5[%c0_6, %c0_7] : memref<32x128xf32, #tpu.memory_space<vmem>>, vector<32x128xf32>
    %cst_8 = arith.constant dense<0.000000e+00> : vector<32x128xf32>
    %9 = tpu.matmul %8, %7, %cst_8 {dimension_numbers = #tpu.dot_dimension_numbers<[1], [0], [0], [1], [0, 0, 1, 1], [], []>} : vector<32x128xf32>, vector<128x128xf32>, vector<32x128xf32> -> vector<32x128xf32>
    %10 = arith.truncf %9 : vector<32x128xf32> to vector<32x128xbf16>
    %c0_9 = arith.constant 0 : index
    %c0_10 = arith.constant 0 : index
    %11 = vector.load %arg6[%c0_9, %c0_10] : memref<32x128xbf16, #tpu.memory_space<vmem>>, vector<32x128xbf16>
    tpu.vector_store %arg6[%c0_9, %c0_10], %10 {strides = array<i32>} : memref<32x128xbf16, #tpu.memory_space<vmem>>, vector<32x128xbf16>,
    return
  }
  func.func @transform_0(%arg0: i32, %arg1: i32) -> (i32, i32) {
    %c0_i32 = arith.constant 0 : i32
    %c0_i32_0 = arith.constant 0 : i32
    return %arg0, %c0_i32 : i32, i32
  }
  func.func @transform_1(%arg0: i32, %arg1: i32) -> (i32, i32) {
    %c0_i32 = arith.constant 0 : i32
    %c0_i32_0 = arith.constant 0 : i32
    return %c0_i32, %arg1 : i32, i32
  }
  func.func @transform_2(%arg0: i32, %arg1: i32) -> (i32, i32) {
    %c0_i32 = arith.constant 0 : i32
    %c0_i32_0 = arith.constant 0 : i32
    return %c0_i32, %arg1 : i32, i32
  }
  func.func @transform_3(%arg0: i32, %arg1: i32) -> (i32, i32) {
    %c0_i32 = arith.constant 0 : i32
    %c0_i32_0 = arith.constant 0 : i32
    %c0_i32_1 = arith.constant 0 : i32
    return %c0_i32, %c0_i32_0 : i32, i32
  }
  func.func @transform_4(%arg0: i32, %arg1: i32) -> (i32, i32) {
    %c0_i32 = arith.constant 0 : i32
    return %arg0, %arg1 : i32, i32
  }
}

module attributes {stable_mosaic.version = 11 : i64} {
  func.func @_conv_relu_pool_kernel(%arg0: i32, %arg1: i32, %arg2: memref<64x1152xbf16, #tpu.memory_space<vmem>>, %arg3: memref<1152x128xbf16, #tpu.memory_space<vmem>>, %arg4: memref<1x128xf32, #tpu.memory_space<vmem>>, %arg5: memref<16x64xf32, #tpu.memory_space<vmem>>, %arg6: memref<16x128xbf16, #tpu.memory_space<vmem>>) attributes {dimension_semantics = [#tpu.dimension_semantics<parallel>, #tpu.dimension_semantics<parallel>], iteration_bounds = array<i64: 2, 2>, scalar_prefetch = 0 : i64, scratch_operands = 0 : i64, tpu.core_type = #tpu.core_type<tc>, window_params = [{transform_indices = @transform_0, window_bounds = array<i64: 64, 1152>}, {transform_indices = @transform_1, window_bounds = array<i64: 1152, 128>}, {transform_indices = @transform_2, window_bounds = array<i64: 1, 128>}, {pipeline_mode = #tpu.pipeline_mode<synchronous>, transform_indices = @transform_3, window_bounds = array<i64: 16, 64>}, {transform_indices = @transform_4, window_bounds = array<i64: 16, 128>}]} {
    %c0 = arith.constant 0 : index
    %c0_0 = arith.constant 0 : index
    %0 = vector.load %arg2[%c0, %c0_0] : memref<64x1152xbf16, #tpu.memory_space<vmem>>, vector<64x1152xbf16>
    %c0_1 = arith.constant 0 : index
    %c0_2 = arith.constant 0 : index
    %1 = vector.load %arg3[%c0_1, %c0_2] : memref<1152x128xbf16, #tpu.memory_space<vmem>>, vector<1152x128xbf16>
    %cst = arith.constant dense<0.000000e+00> : vector<64x128xf32>
    %2 = tpu.matmul %0, %1, %cst {dimension_numbers = #tpu.dot_dimension_numbers<[1], [0], [0], [1], [0, 0, 1, 1], [], []>} : vector<64x1152xbf16>, vector<1152x128xbf16>, vector<64x128xf32> -> vector<64x128xf32>
    %c0_3 = arith.constant 0 : index
    %c0_4 = arith.constant 0 : index
    %3 = vector.load %arg4[%c0_3, %c0_4] : memref<1x128xf32, #tpu.memory_space<vmem>>, vector<1x128xf32>
    %4 = vector.broadcast %3 : vector<1x128xf32> to vector<64x128xf32>
    %5 = arith.addf %2, %4 : vector<64x128xf32>
    %cst_5 = arith.constant 0.000000e+00 : f32
    %6 = vector.broadcast %cst_5 : f32 to vector<64x128xf32>
    %7 = arith.maximumf %5, %6 : vector<64x128xf32>
    %c0_6 = arith.constant 0 : index
    %c0_7 = arith.constant 0 : index
    %8 = vector.load %arg5[%c0_6, %c0_7] : memref<16x64xf32, #tpu.memory_space<vmem>>, vector<16x64xf32>
    %cst_8 = arith.constant dense<0.000000e+00> : vector<16x128xf32>
    %9 = tpu.matmul %8, %7, %cst_8 {dimension_numbers = #tpu.dot_dimension_numbers<[1], [0], [0], [1], [0, 0, 1, 1], [], []>} : vector<16x64xf32>, vector<64x128xf32>, vector<16x128xf32> -> vector<16x128xf32>
    %10 = arith.truncf %9 : vector<16x128xf32> to vector<16x128xbf16>
    %c0_9 = arith.constant 0 : index
    %c0_10 = arith.constant 0 : index
    %11 = vector.load %arg6[%c0_9, %c0_10] : memref<16x128xbf16, #tpu.memory_space<vmem>>, vector<16x128xbf16>
    tpu.vector_store %arg6[%c0_9, %c0_10], %10 {strides = array<i32>} : memref<16x128xbf16, #tpu.memory_space<vmem>>, vector<16x128xbf16>,
    return
  }
  func.func @transform_0(%arg0: i32, %arg1: i32) -> (i32, i32) {
    %c0_i32 = arith.constant 0 : i32
    %c0_i32_0 = arith.constant 0 : i32
    return %arg0, %c0_i32 : i32, i32
  }
  func.func @transform_1(%arg0: i32, %arg1: i32) -> (i32, i32) {
    %c0_i32 = arith.constant 0 : i32
    %c0_i32_0 = arith.constant 0 : i32
    return %c0_i32, %arg1 : i32, i32
  }
  func.func @transform_2(%arg0: i32, %arg1: i32) -> (i32, i32) {
    %c0_i32 = arith.constant 0 : i32
    %c0_i32_0 = arith.constant 0 : i32
    return %c0_i32, %arg1 : i32, i32
  }
  func.func @transform_3(%arg0: i32, %arg1: i32) -> (i32, i32) {
    %c0_i32 = arith.constant 0 : i32
    %c0_i32_0 = arith.constant 0 : i32
    %c0_i32_1 = arith.constant 0 : i32
    return %c0_i32, %c0_i32_0 : i32, i32
  }
  func.func @transform_4(%arg0: i32, %arg1: i32) -> (i32, i32) {
    %c0_i32 = arith.constant 0 : i32
    return %arg0, %arg1 : i32, i32
  }
}

module attributes {stable_mosaic.version = 11 : i64} {
  func.func @_fc_relu_kernel(%arg0: i32, %arg1: i32, %arg2: memref<2x2048xbf16, #tpu.memory_space<vmem>>, %arg3: memref<2048x256xbf16, #tpu.memory_space<vmem>>, %arg4: memref<1x256xf32, #tpu.memory_space<vmem>>, %arg5: memref<2x256xf32, #tpu.memory_space<vmem>>) attributes {dimension_semantics = [#tpu.dimension_semantics<parallel>, #tpu.dimension_semantics<arbitrary>], iteration_bounds = array<i64: 2, 2>, scalar_prefetch = 0 : i64, scratch_operands = 0 : i64, tpu.core_type = #tpu.core_type<tc>, window_params = [{transform_indices = @transform_0, window_bounds = array<i64: 2, 2048>}, {transform_indices = @transform_1, window_bounds = array<i64: 2048, 256>}, {transform_indices = @transform_2, window_bounds = array<i64: 1, 256>}, {transform_indices = @transform_3, window_bounds = array<i64: 2, 256>}]} {
    %c0_i32 = arith.constant 0 : i32
    %0 = arith.cmpi eq, %arg1, %c0_i32 : i32
    %1 = arith.extui %0 : i1 to i32
    %c0_i32_0 = arith.constant 0 : i32
    %2 = arith.cmpi ne, %1, %c0_i32_0 : i32
    scf.if %2 {
      %cst_9 = arith.constant 0.000000e+00 : f32
      %12 = vector.broadcast %cst_9 : f32 to vector<2x256xf32>
      %c0_10 = arith.constant 0 : index
      %c0_11 = arith.constant 0 : index
      %13 = vector.load %arg5[%c0_10, %c0_11] : memref<2x256xf32, #tpu.memory_space<vmem>>, vector<2x256xf32>
      tpu.vector_store %arg5[%c0_10, %c0_11], %12 {strides = array<i32>} : memref<2x256xf32, #tpu.memory_space<vmem>>, vector<2x256xf32>,
    } else {
    }
    %c0 = arith.constant 0 : index
    %c0_1 = arith.constant 0 : index
    %3 = vector.load %arg5[%c0, %c0_1] : memref<2x256xf32, #tpu.memory_space<vmem>>, vector<2x256xf32>
    %c0_2 = arith.constant 0 : index
    %c0_3 = arith.constant 0 : index
    %4 = vector.load %arg2[%c0_2, %c0_3] : memref<2x2048xbf16, #tpu.memory_space<vmem>>, vector<2x2048xbf16>
    %c0_4 = arith.constant 0 : index
    %c0_5 = arith.constant 0 : index
    %5 = vector.load %arg3[%c0_4, %c0_5] : memref<2048x256xbf16, #tpu.memory_space<vmem>>, vector<2048x256xbf16>
    %cst = arith.constant dense<0.000000e+00> : vector<2x256xf32>
    %6 = tpu.matmul %4, %5, %cst {dimension_numbers = #tpu.dot_dimension_numbers<[1], [0], [0], [1], [0, 0, 1, 1], [], []>} : vector<2x2048xbf16>, vector<2048x256xbf16>, vector<2x256xf32> -> vector<2x256xf32>
    %7 = arith.addf %3, %6 : vector<2x256xf32>
    %c0_6 = arith.constant 0 : index
    %c0_7 = arith.constant 0 : index
    %8 = vector.load %arg5[%c0_6, %c0_7] : memref<2x256xf32, #tpu.memory_space<vmem>>, vector<2x256xf32>
    tpu.vector_store %arg5[%c0_6, %c0_7], %7 {strides = array<i32>} : memref<2x256xf32, #tpu.memory_space<vmem>>, vector<2x256xf32>,
    %c1_i32 = arith.constant 1 : i32
    %9 = arith.cmpi eq, %arg1, %c1_i32 : i32
    %10 = arith.extui %9 : i1 to i32
    %c0_i32_8 = arith.constant 0 : i32
    %11 = arith.cmpi ne, %10, %c0_i32_8 : i32
    scf.if %11 {
      %c0_9 = arith.constant 0 : index
      %c0_10 = arith.constant 0 : index
      %12 = vector.load %arg5[%c0_9, %c0_10] : memref<2x256xf32, #tpu.memory_space<vmem>>, vector<2x256xf32>
      %c0_11 = arith.constant 0 : index
      %c0_12 = arith.constant 0 : index
      %13 = vector.load %arg4[%c0_11, %c0_12] : memref<1x256xf32, #tpu.memory_space<vmem>>, vector<1x256xf32>
      %14 = vector.broadcast %13 : vector<1x256xf32> to vector<2x256xf32>
      %15 = arith.addf %12, %14 : vector<2x256xf32>
      %cst_13 = arith.constant 0.000000e+00 : f32
      %16 = vector.broadcast %cst_13 : f32 to vector<2x256xf32>
      %17 = arith.maximumf %15, %16 : vector<2x256xf32>
      %c0_14 = arith.constant 0 : index
      %c0_15 = arith.constant 0 : index
      %18 = vector.load %arg5[%c0_14, %c0_15] : memref<2x256xf32, #tpu.memory_space<vmem>>, vector<2x256xf32>
      tpu.vector_store %arg5[%c0_14, %c0_15], %17 {strides = array<i32>} : memref<2x256xf32, #tpu.memory_space<vmem>>, vector<2x256xf32>,
    } else {
    }
    return
  }
  func.func @transform_0(%arg0: i32, %arg1: i32) -> (i32, i32) {
    %c0_i32 = arith.constant 0 : i32
    %c0_i32_0 = arith.constant 0 : i32
    return %c0_i32, %arg1 : i32, i32
  }
  func.func @transform_1(%arg0: i32, %arg1: i32) -> (i32, i32) {
    %c0_i32 = arith.constant 0 : i32
    return %arg1, %arg0 : i32, i32
  }
  func.func @transform_2(%arg0: i32, %arg1: i32) -> (i32, i32) {
    %c0_i32 = arith.constant 0 : i32
    %c0_i32_0 = arith.constant 0 : i32
    return %c0_i32, %arg0 : i32, i32
  }
  func.func @transform_3(%arg0: i32, %arg1: i32) -> (i32, i32) {
    %c0_i32 = arith.constant 0 : i32
    %c0_i32_0 = arith.constant 0 : i32
    return %c0_i32, %arg0 : i32, i32
  }
}

</mosaic_0001>

<bundles_post_ra>
// kernel: cnn_branch_forward.4
= control target key start
LH: loop header
LB: loop body
LE: loop exit
PB: predicated region body
PF: predicated region fallthrough
CT: control target
= control target key end

     0   :  { %s1167_s15 = smov 0   ;;  %s1169_s16 = smov 0   ;;  %s1386_s0 = inlined_call_operand.vmem [shape: bf16[2048,27], index: 0, kind: input, shape index: {}]   ;;  %s1387_s1 = inlined_call_operand.vmem [shape: bf16[27,64], index: 1, kind: input, shape index: {}]   ;;  %s1388_s2 = inlined_call_operand.vmem [shape: f32[1,64], index: 2, kind: input, shape index: {}]   ;;  %s1389_s3 = inlined_call_operand.vmem [shape: f32[64,256], index: 3, kind: input, shape index: {}]   ;;  %s1390_s4 = inlined_call_operand.vmem [shape: bf16[512,64], index: 4, kind: output, shape index: {}]  }
   0x1   :  { %s1171_s17 = smov 0  }
   0x2 LB: > { %s26_s18 = sadd.s32 1, %s1135_s16  ;;  %p906_p0 = scmp.ge.s32.totalorder %s1139_s17, 1  ;;  %s1139_s17 = sphi %s1171_s17, %s14_s17   ;;  %s1135_s16 = sphi %s1169_s16, %s1392_s16   ;;  %s1131_s15 = sphi %s1167_s15, %s1391_s15  }
   0x3   : > { %p28_p1 = scmp.ge.s32.totalorder %s26_s18, 8  ;;  %p194_p2 = scmp.lt.s32.totalorder %s1139_s17, 9 }
   0x5   : > { %s1394_s18 = smov (%p28_p1, %s26_s18), 0  ;;  %p195_p3 = pnand %p906_p0, %p194_p2 }
   0x6   : > { %s907_s21 = sshll.u32 (!%p195_p3), %s1131_s15, 5  ;;  %s909_s14 = sshll.u32 (!%p195_p3), %s1131_s15, 3 }
   0x7   : > { %198 = sbr.rel (%p195_p3) target bundleno = 542 (0x21e), region = 36  ;;  %p231_p4 = scmp.lt.s32.totalorder (!%p195_p3), %s907_s21, 255 }
   0x8   : > { %p244_p5 = scmp.lt.s32.totalorder (!%p195_p3), %s909_s14, 63 }
   0xc   : > { %v1099_v0 = vld [vmem:[%s1387_s1 + $0x8] sm:$0x3f]   ;;  %vm436_vm0 = vcmask 1044480   ;;  %vm437_vm1 = vcmask 1045504   ;;  %v1141_v1 = vmov 65535   ;;  %v1100_v5 = vld [vmem:[%s1387_s1] sm:$0xff]  }
   0xd   : > { %v438_v2 = vsel %vm436_vm0, 4294967295, %v1141_v1  ;;  %s1396_s21 = smov (!%p231_p4, %s907_s21), 255  ;;  %vm387_vm2 = vcmask 220160   ;;  %v637_v22 = vld [vmem:[%s1389_s3 + $0x8] sm:$0xff]  ;;  %v1263_v53 = vld [vmem:[%s1388_s2] ss:$0 sm:$0xff] }
   0xe   : > { %v439_v3 = vsel %vm437_vm1, %v438_v2, 0  ;;  %s908_s24 = sshll.u32 %s1396_s21, 2  ;;  %716 = vmatprep.mubr.f32.mxu1 %v637_v22  ;;  %s1398_s14 = smov (!%p244_p5, %s909_s14), 63  ;;  %vm789_vm3 = vcmask 519168  }
   0xf   : > { %v441_v4 = vand.u32 %v1099_v0, %v439_v3  ;;  %s1197_s27 = scalar_lea.vmem %s1386_s0, %s908_s24  ;;  %s910_s19 = sshll.u32 %s1398_s14, 2 }
  0x10   : > { %v1101_v6 = vld [vmem:[%s1197_s27] sm:$0xff]   ;;  %v1102_v7 = vld [vmem:[%s1197_s27 + $0x8] sm:$0xff]   ;;  %v1103_v8 = vld [vmem:[%s1197_s27 + $0x10] sm:$0xff]   ;;  %s1359_s22 = scalar_lea.vmem %s1390_s4, %s910_s19 }
  0x11   : > { %1038 = vmatprep.subr.bf16.mxu0 %v441_v4  ;;  %1042 = vmatprep.mubr.msk.bf16.mxu0 %vm387_vm2, %v1101_v6  ;;  %v1104_v9 = vld [vmem:[%s1197_s27 + $0x18] sm:$0xff]   ;;  %v1105_v10 = vld [vmem:[%s1197_s27 + $0x20] sm:$0xff]   ;;  %v1106_v11 = vld [vmem:[%s1197_s27 + $0x28] sm:$0xff]  }
  0x12   : > { %1039 = vmatpush3.bf16.msra.mxu0 %v441_v4  ;;  %v1107_v12 = vld [vmem:[%s1197_s27 + $0x30] sm:$0xff]   ;;  %v1108_v13 = vld [vmem:[%s1197_s27 + $0x38] sm:$0xff]   ;;  %v1109_v14 = vld [vmem:[%s1197_s27 + $0x40] sm:$0xff]  }
  0x13   : > { %1040 = vmatprep.subr.bf16.mxu0 %v1100_v5  ;;  %v1110_v15 = vld [vmem:[%s1197_s27 + $0x48] sm:$0xff]   ;;  %v1111_v16 = vld [vmem:[%s1197_s27 + $0x50] sm:$0xff]   ;;  %v1112_v17 = vld [vmem:[%s1197_s27 + $0x58] sm:$0xff]  }
  0x14   : > { %v1113_v18 = vld [vmem:[%s1197_s27 + $0x60] sm:$0xff]   ;;  %v1114_v19 = vld [vmem:[%s1197_s27 + $0x68] sm:$0xff]   ;;  %v1115_v20 = vld [vmem:[%s1197_s27 + $0x70] sm:$0xff]  }
  0x15   : > { %v1116_v21 = vld [vmem:[%s1197_s27 + $0x78] sm:$0xff]  }
  0x16   : > { %1041 = vmatpush3.bf16.msra.mxu0 %v1100_v5 }
  0x19   : > { %1043 = vmatmul.mubr.msk.bf16.vlgmr.msra.gmra.mxu0 %vm387_vm2, %v1102_v7 }
  0x1a   : > { %1046 = vmatprep.mubr.msk.bf16.mxu0 %vm387_vm2, %v1103_v8 }
  0x21   : > { %1047 = vmatmul.mubr.msk.bf16.gmra.mxu0 %vm387_vm2, %v1104_v9 }
  0x22   : > { %1050 = vmatprep.mubr.msk.bf16.mxu0 %vm387_vm2, %v1105_v10 }
  0x29   : > { %1051 = vmatmul.mubr.msk.bf16.gmra.mxu0 %vm387_vm2, %v1106_v11 }
  0x2a   : > { %1054 = vmatprep.mubr.msk.bf16.mxu0 %vm387_vm2, %v1107_v12 }
  0x31   : > { %1055 = vmatmul.mubr.msk.bf16.gmra.mxu0 %vm387_vm2, %v1108_v13 }
  0x32   : > { %1058 = vmatprep.mubr.msk.bf16.mxu0 %vm387_vm2, %v1109_v14 }
  0x39   : > { %1059 = vmatmul.mubr.msk.bf16.gmra.mxu0 %vm387_vm2, %v1110_v15 }
  0x3a   : > { %1062 = vmatprep.mubr.msk.bf16.mxu0 %vm387_vm2, %v1111_v16 }
  0x41   : > { %1063 = vmatmul.mubr.msk.bf16.gmra.mxu0 %vm387_vm2, %v1112_v17 }
  0x42   : > { %1066 = vmatprep.mubr.msk.bf16.mxu0 %vm387_vm2, %v1113_v18 }
  0x49   : > { %1067 = vmatmul.mubr.msk.bf16.gmra.mxu0 %vm387_vm2, %v1114_v19 }
  0x4a   : > { %1070 = vmatprep.mubr.msk.bf16.mxu0 %vm387_vm2, %v1115_v20 }
  0x51   : > { %1071 = vmatmul.mubr.msk.bf16.gmra.mxu0 %vm387_vm2, %v1116_v21 }
  0xd9   : > { %v1234_v23 = vpop.f32.mrf.mxu0 }
  0xdb   : > { %v1236_v24 = vpop.f32.mrf.mxu0 }
  0xdd   : > { %v1238_v25 = vpop.f32.mrf.mxu0 }
  0xdf   : > { %v1240_v26 = vpop.f32.mrf.mxu0 }
  0xe1   : > { %v1242_v27 = vpop.f32.mrf.mxu0 }
  0xe3   : > { %v1244_v28 = vpop.f32.mrf.mxu0 }
  0xe5   : > { %v1246_v29 = vpop.f32.mrf.mxu0 }
  0xe6   : > { %v505_v22 = vadd.f32 %v1246_v29, %v1263_v53 }
  0xe7   : > { %v1248_v30 = vpop.f32.mrf.mxu0 }
  0xe9   : > { %v1052_v31 = vpop.f32.mrf.mxu0 }
  0xea   : > { %v518_v10 = vadd.f32 %v1052_v31, %v1263_v53 }
  0xeb   : > { %v509_v32 = vpop.f32.mrf.mxu0 }
  0xec   : > { %v614_v18 = vmax.f32 %v518_v10, 0.0  ;;  %v510_v19 = vadd.f32 %v1263_v53, %v509_v32 }
  0xed   : > { %v1053_v33 = vpop.f32.mrf.mxu0 }
  0xee   : > { %v521_v6 = vadd.f32 %v1053_v33, %v1263_v53 }
  0xef   : > { %v512_v34 = vpop.f32.mrf.mxu0 }
  0xf0   : > { %v615_v14 = vmax.f32 %v521_v6, 0.0  ;;  %v513_v15 = vadd.f32 %v1263_v53, %v512_v34  ;;  %v650_v6 = vld [vmem:[%s1389_s3 + $0x70] sm:$0xff] }
  0xf1   : > { %v1056_v35 = vpop.f32.mrf.mxu0 }
  0xf2   : > { %v534_v58 = vadd.f32 %v1056_v35, %v1263_v53  ;;  %v613_v31 = vmax.f32 %v513_v15, 0.0  ;;  %v502_v35 = vadd.f32 %v1242_v27, %v1263_v53  ;;  %v494_v27 = vadd.f32 %v1263_v53, %v1244_v28 }
  0xf3   : > { %v525_v36 = vpop.f32.mrf.mxu0 }
  0xf4   : > { %v618_v2 = vmax.f32 %v534_v58, 0.0  ;;  %v526_v3 = vadd.f32 %v1263_v53, %v525_v36  ;;  %v612_v36 = vmax.f32 %v510_v19, 0.0  ;;  %v608_v28 = vmax.f32 %v494_v27, 0.0 }
  0xf5   : > { %v1057_v37 = vpop.f32.mrf.mxu0 }
  0xf6   : > { %v537_v54 = vadd.f32 %v1057_v37, %v1263_v53  ;;  %v616_v11 = vmax.f32 %v526_v3, 0.0  ;;  %v649_v3 = vld [vmem:[%s1389_s3 + $0x68] sm:$0xff] }
  0xf7   : > { %v528_v38 = vpop.f32.mrf.mxu0 }
  0xf8   : > { %v619_v62 = vmax.f32 %v537_v54, 0.0  ;;  %v529_v63 = vadd.f32 %v1263_v53, %v528_v38  ;;  %v611_v38 = vmax.f32 %v505_v22, 0.0 }
  0xf9   : > { %v1250_v39 = vpop.f32.mrf.mxu0 }
  0xfa   : > { %v617_v7 = vmax.f32 %v529_v63, 0.0  ;;  %v645_v63 = vld [vmem:[%s1389_s3 + $0x48] sm:$0xff] }
  0xfb   : > { %v1252_v40 = vpop.f32.mrf.mxu0 }
  0xfd   : > { %v1254_v41 = vpop.f32.mrf.mxu0 }
  0xff   : > { %v1256_v42 = vpop.f32.mrf.mxu0 }
 0x101   : > { %v1064_v43 = vpop.f32.mrf.mxu0 }
 0x102   : > { %v566_v33 = vadd.f32 %v1064_v43, %v1263_v53 }
 0x103   : > { %v1258_v44 = vpop.f32.mrf.mxu0 }
 0x104   : > { %v626_v29 = vmax.f32 %v566_v33, 0.0  ;;  %v558_v43 = vadd.f32 %v1263_v53, %v1258_v44 }
 0x105   : > { %v1065_v45 = vpop.f32.mrf.mxu0 }
 0x106   : > { %v569_v20 = vadd.f32 %v1065_v45, %v1263_v53  ;;  %v497_v45 = vadd.f32 %v1263_v53, %v1248_v30  ;;  %v624_v44 = vmax.f32 %v558_v43, 0.0 }
 0x107   : > { %v560_v46 = vpop.f32.mrf.mxu0 }
 0x108   : > { %v627_v32 = vmax.f32 %v569_v20, 0.0  ;;  %v561_v37 = vadd.f32 %v1263_v53, %v560_v46  ;;  %v609_v30 = vmax.f32 %v497_v45, 0.0 }
 0x109   : > { %v1068_v47 = vpop.f32.mrf.mxu0 }
 0x10a   : > { %v582_v8 = vadd.f32 %v1068_v47, %v1263_v53  ;;  %v610_v47 = vmax.f32 %v502_v35, 0.0  ;;  %v625_v46 = vmax.f32 %v561_v37, 0.0 }
 0x10b   : > { %v573_v48 = vpop.f32.mrf.mxu0 }
 0x10c   : > { %v630_v16 = vmax.f32 %v582_v8, 0.0  ;;  %v574_v17 = vadd.f32 %v1263_v53, %v573_v48  ;;  %v553_v48 = vadd.f32 %v1254_v41, %v1263_v53  ;;  %v545_v41 = vadd.f32 %v1263_v53, %v1256_v42 }
 0x10d   : > { %v1069_v49 = vpop.f32.mrf.mxu0 }
 0x10e   : > { %v585_v4 = vadd.f32 %v1069_v49, %v1263_v53  ;;  %v628_v34 = vmax.f32 %v574_v17, 0.0  ;;  %v489_v49 = vadd.f32 %v1238_v25, %v1263_v53  ;;  %v481_v25 = vadd.f32 %v1263_v53, %v1240_v26  ;;  %v636_v26 = vld [vmem:[%s1389_s3] sm:$0xff] }
 0x10f   : > { %v576_v50 = vpop.f32.mrf.mxu0 }
 0x110   : > { %v631_v12 = vmax.f32 %v585_v4, 0.0  ;;  %v577_v13 = vadd.f32 %v1263_v53, %v576_v50  ;;  %v550_v50 = vadd.f32 %v1250_v39, %v1263_v53  ;;  %v607_v54 = vmax.f32 %v489_v49, 0.0  ;;  %v648_v4 = vld [vmem:[%s1389_s3 + $0x60] sm:$0xff] }
 0x111   : > { %v1072_v51 = vpop.f32.mrf.mxu0  ;;  %v542_v39 = vadd.f32 %v1263_v53, %v1252_v40  ;;  %v605_v58 = vmax.f32 %v481_v25, 0.0  ;;  %v639_v40 = vld [vmem:[%s1389_s3 + $0x18] sm:$0xff] }
 0x112   : > { %v598_v56 = vadd.f32 %v1072_v51, %v1263_v53  ;;  %v629_v21 = vmax.f32 %v577_v13, 0.0  ;;  %v486_v51 = vadd.f32 %v1234_v23, %v1263_v53  ;;  %v478_v23 = vadd.f32 %v1263_v53, %v1236_v24  ;;  %v638_v24 = vld [vmem:[%s1389_s3 + $0x10] sm:$0xff] }
 0x113   : > { %v589_v52 = vpop.f32.mrf.mxu0  ;;  %v620_v42 = vmax.f32 %v542_v39, 0.0 }
 0x114   : > { %v634_v0 = vmax.f32 %v598_v56, 0.0  ;;  %v590_v1 = vadd.f32 %v1263_v53, %v589_v52  ;;  %v623_v52 = vmax.f32 %v553_v48, 0.0  ;;  %v606_v56 = vmax.f32 %v486_v51, 0.0 }
 0x115   : > { %v1073_v55 = vpop.f32.mrf.mxu0 }
 0x116   : > { %v601_v57 = vadd.f32 %v1073_v55, %v1263_v53  ;;  %v632_v9 = vmax.f32 %v590_v1, 0.0  ;;  %v622_v55 = vmax.f32 %v550_v50, 0.0  ;;  %v647_v1 = vld [vmem:[%s1389_s3 + $0x58] sm:$0xff] }
 0x117   : > { %v592_v59 = vpop.f32.mrf.mxu0 }
 0x118   : > { %v593_v60 = vadd.f32 %v1263_v53, %v592_v59  ;;  %v635_v61 = vmax.f32 %v601_v57, 0.0  ;;  %v621_v57 = vmax.f32 %v545_v41, 0.0  ;;  %v604_v59 = vmax.f32 %v478_v23, 0.0  ;;  %v641_v53 = vld [vmem:[%s1389_s3 + $0x28] sm:$0xff] }
 0x11a   : > { %982 = vmatprep.subr.mxu1 %v635_v61  ;;  %v633_v5 = vmax.f32 %v593_v60, 0.0  ;;  %v640_v60 = vld [vmem:[%s1389_s3 + $0x20] sm:$0xff]  ;;  %v643_v61 = vld [vmem:[%s1389_s3 + $0x38] sm:$0xff] }
 0x11b   : > { %983 = vmatpush3.msra.mxu1 %v619_v62  ;;  %v642_v62 = vld [vmem:[%s1389_s3 + $0x30] sm:$0xff] }
 0x11c   : > { %984 = vmatprep.subr.mxu1 %v634_v0  ;;  %v644_v0 = vld [vmem:[%s1389_s3 + $0x40] sm:$0xff] }
 0x11d   : > { %985 = vmatpush3.msra.mxu1 %v618_v2  ;;  %v646_v2 = vld [vmem:[%s1389_s3 + $0x50] sm:$0xff] }
 0x11e   : > { %986 = vmatprep.subr.mxu1 %v633_v5  ;;  %v651_v5 = vld [vmem:[%s1389_s3 + $0x78] sm:$0xff] }
 0x11f   : > { %987 = vmatpush3.msra.mxu1 %v617_v7 }
 0x120   : > { %988 = vmatprep.subr.mxu1 %v632_v9 }
 0x121   : > { %989 = vmatpush3.msra.mxu1 %v616_v11 }
 0x122   : > { %990 = vmatprep.subr.mxu1 %v631_v12 }
 0x123   : > { %991 = vmatpush3.msra.mxu1 %v615_v14 }
 0x124   : > { %992 = vmatprep.subr.mxu1 %v630_v16 }
 0x125   : > { %993 = vmatpush3.msra.mxu1 %v614_v18 }
 0x126   : > { %994 = vmatprep.subr.mxu1 %v629_v21 }
 0x127   : > { %995 = vmatpush3.msra.mxu1 %v613_v31 }
 0x128   : > { %996 = vmatprep.subr.mxu1 %v628_v34 }
 0x129   : > { %997 = vmatpush3.msra.mxu1 %v612_v36 }
 0x12a   : > { %998 = vmatprep.subr.mxu1 %v627_v32 }
 0x12b   : > { %999 = vmatpush3.msra.mxu1 %v611_v38 }
 0x12c   : > { %1000 = vmatprep.subr.mxu1 %v626_v29 }
 0x12d   : > { %1001 = vmatpush3.msra.mxu1 %v610_v47 }
 0x12e   : > { %1002 = vmatprep.subr.mxu1 %v625_v46 }
 0x12f   : > { %1003 = vmatpush3.msra.mxu1 %v609_v30 }
 0x130   : > { %1004 = vmatprep.subr.mxu1 %v624_v44 }
 0x131   : > { %1005 = vmatpush3.msra.mxu1 %v608_v28 }
 0x132   : > { %1006 = vmatprep.subr.mxu1 %v623_v52 }
 0x133   : > { %1007 = vmatpush3.msra.mxu1 %v607_v54 }
 0x134   : > { %1008 = vmatprep.subr.mxu1 %v622_v55 }
 0x135   : > { %1009 = vmatpush3.msra.mxu1 %v606_v56 }
 0x136   : > { %1010 = vmatprep.subr.mxu1 %v621_v57 }
 0x137   : > { %1011 = vmatpush3.msra.mxu1 %v605_v58 }
 0x138   : > { %1012 = vmatprep.subr.mxu1 %v620_v42 }
 0x139   : > { %1013 = vmatpush3.msra.mxu1 %v604_v59 }
 0x13a   : > { %717 = vmatmul.mubr.f32.vlgmr.msra.gmra.mxu1 %v636_v26 }
 0x13b   : > { %721 = vmatprep.mubr.f32.mxu1 %v639_v40 }
 0x13e   : > { %722 = vmatmul.mubr.f32.gmra.mxu1 %v638_v24 }
 0x13f   : > { %726 = vmatprep.mubr.f32.mxu1 %v641_v53 }
 0x142   : > { %727 = vmatmul.mubr.f32.gmra.mxu1 %v640_v60 }
 0x143   : > { %731 = vmatprep.mubr.f32.mxu1 %v643_v61 }
 0x146   : > { %732 = vmatmul.mubr.f32.gmra.mxu1 %v642_v62 }
 0x147   : > { %736 = vmatprep.mubr.f32.mxu1 %v645_v63 }
 0x14a   : > { %737 = vmatmul.mubr.f32.gmra.mxu1 %v644_v0 }
 0x14b   : > { %741 = vmatprep.mubr.f32.mxu1 %v647_v1 }
 0x14e   : > { %742 = vmatmul.mubr.f32.gmra.mxu1 %v646_v2 }
 0x14f   : > { %746 = vmatprep.mubr.f32.mxu1 %v649_v3 }
 0x152   : > { %747 = vmatmul.mubr.f32.gmra.mxu1 %v648_v4 }
 0x153   : > { %751 = vmatprep.mubr.f32.mxu1 %v651_v5 }
 0x156   : > { %752 = vmatmul.mubr.f32.gmra.mxu1 %v650_v6 }
 0x1fa   : > { %v1014_v7 = vpop.f32.mrf.mxu1 }
 0x1fc   : > { %v1015_v8 = vpop.f32.mrf.mxu1 }
 0x1fd   : > { %v1016_v9 = vadd.f32 %v1015_v8, %v1014_v7 }
 0x1fe   : > { %v1017_v10 = vpop.f32.mrf.mxu1 }
 0x1ff   : > { %v956_v11 = vpack.c.bf16 %v1016_v9, %v1016_v9 }
 0x200   : > { %v1018_v12 = vpop.f32.mrf.mxu1 }
 0x201   : > { %790 = vst.msk [vmem:[%s1359_s22] sm:$0xf] %vm789_vm3, %v956_v11  ;;  %v1019_v13 = vadd.f32 %v1018_v12, %v1017_v10 }
 0x202   : > { %v1020_v14 = vpop.f32.mrf.mxu1 }
 0x203   : > { %v957_v15 = vpack.c.bf16 %v1019_v13, %v1019_v13 }
 0x204   : > { %v1021_v16 = vpop.f32.mrf.mxu1 }
 0x205   : > { %791 = vst.msk [vmem:[%s1359_s22 + $0x4] sm:$0xf] %vm789_vm3, %v957_v15  ;;  %v1022_v17 = vadd.f32 %v1021_v16, %v1020_v14 }
 0x206   : > { %v1023_v18 = vpop.f32.mrf.mxu1 }
 0x207   : > { %v958_v19 = vpack.c.bf16 %v1022_v17, %v1022_v17 }
 0x208   : > { %v1024_v20 = vpop.f32.mrf.mxu1 }
 0x209   : > { %792 = vst.msk [vmem:[%s1359_s22 + $0x8] sm:$0xf] %vm789_vm3, %v958_v19  ;;  %v1025_v21 = vadd.f32 %v1024_v20, %v1023_v18 }
 0x20a   : > { %v1026_v22 = vpop.f32.mrf.mxu1 }
 0x20b   : > { %v959_v31 = vpack.c.bf16 %v1025_v21, %v1025_v21 }
 0x20c   : > { %v1027_v33 = vpop.f32.mrf.mxu1 }
 0x20d   : > { %793 = vst.msk [vmem:[%s1359_s22 + $0xc] sm:$0xf] %vm789_vm3, %v959_v31  ;;  %v1028_v34 = vadd.f32 %v1027_v33, %v1026_v22 }
 0x20e   : > { %v1029_v35 = vpop.f32.mrf.mxu1 }
 0x20f   : > { %v960_v36 = vpack.c.bf16 %v1028_v34, %v1028_v34 }
 0x210   : > { %v1030_v32 = vpop.f32.mrf.mxu1 }
 0x211   : > { %794 = vst.msk [vmem:[%s1359_s22 + $0x10] sm:$0xf] %vm789_vm3, %v960_v36  ;;  %v1031_v37 = vadd.f32 %v1030_v32, %v1029_v35 }
 0x212   : > { %v1032_v38 = vpop.f32.mrf.mxu1 }
 0x213   : > { %v961_v45 = vpack.c.bf16 %v1031_v37, %v1031_v37 }
 0x214   : > { %v1033_v29 = vpop.f32.mrf.mxu1 }
 0x215   : > { %795 = vst.msk [vmem:[%s1359_s22 + $0x14] sm:$0xf] %vm789_vm3, %v961_v45  ;;  %v1034_v43 = vadd.f32 %v1033_v29, %v1032_v38 }
 0x216   : > { %v1035_v47 = vpop.f32.mrf.mxu1 }
 0x217   : > { %v962_v27 = vpack.c.bf16 %v1034_v43, %v1034_v43 }
 0x218   : > { %v1036_v48 = vpop.f32.mrf.mxu1 }
 0x219   : > { %796 = vst.msk [vmem:[%s1359_s22 + $0x18] sm:$0xf] %vm789_vm3, %v962_v27  ;;  %v1037_v46 = vadd.f32 %v1036_v48, %v1035_v47 }
 0x21b   : > { %v963_v49 = vpack.c.bf16 %v1037_v46, %v1037_v46 }
 0x21d   : > { %797 = vst.msk [vmem:[%s1359_s22 + $0x1c] sm:$0xf] %vm789_vm3, %v963_v49 }
 0x21e PF: > { %s14_s17 = sadd.s32 1, %s1139_s17   ;;  %s1391_s15 = smov %s1135_s16 }
 0x21f   : > { %p11_p6 = scmp.ge.s32.totalorder %s14_s17, 10   ;;  %s1392_s16 = smov %s1394_s18 }
 0x221   :  { %13 = sbr.rel (!%p11_p6) target bundleno = 2 (0x2), region = 72 }

// kernel: cnn_branch_forward.5
= control target key start
LH: loop header
LB: loop body
LE: loop exit
PB: predicated region body
PF: predicated region fallthrough
CT: control target
= control target key end

     0   :  { %s1847_s15 = smov 0   ;;  %s1849_s16 = smov 0   ;;  %s2159_s0 = inlined_call_operand.vmem [shape: bf16[512,576], index: 0, kind: input, shape index: {}]   ;;  %s2160_s1 = inlined_call_operand.vmem [shape: bf16[576,128], index: 1, kind: input, shape index: {}]   ;;  %s2161_s2 = inlined_call_operand.vmem [shape: f32[1,128], index: 2, kind: input, shape index: {}]   ;;  %s2162_s3 = inlined_call_operand.vmem [shape: f32[32,128], index: 3, kind: input, shape index: {}]   ;;  %s2163_s4 = inlined_call_operand.vmem [shape: bf16[128,128], index: 4, kind: output, shape index: {}]  }
   0x1   :  { %s1851_s17 = smov 0  }
   0x2 LB: > { %s26_s18 = sadd.s32 1, %s1816_s16  ;;  %p1348_p0 = scmp.ge.s32.totalorder %s1820_s17, 1  ;;  %s1820_s17 = sphi %s1851_s17, %s14_s17   ;;  %s1816_s16 = sphi %s1849_s16, %s2181_s16   ;;  %s1812_s15 = sphi %s1847_s15, %s2180_s15  }
   0x3   : > { %p28_p1 = scmp.ge.s32.totalorder %s26_s18, 4  ;;  %p195_p2 = scmp.lt.s32.totalorder %s1820_s17, 5 }
   0x5   : > { %s2183_s18 = smov (%p28_p1, %s26_s18), 0  ;;  %p196_p3 = pnand %p1348_p0, %p195_p2 }
   0x7   : > { %199 = sbr.rel (%p196_p3) target bundleno = 568 (0x238), region = 36 }
   0xc   : > { %v1706_v0 = vld [vmem:[%s2160_s1 + $0x78] sm:$0xff]   ;;  %v1710_v4 = vld [vmem:[%s2160_s1 + $0x70] sm:$0xff]   ;;  %v1714_v8 = vld [vmem:[%s2160_s1 + $0x68] sm:$0xff]   ;;  %s1349_s25 = sshll.u32 %s1812_s15, 4  ;;  %vm799_vm0 = vcmask 523264   ;;  %s1351_s14 = sshll.u32 %s1812_s15, 2 }
   0xd   : > { %v1707_v1 = vld [vmem:[%s2160_s1 + $0x38] sm:$0xff]   ;;  %1459 = vmatprep.subr.bf16.mxu0 %v1706_v0  ;;  %v1711_v5 = vld [vmem:[%s2160_s1 + $0x30] sm:$0xff]   ;;  %v1715_v9 = vld [vmem:[%s2160_s1 + $0x28] sm:$0xff]   ;;  %p233_p4 = scmp.lt.s32.totalorder %s1349_s25, 63  ;;  %p247_p5 = scmp.lt.s32.totalorder %s1351_s14, 15 }
   0xe   : > { %v1708_v2 = vld [vmem:[%s2160_s1 + $0xf8] sm:$0xff]   ;;  %1460 = vmatpush3.bf16.msra.mxu0 %v1707_v1  ;;  %v1712_v6 = vld [vmem:[%s2160_s1 + $0xf0] sm:$0xff]   ;;  %v1716_v10 = vld [vmem:[%s2160_s1 + $0xe8] sm:$0xff]  }
   0xf   : > { %v1709_v3 = vld [vmem:[%s2160_s1 + $0xb8] sm:$0xff]   ;;  %1523 = vmatprep.subr.bf16.mxu1 %v1708_v2  ;;  %1461 = vmatprep.subr.bf16.mxu0 %v1710_v4  ;;  %v1713_v7 = vld [vmem:[%s2160_s1 + $0xb0] sm:$0xff]   ;;  %v1717_v11 = vld [vmem:[%s2160_s1 + $0xa8] sm:$0xff]   ;;  %s2185_s25 = smov (!%p233_p4, %s1349_s25), 63  ;;  %s2187_s14 = smov (!%p247_p5, %s1351_s14), 15 }
  0x10   : > { %1524 = vmatpush3.bf16.msra.mxu1 %v1709_v3  ;;  %v1718_v12 = vld [vmem:[%s2160_s1 + $0x60] sm:$0xff]   ;;  %v1722_v16 = vld [vmem:[%s2160_s1 + $0x58] sm:$0xff]   ;;  %v1726_v20 = vld [vmem:[%s2160_s1 + $0x50] sm:$0xff]   ;;  %s1681_s27 = smul.u32 20, %s2185_s25  ;;  %s1352_s19 = sshll.u32 %s2187_s14, 2 }
  0x11   : > { %1525 = vmatprep.subr.bf16.mxu1 %v1712_v6  ;;  %v1719_v13 = vld [vmem:[%s2160_s1 + $0x20] sm:$0xff]   ;;  %v1723_v17 = vld [vmem:[%s2160_s1 + $0x18] sm:$0xff]   ;;  %v1727_v21 = vld [vmem:[%s2160_s1 + $0x10] sm:$0xff]   ;;  %s253_s22 = scalar_lea.vmem %s2163_s4, %s1352_s19 }
  0x12   : > { %1462 = vmatpush3.bf16.msra.mxu0 %v1711_v5  ;;  %v1720_v14 = vld [vmem:[%s2160_s1 + $0xe0] sm:$0xff]   ;;  %v1724_v18 = vld [vmem:[%s2160_s1 + $0xd8] sm:$0xff]   ;;  %v1728_v22 = vld [vmem:[%s2160_s1 + $0xd0] sm:$0xff]   ;;  %s1958_s11 = scalar_lea.vmem %s2159_s0, %s1681_s27 }
  0x13   : > { %1463 = vmatprep.subr.bf16.mxu0 %v1714_v8  ;;  %v1721_v15 = vld [vmem:[%s2160_s1 + $0xa0] sm:$0xff]   ;;  %v1725_v19 = vld [vmem:[%s2160_s1 + $0x98] sm:$0xff]   ;;  %v1729_v23 = vld [vmem:[%s2160_s1 + $0x90] sm:$0xff]  }
  0x14   : > { %1526 = vmatpush3.bf16.msra.mxu1 %v1713_v7  ;;  %v1730_v24 = vld [vmem:[%s2160_s1 + $0x48] sm:$0xff]   ;;  %v1734_v28 = vld [vmem:[%s2160_s1 + $0x40] sm:$0xff]   ;;  %v1753_v41 = vld [vmem:[%s1958_s11 + $0x5c] ss:$20 sps:$4 sm:$0xff]  }
  0x15   : > { %1527 = vmatprep.subr.bf16.mxu1 %v1716_v10  ;;  %v1731_v25 = vld [vmem:[%s2160_s1 + $0x8] sm:$0xff]   ;;  %v1735_v29 = vld [vmem:[%s2160_s1] sm:$0xff]   ;;  %v1765_v42 = vld [vmem:[%s2160_s1 + $0x118] sm:$0xff]  }
  0x16   : > { %1464 = vmatpush3.bf16.msra.mxu0 %v1715_v9  ;;  %v1732_v26 = vld [vmem:[%s2160_s1 + $0xc8] sm:$0xff]   ;;  %v1736_v30 = vld [vmem:[%s2160_s1 + $0xc0] sm:$0xff]   ;;  %v1756_v44 = vld [vmem:[%s1958_s11 + $0x7c] ss:$20 sps:$4 sm:$0xff]  }
  0x17   : > { %1465 = vmatprep.subr.bf16.mxu0 %v1718_v12  ;;  %v1733_v27 = vld [vmem:[%s2160_s1 + $0x88] sm:$0xff]   ;;  %v1737_v31 = vld [vmem:[%s1958_s11] ss:$20 sps:$4 sm:$0xff]   ;;  %v1739_v32 = vld [vmem:[%s1958_s11 + $0x4] ss:$20 sps:$4 sm:$0xff]  }
  0x18   : > { %1528 = vmatpush3.bf16.msra.mxu1 %v1717_v11  ;;  %v1740_v33 = vld [vmem:[%s2160_s1 + $0x80] sm:$0xff]   ;;  %856 = vmatprep.mubr.bf16.mxu0 %v1739_v32  ;;  %v1741_v34 = vld [vmem:[%s1958_s11 + $0x8] ss:$20 sps:$4 sm:$0xff]   ;;  %v1755_v45 = vld [vmem:[%s1958_s11 + $0x58] ss:$20 sps:$4 sm:$0xff]  }
  0x19   : > { %1529 = vmatprep.subr.bf16.mxu1 %v1720_v14  ;;  %v1743_v35 = vld [vmem:[%s1958_s11 + $0xc] ss:$20 sps:$4 sm:$0xff]   ;;  %v1747_v37 = vld [vmem:[%s1958_s11 + $0x34] ss:$20 sps:$4 sm:$0xff]   ;;  %v1749_v40 = vld [vmem:[%s1958_s11 + $0x30] ss:$20 sps:$4 sm:$0xff]  }
  0x1a   : > { %1466 = vmatpush3.bf16.msra.mxu0 %v1719_v13  ;;  %v1744_v36 = vld [vmem:[%s1958_s11 + $0x2c] ss:$20 sps:$4 sm:$0xff]   ;;  %953 = vmatprep.mubr.bf16.mxu1 %v1743_v35  ;;  %v1746_v38 = vld [vmem:[%s1958_s11 + $0x28] ss:$20 sps:$4 sm:$0xff]   ;;  %v1752_v43 = vld [vmem:[%s1958_s11 + $0x50] ss:$20 sps:$4 sm:$0xff]  }
  0x1b   : > { %1467 = vmatprep.subr.bf16.mxu0 %v1722_v16  ;;  %v1750_v39 = vld [vmem:[%s1958_s11 + $0x54] ss:$20 sps:$4 sm:$0xff]   ;;  %v1759_v46 = vld [vmem:[%s1958_s11 + $0x84] ss:$20 sps:$4 sm:$0xff]   ;;  %v1766_v53 = vld [vmem:[%s1958_s11 + $0xac] ss:$20 sps:$4 sm:$0xff]  }
  0x1c   : > { %1530 = vmatpush3.bf16.msra.mxu1 %v1721_v15  ;;  %v1778_v47 = vld [vmem:[%s2160_s1 + $0x110] sm:$0xff]   ;;  %v1785_v48 = vld [vmem:[%s2160_s1 + $0x108] sm:$0xff]   ;;  %v1762_v50 = vld [vmem:[%s1958_s11 + $0xa4] ss:$20 sps:$4 sm:$0xff]  }
  0x1d   : > { %1531 = vmatprep.subr.bf16.mxu1 %v1724_v18  ;;  %v1758_v49 = vld [vmem:[%s1958_s11 + $0x78] ss:$20 sps:$4 sm:$0xff]   ;;  %v1789_v51 = vld [vmem:[%s2160_s1 + $0x100] sm:$0xff]   ;;  %v1768_v56 = vld [vmem:[%s1958_s11 + $0xa8] ss:$20 sps:$4 sm:$0xff]  }
  0x1e   : > { %1468 = vmatpush3.bf16.msra.mxu0 %v1723_v17  ;;  %v1761_v52 = vld [vmem:[%s1958_s11 + $0x80] ss:$20 sps:$4 sm:$0xff]   ;;  %v1771_v58 = vld [vmem:[%s1958_s11 + $0xc8] ss:$20 sps:$4 sm:$0xff]   ;;  %v1774_v60 = vld [vmem:[%s1958_s11 + $0xd0] ss:$20 sps:$4 sm:$0xff]  }
  0x1f   : > { %1469 = vmatprep.subr.bf16.mxu0 %v1726_v20  ;;  %v1764_v54 = vld [vmem:[%s1958_s11 + $0xa0] ss:$20 sps:$4 sm:$0xff]   ;;  %v1779_v61 = vld [vmem:[%s1958_s11 + $0xfc] ss:$20 sps:$4 sm:$0xff]   ;;  %v1781_v0 = vld [vmem:[%s1958_s11 + $0xf8] ss:$20 sps:$4 sm:$0xff]  }
  0x20   : > { %1532 = vmatpush3.bf16.msra.mxu1 %v1725_v19  ;;  %v1769_v55 = vld [vmem:[%s1958_s11 + $0xcc] ss:$20 sps:$4 sm:$0xff]   ;;  %v1772_v57 = vld [vmem:[%s1958_s11 + $0xd4] ss:$20 sps:$4 sm:$0xff]   ;;  %v1777_v62 = vld [vmem:[%s1958_s11 + $0xf0] ss:$20 sps:$4 sm:$0xff]  }
  0x21   : > { %1533 = vmatprep.subr.bf16.mxu1 %v1728_v22  ;;  %v1775_v59 = vld [vmem:[%s1958_s11 + $0xf4] ss:$20 sps:$4 sm:$0xff]   ;;  %v1782_v63 = vld [vmem:[%s1958_s11 + $0x11c] ss:$20 sps:$4 sm:$0xff]   ;;  %v1786_v1 = vld [vmem:[%s1958_s11 + $0x124] ss:$20 sps:$4 sm:$0xff]  }
  0x22   : > { %1470 = vmatpush3.bf16.msra.mxu0 %v1727_v21  ;;  %v1784_v2 = vld [vmem:[%s1958_s11 + $0x118] ss:$20 sps:$4 sm:$0xff]   ;;  %v1790_v3 = vld [vmem:[%s1958_s11 + $0x10] ss:$20 sps:$4 sm:$0xff]   ;;  %v1788_v4 = vld [vmem:[%s1958_s11 + $0x120] ss:$20 sps:$4 sm:$0xff]  }
  0x23   : > { %1471 = vmatprep.subr.bf16.mxu0 %v1730_v24  ;;  %v1791_v5 = vld [vmem:[%s1958_s11 + $0x38] ss:$20 sps:$4 sm:$0xff]   ;;  %v1792_v6 = vld [vmem:[%s1958_s11 + $0x60] ss:$20 sps:$4 sm:$0xff]   ;;  %v1793_v7 = vld [vmem:[%s1958_s11 + $0x88] ss:$20 sps:$4 sm:$0xff]  }
  0x24   : > { %1534 = vmatpush3.bf16.msra.mxu1 %v1729_v23  ;;  %v1794_v8 = vld [vmem:[%s1958_s11 + $0xb0] ss:$20 sps:$4 sm:$0xff]   ;;  %v1795_v9 = vld [vmem:[%s1958_s11 + $0xd8] ss:$20 sps:$4 sm:$0xff]   ;;  %v1796_v10 = vld [vmem:[%s1958_s11 + $0x100] ss:$20 sps:$4 sm:$0xff]  }
  0x25   : > { %1535 = vmatprep.subr.bf16.mxu1 %v1732_v26  ;;  %v1797_v11 = vld [vmem:[%s1958_s11 + $0x128] ss:$20 sps:$4 sm:$0xff]   ;;  %v1131_v13 = vld [vmem:[%s2162_s3] sm:$0xff] }
  0x26   : > { %1472 = vmatpush3.bf16.msra.mxu0 %v1731_v25  ;;  %v2035_v14 = vld [vmem:[%s2161_s2] ss:$0 sm:$0xff] }
  0x27   : > { %1473 = vmatprep.subr.bf16.mxu0 %v1734_v28 }
  0x28   : > { %1536 = vmatpush3.bf16.msra.mxu1 %v1733_v27 }
  0x29   : > { %1537 = vmatprep.subr.bf16.mxu1 %v1736_v30 }
  0x2a   : > { %1474 = vmatpush3.bf16.msra.mxu0 %v1735_v29 }
  0x2b   : > { %1619 = vmatprep.subr.bf16.mxu0 %v1765_v42 }
  0x2c   : > { %1538 = vmatpush3.bf16.msra.mxu1 %v1740_v33 }
  0x2d   : > { %857 = vmatmul.mubr.bf16.vlgmr.msra.gmra.mxu0 %v1737_v31 }
  0x2e   : > { %864 = vmatprep.mubr.bf16.mxu0 %v1744_v36  ;;  %1620 = vmatpush3.bf16.msra.mxu0 %v1765_v42 }
  0x2f   : > { %954 = vmatmul.mubr.bf16.vlgmr.msra.gmra.mxu1 %v1741_v34  ;;  %1621 = vmatprep.subr.bf16.mxu0 %v1778_v47 }
  0x30   : > { %961 = vmatprep.mubr.bf16.mxu1 %v1747_v37 }
  0x32   : > { %1622 = vmatpush3.bf16.msra.mxu0 %v1778_v47 }
  0x33   : > { %1623 = vmatprep.subr.bf16.mxu0 %v1785_v48 }
  0x35   : > { %865 = vmatmul.mubr.bf16.gmra.mxu0 %v1746_v38 }
  0x36   : > { %872 = vmatprep.mubr.bf16.mxu0 %v1750_v39  ;;  %1624 = vmatpush3.bf16.msra.mxu0 %v1785_v48 }
  0x37   : > { %962 = vmatmul.mubr.bf16.gmra.mxu1 %v1749_v40  ;;  %1625 = vmatprep.subr.bf16.mxu0 %v1789_v51 }
  0x38   : > { %969 = vmatprep.mubr.bf16.mxu1 %v1753_v41 }
  0x3a   : > { %1626 = vmatpush3.bf16.msra.mxu0 %v1789_v51 }
  0x3d   : > { %873 = vmatmul.mubr.bf16.gmra.mxu0 %v1752_v43 }
  0x3e   : > { %880 = vmatprep.mubr.bf16.mxu0 %v1756_v44 }
  0x3f   : > { %970 = vmatmul.mubr.bf16.gmra.mxu1 %v1755_v45 }
  0x40   : > { %977 = vmatprep.mubr.bf16.mxu1 %v1759_v46 }
  0x45   : > { %881 = vmatmul.mubr.bf16.gmra.mxu0 %v1758_v49 }
  0x46   : > { %888 = vmatprep.mubr.bf16.mxu0 %v1762_v50 }
  0x47   : > { %978 = vmatmul.mubr.bf16.gmra.mxu1 %v1761_v52 }
  0x48   : > { %985 = vmatprep.mubr.bf16.mxu1 %v1766_v53 }
  0x4d   : > { %889 = vmatmul.mubr.bf16.gmra.mxu0 %v1764_v54 }
  0x4e   : > { %896 = vmatprep.mubr.bf16.mxu0 %v1769_v55 }
  0x4f   : > { %986 = vmatmul.mubr.bf16.gmra.mxu1 %v1768_v56 }
  0x50   : > { %993 = vmatprep.mubr.bf16.mxu1 %v1772_v57 }
  0x55   : > { %897 = vmatmul.mubr.bf16.gmra.mxu0 %v1771_v58 }
  0x56   : > { %904 = vmatprep.mubr.bf16.mxu0 %v1775_v59 }
  0x57   : > { %994 = vmatmul.mubr.bf16.gmra.mxu1 %v1774_v60 }
  0x58   : > { %1001 = vmatprep.mubr.bf16.mxu1 %v1779_v61 }
  0x5d   : > { %905 = vmatmul.mubr.bf16.gmra.mxu0 %v1777_v62 }
  0x5e   : > { %912 = vmatprep.mubr.bf16.mxu0 %v1782_v63 }
  0x5f   : > { %1002 = vmatmul.mubr.bf16.gmra.mxu1 %v1781_v0 }
  0x60   : > { %1009 = vmatprep.mubr.bf16.mxu1 %v1786_v1 }
  0x65   : > { %913 = vmatmul.mubr.bf16.gmra.mxu0 %v1784_v2 }
  0x66   : > { %1627 = vmatprep.mubr.msk.bf16.mxu0 %vm799_vm0, %v1790_v3 }
  0x67   : > { %1010 = vmatmul.mubr.bf16.gmra.mxu1 %v1788_v4 }
  0x68   : > { %1675 = vmatprep.mubr.f32.mxu1 %v1131_v13 }
  0x6d   : > { %1628 = vmatmul.mubr.msk.bf16.vlgmr.msra.gmra.mxu0 %vm799_vm0, %v1791_v5 }
  0x6e   : > { %1631 = vmatprep.mubr.msk.bf16.mxu0 %vm799_vm0, %v1792_v6 }
  0x75   : > { %1632 = vmatmul.mubr.msk.bf16.gmra.mxu0 %vm799_vm0, %v1793_v7 }
  0x76   : > { %1635 = vmatprep.mubr.msk.bf16.mxu0 %vm799_vm0, %v1794_v8 }
  0x7d   : > { %1636 = vmatmul.mubr.msk.bf16.gmra.mxu0 %vm799_vm0, %v1795_v9 }
  0x7e   : > { %1639 = vmatprep.mubr.msk.bf16.mxu0 %vm799_vm0, %v1796_v10 }
  0x85   : > { %1640 = vmatmul.mubr.msk.bf16.gmra.mxu0 %vm799_vm0, %v1797_v11 }
  0xed   : > { %v1475_v12 = vpop.f32.mrf.mxu0 }
  0xef   : > { %v1476_v15 = vpop.f32.mrf.mxu0  ;;  %v1539_v17 = vpop.f32.mrf.mxu1 }
  0xf0   : > { %v1477_v16 = vadd.f32 %v1476_v15, %v1475_v12 }
  0xf1   : > { %v1478_v18 = vpop.f32.mrf.mxu0  ;;  %v1540_v20 = vpop.f32.mrf.mxu1 }
  0xf2   : > { %v859_v19 = vadd.f32 %v1477_v16, %v2035_v14  ;;  %v1541_v21 = vadd.f32 %v1540_v20, %v1539_v17 }
  0xf3   : > { %v1479_v22 = vpop.f32.mrf.mxu0  ;;  %v1542_v24 = vpop.f32.mrf.mxu1 }
  0xf4   : > { %v1480_v23 = vadd.f32 %v1479_v22, %v1478_v18  ;;  %v2038_v26 = vadd.f32 %v1541_v21, %v859_v19 }
  0xf5   : > { %v1481_v25 = vpop.f32.mrf.mxu0  ;;  %v1543_v28 = vpop.f32.mrf.mxu1 }
  0xf6   : > { %2164 = vst [vmem:[#allocation2_spill] sm:$0xff] %v2038_v26  ;;  %v862_v27 = vadd.f32 %v1480_v23, %v2035_v14  ;;  %v1544_v29 = vadd.f32 %v1543_v28, %v1542_v24 }
  0xf7   : > { %v1482_v30 = vpop.f32.mrf.mxu0  ;;  %v1545_v32 = vpop.f32.mrf.mxu1 }
  0xf8   : > { %v1483_v31 = vadd.f32 %v1482_v30, %v1481_v25  ;;  %v2041_v34 = vadd.f32 %v1544_v29, %v862_v27 }
  0xf9   : > { %v1484_v33 = vpop.f32.mrf.mxu0  ;;  %v1546_v36 = vpop.f32.mrf.mxu1 }
  0xfa   : > { %2165 = vst [vmem:[#allocation3_spill] sm:$0xff] %v2041_v34  ;;  %v867_v35 = vadd.f32 %v1483_v31, %v2035_v14  ;;  %v1547_v37 = vadd.f32 %v1546_v36, %v1545_v32 }
  0xfb   : > { %v1485_v38 = vpop.f32.mrf.mxu0  ;;  %v1548_v40 = vpop.f32.mrf.mxu1 }
  0xfc   : > { %v1486_v39 = vadd.f32 %v1485_v38, %v1484_v33  ;;  %v2044_v42 = vadd.f32 %v1547_v37, %v867_v35 }
  0xfd   : > { %v1487_v41 = vpop.f32.mrf.mxu0  ;;  %v1549_v44 = vpop.f32.mrf.mxu1 }
  0xfe   : > { %2166 = vst [vmem:[#allocation4_spill] sm:$0xff] %v2044_v42  ;;  %v870_v43 = vadd.f32 %v1486_v39, %v2035_v14  ;;  %v1550_v45 = vadd.f32 %v1549_v44, %v1548_v40 }
  0xff   : > { %v1488_v46 = vpop.f32.mrf.mxu0  ;;  %v1551_v48 = vpop.f32.mrf.mxu1 }
 0x100   : > { %v1489_v47 = vadd.f32 %v1488_v46, %v1487_v41  ;;  %v2047_v50 = vadd.f32 %v1550_v45, %v870_v43 }
 0x101   : > { %v1490_v49 = vpop.f32.mrf.mxu0  ;;  %v1552_v52 = vpop.f32.mrf.mxu1 }
 0x102   : > { %2167 = vst [vmem:[#allocation5_spill] sm:$0xff] %v2047_v50  ;;  %v875_v51 = vadd.f32 %v1489_v47, %v2035_v14  ;;  %v1553_v53 = vadd.f32 %v1552_v52, %v1551_v48 }
 0x103   : > { %v1491_v54 = vpop.f32.mrf.mxu0  ;;  %v2052_v56 = vpop.f32.mrf.mxu1 }
 0x104   : > { %v2050_v55 = vadd.f32 %v1491_v54, %v1490_v49  ;;  %v2054_v58 = vadd.f32 %v1553_v53, %v875_v51 }
 0x105   : > { %v1493_v57 = vpop.f32.mrf.mxu0  ;;  %v2056_v59 = vpop.f32.mrf.mxu1 }
 0x107   : > { %v1494_v60 = vpop.f32.mrf.mxu0  ;;  %v2060_v62 = vpop.f32.mrf.mxu1 }
 0x108   : > { %v2058_v61 = vadd.f32 %v1494_v60, %v1493_v57 }
 0x109   : > { %v1496_v63 = vpop.f32.mrf.mxu0  ;;  %v2062_v0 = vpop.f32.mrf.mxu1 }
 0x10b   : > { %v1497_v1 = vpop.f32.mrf.mxu0  ;;  %v2066_v3 = vpop.f32.mrf.mxu1 }
 0x10c   : > { %v2064_v2 = vadd.f32 %v1497_v1, %v1496_v63 }
 0x10d   : > { %v1499_v4 = vpop.f32.mrf.mxu0  ;;  %v2068_v5 = vpop.f32.mrf.mxu1 }
 0x10f   : > { %v1500_v6 = vpop.f32.mrf.mxu0  ;;  %v2072_v8 = vpop.f32.mrf.mxu1 }
 0x110   : > { %v2070_v7 = vadd.f32 %v1500_v6, %v1499_v4 }
 0x111   : > { %v1502_v9 = vpop.f32.mrf.mxu0  ;;  %v2074_v10 = vpop.f32.mrf.mxu1 }
 0x113   : > { %v1503_v11 = vpop.f32.mrf.mxu0  ;;  %v2076_v12 = vpop.f32.mrf.mxu1 }
 0x115   : > { %v1505_v13 = vpop.f32.mrf.mxu0  ;;  %v2078_v15 = vpop.f32.mrf.mxu1 }
 0x117   : > { %v1506_v16 = vpop.f32.mrf.mxu0  ;;  %v1569_v17 = vpop.f32.mrf.mxu1 }
 0x119   : > { %v1508_v18 = vpop.f32.mrf.mxu0  ;;  %v1570_v19 = vpop.f32.mrf.mxu1 }
 0x11b   : > { %v1509_v20 = vpop.f32.mrf.mxu0  ;;  %v1572_v21 = vpop.f32.mrf.mxu1 }
 0x11d   : > { %v1511_v22 = vpop.f32.mrf.mxu0  ;;  %v1573_v24 = vpop.f32.mrf.mxu1 }
 0x11f   : > { %v1512_v23 = vpop.f32.mrf.mxu0  ;;  %v1575_v28 = vpop.f32.mrf.mxu1 }
 0x120   : > { %v1513_v63 = vadd.f32 %v1512_v23, %v1511_v22  ;;  %v1504_v22 = vadd.f32 %v1503_v11, %v1502_v9 }
 0x121   : > { %v1514_v25 = vpop.f32.mrf.mxu0  ;;  %v1576_v31 = vpop.f32.mrf.mxu1 }
 0x123   : > { %v1515_v27 = vpop.f32.mrf.mxu0  ;;  %v1578_v35 = vpop.f32.mrf.mxu1 }
 0x124   : > { %v1516_v60 = vadd.f32 %v1515_v27, %v1514_v25 }
 0x125   : > { %v1517_v29 = vpop.f32.mrf.mxu0  ;;  %v1579_v38 = vpop.f32.mrf.mxu1 }
 0x126   : > { %v1580_v42 = vadd.f32 %v1579_v38, %v1578_v35  ;;  %v894_v38 = vadd.f32 %v1504_v22, %v2035_v14 }
 0x127   : > { %v1518_v30 = vpop.f32.mrf.mxu0  ;;  %v1581_v41 = vpop.f32.mrf.mxu1 }
 0x128   : > { %v1519_v52 = vadd.f32 %v1518_v30, %v1517_v29  ;;  %v907_v29 = vadd.f32 %v1513_v63, %v2035_v14  ;;  %v1577_v30 = vadd.f32 %v1576_v31, %v1575_v28 }
 0x129   : > { %v1520_v32 = vpop.f32.mrf.mxu0  ;;  %v1582_v45 = vpop.f32.mrf.mxu1 }
 0x12a   : > { %v915_v4 = vadd.f32 %v1519_v52, %v2035_v14  ;;  %v1583_v6 = vadd.f32 %v1582_v45, %v1581_v41  ;;  %v1571_v52 = vadd.f32 %v1570_v19, %v1569_v17  ;;  %v1004_v35 = vadd.f32 %v1577_v30, %v907_v29 }
 0x12b   : > { %v1521_v33 = vpop.f32.mrf.mxu0  ;;  %v1584_v48 = vpop.f32.mrf.mxu1 }
 0x12c   : > { %v1522_v53 = vadd.f32 %v1521_v33, %v1520_v32  ;;  %v1012_v32 = vadd.f32 %v1583_v6, %v915_v4  ;;  %v1574_v33 = vadd.f32 %v1573_v24, %v1572_v21  ;;  %v886_v24 = vadd.f32 %v2064_v2, %v2035_v14  ;;  %v2176_v6 = vld [vmem:[#allocation3_spill] sm:$0xff] }
 0x12d   : > { %v2080_v36 = vpop.f32.mrf.mxu0  ;;  %v1585_v54 = vpop.f32.mrf.mxu1  ;;  %v878_v2 = vadd.f32 %v2050_v55, %v2035_v14 }
 0x12e   : > { %2168 = vst [vmem:[#allocation6_spill] sm:$0xff] %v2080_v36  ;;  %v1586_v26 = vadd.f32 %v1585_v54, %v1584_v48  ;;  %v910_v36 = vadd.f32 %v1516_v60, %v2035_v14 }
 0x12f   : > { %v2082_v37 = vpop.f32.mrf.mxu0 }
 0x130   : > { %2169 = vst [vmem:[#allocation7_spill] sm:$0xff] %v2082_v37  ;;  %v918_v37 = vadd.f32 %v1522_v53, %v2035_v14  ;;  %v1007_v48 = vadd.f32 %v1580_v42, %v910_v36  ;;  %v1565_v42 = vadd.f32 %v2074_v10, %v2072_v8  ;;  %v1559_v8 = vadd.f32 %v2062_v0, %v2060_v62 }
 0x131   : > { %v2084_v39 = vpop.f32.mrf.mxu0 }
 0x132   : > { %2170 = vst [vmem:[#allocation8_spill] sm:$0xff] %v2084_v39  ;;  %v1507_v39 = vadd.f32 %v1506_v16, %v1505_v13  ;;  %v1015_v25 = vadd.f32 %v1586_v26, %v918_v37  ;;  %v1568_v26 = vadd.f32 %v2078_v15, %v2076_v12  ;;  %v1562_v12 = vadd.f32 %v2068_v5, %v2066_v3 }
 0x133   : > { %v2086_v40 = vpop.f32.mrf.mxu0  ;;  %v1556_v3 = vadd.f32 %v2056_v59, %v2052_v56 }
 0x134   : > { %2171 = vst [vmem:[#allocation9_spill] sm:$0xff] %v2086_v40  ;;  %v1510_v40 = vadd.f32 %v1509_v20, %v1508_v18  ;;  %v899_v18 = vadd.f32 %v1507_v39, %v2035_v14  ;;  %v991_v15 = vadd.f32 %v1568_v26, %v894_v38  ;;  %v983_v5 = vadd.f32 %v1562_v12, %v886_v24 }
 0x135   : > { %v2088_v43 = vpop.f32.mrf.mxu0  ;;  %v975_v53 = vadd.f32 %v1556_v3, %v878_v2  ;;  %v2175_v63 = vld [vmem:[#allocation6_spill] sm:$0xff] }
 0x136   : > { %v902_v23 = vadd.f32 %v1510_v40, %v2035_v14  ;;  %v996_v17 = vadd.f32 %v1571_v52, %v899_v18 }
 0x137   : > { %v2090_v44 = vpop.f32.mrf.mxu0 }
 0x138   : > { %v999_v9 = vadd.f32 %v1574_v33, %v902_v23  ;;  %v1133_v33 = vld [vmem:[%s2162_s3 + $0x10] sm:$0xff] }
 0x139   : > { %v2092_v46 = vpop.f32.mrf.mxu0  ;;  %v2173_v54 = vld [vmem:[#allocation8_spill] sm:$0xff] }
 0x13a   : > { %v1080_v62 = vadd.f32 %v2092_v46, %v983_v5  ;;  %v2172_v46 = vld [vmem:[#allocation5_spill] sm:$0xff] }
 0x13b   : > { %v2094_v47 = vpop.f32.mrf.mxu0  ;;  %v2177_v29 = vld [vmem:[#allocation9_spill] sm:$0xff] }
 0x13c   : > { %v1122_v55 = vmax.f32 %v1080_v62, 0.0  ;;  %v1072_v56 = vadd.f32 %v2094_v47, %v975_v53  ;;  %v1056_v30 = vadd.f32 %v2177_v29, %v2176_v6 }
 0x13d   : > { %v1637_v49 = vpop.f32.mrf.mxu0 }
 0x13e   : > { %v1120_v60 = vmax.f32 %v1072_v56, 0.0  ;;  %v1116_v22 = vmax.f32 %v1056_v30, 0.0 }
 0x13f   : > { %v2096_v51 = vpop.f32.mrf.mxu0 }
 0x141   : > { %v1638_v57 = vpop.f32.mrf.mxu0 }
 0x142   : > { %v1096_v19 = vadd.f32 %v1638_v57, %v999_v9  ;;  %v1064_v57 = vadd.f32 %v2173_v54, %v2172_v46 }
 0x143   : > { %v1087_v1 = vpop.f32.mrf.mxu0 }
 0x144   : > { %v1126_v36 = vmax.f32 %v1096_v19, 0.0  ;;  %v1088_v37 = vadd.f32 %v1087_v1, %v991_v15  ;;  %v1118_v47 = vmax.f32 %v1064_v57, 0.0 }
 0x145   : > { %v1641_v34 = vpop.f32.mrf.mxu0 }
 0x146   : > { %v1109_v41 = vadd.f32 %v1641_v34, %v1012_v32  ;;  %v891_v34 = vadd.f32 %v2070_v7, %v2035_v14  ;;  %v883_v7 = vadd.f32 %v2058_v61, %v2035_v14  ;;  %v1124_v0 = vmax.f32 %v1088_v37, 0.0  ;;  %v2179_v32 = vld [vmem:[#allocation7_spill] sm:$0xff] }
 0x147   : > { %v1100_v50 = vpop.f32.mrf.mxu0 }
 0x148   : > { %v1129_v11 = vmax.f32 %v1109_v41, 0.0  ;;  %v1101_v28 = vadd.f32 %v1100_v50, %v1004_v35  ;;  %v1093_v50 = vadd.f32 %v1637_v49, %v996_v17  ;;  %v988_v10 = vadd.f32 %v1565_v42, %v891_v34  ;;  %v1134_v41 = vld [vmem:[%s2162_s3 + $0x18] sm:$0xff] }
 0x149   : > { %v1642_v27 = vpop.f32.mrf.mxu0  ;;  %v980_v61 = vadd.f32 %v1559_v8, %v883_v7 }
 0x14a   : > { %v1112_v45 = vadd.f32 %v1642_v27, %v1015_v25  ;;  %v1127_v31 = vmax.f32 %v1101_v28, 0.0  ;;  %v1125_v39 = vmax.f32 %v1093_v50, 0.0  ;;  %v1085_v40 = vadd.f32 %v2096_v51, %v988_v10  ;;  %v1132_v27 = vld [vmem:[%s2162_s3 + $0x8] sm:$0xff] }
 0x14b   : > { %v1103_v20 = vpop.f32.mrf.mxu0  ;;  %v1077_v49 = vadd.f32 %v2088_v43, %v980_v61  ;;  %v1069_v51 = vadd.f32 %v2090_v44, %v2054_v58  ;;  %v2174_v43 = vld [vmem:[#allocation4_spill] sm:$0xff]  ;;  %v2178_v44 = vld [vmem:[#allocation2_spill] sm:$0xff] }
 0x14c   : > { %v1130_v13 = vmax.f32 %v1112_v45, 0.0  ;;  %v1104_v16 = vadd.f32 %v1103_v20, %v1007_v48  ;;  %v1123_v14 = vmax.f32 %v1085_v40, 0.0  ;;  %v1061_v1 = vadd.f32 %v2175_v63, %v2174_v43 }
 0x14d   : > { %v1121_v59 = vmax.f32 %v1077_v49, 0.0  ;;  %v1119_v4 = vmax.f32 %v1069_v51, 0.0  ;;  %v1053_v25 = vadd.f32 %v2179_v32, %v2178_v44 }
 0x14e   : > { %1643 = vmatprep.subr.mxu1 %v1130_v13  ;;  %v1128_v21 = vmax.f32 %v1104_v16, 0.0  ;;  %v1117_v58 = vmax.f32 %v1061_v1, 0.0 }
 0x14f   : > { %1644 = vmatpush3.msra.mxu1 %v1130_v13  ;;  %v1115_v23 = vmax.f32 %v1053_v25, 0.0 }
 0x150   : > { %1645 = vmatprep.subr.mxu1 %v1129_v11 }
 0x151   : > { %1646 = vmatpush3.msra.mxu1 %v1129_v11 }
 0x152   : > { %1647 = vmatprep.subr.mxu1 %v1128_v21 }
 0x153   : > { %1648 = vmatpush3.msra.mxu1 %v1128_v21 }
 0x154   : > { %1649 = vmatprep.subr.mxu1 %v1127_v31 }
 0x155   : > { %1650 = vmatpush3.msra.mxu1 %v1127_v31 }
 0x156   : > { %1651 = vmatprep.subr.mxu1 %v1126_v36 }
 0x157   : > { %1652 = vmatpush3.msra.mxu1 %v1126_v36 }
 0x158   : > { %1653 = vmatprep.subr.mxu1 %v1125_v39 }
 0x159   : > { %1654 = vmatpush3.msra.mxu1 %v1125_v39 }
 0x15a   : > { %1655 = vmatprep.subr.mxu1 %v1124_v0 }
 0x15b   : > { %1656 = vmatpush3.msra.mxu1 %v1124_v0 }
 0x15c   : > { %1657 = vmatprep.subr.mxu1 %v1123_v14 }
 0x15d   : > { %1658 = vmatpush3.msra.mxu1 %v1123_v14 }
 0x15e   : > { %1659 = vmatprep.subr.mxu1 %v1122_v55 }
 0x15f   : > { %1660 = vmatpush3.msra.mxu1 %v1122_v55 }
 0x160   : > { %1661 = vmatprep.subr.mxu1 %v1121_v59 }
 0x161   : > { %1662 = vmatpush3.msra.mxu1 %v1121_v59 }
 0x162   : > { %1663 = vmatprep.subr.mxu1 %v1120_v60 }
 0x163   : > { %1664 = vmatpush3.msra.mxu1 %v1120_v60 }
 0x164   : > { %1665 = vmatprep.subr.mxu1 %v1119_v4 }
 0x165   : > { %1666 = vmatpush3.msra.mxu1 %v1119_v4 }
 0x166   : > { %1667 = vmatprep.subr.mxu1 %v1118_v47 }
 0x167   : > { %1668 = vmatpush3.msra.mxu1 %v1118_v47 }
 0x168   : > { %1669 = vmatprep.subr.mxu1 %v1117_v58 }
 0x169   : > { %1670 = vmatpush3.msra.mxu1 %v1117_v58 }
 0x16a   : > { %1671 = vmatprep.subr.mxu1 %v1116_v22 }
 0x16b   : > { %1672 = vmatpush3.msra.mxu1 %v1116_v22 }
 0x16c   : > { %1673 = vmatprep.subr.mxu1 %v1115_v23 }
 0x16d   : > { %1674 = vmatpush3.msra.mxu1 %v1115_v23 }
 0x16e   : > { %1676 = vmatmul.mubr.f32.vlgmr.msra.gmra.mxu1 %v1132_v27 }
 0x16f   : > { %1678 = vmatprep.mubr.f32.mxu1 %v1133_v33 }
 0x172   : > { %1679 = vmatmul.mubr.f32.gmra.mxu1 %v1134_v41 }
 0x22e   : > { %v1677_v45 = vpop.f32.mrf.mxu1 }
 0x230   : > { %v1201_v48 = vpop.f32.mrf.mxu1 }
 0x231   : > { %v1451_v18 = vpack.c.bf16 %v1677_v45, %v1201_v48 }
 0x232   : > { %v1680_v20 = vpop.f32.mrf.mxu1 }
 0x233   : > { %1452 = vst [vmem:[%s253_s22] sm:$0xff] %v1451_v18  }
 0x234   : > { %v1211_v52 = vpop.f32.mrf.mxu1 }
 0x235   : > { %v1456_v35 = vpack.c.bf16 %v1680_v20, %v1211_v52 }
 0x237   : > { %1458 = vst [vmem:[%s253_s22 + $0x8] sm:$0xff] %v1456_v35  }
 0x238 PF: > { %s14_s17 = sadd.s32 1, %s1820_s17   ;;  %s2180_s15 = smov %s1816_s16 }
 0x239   : > { %p11_p6 = scmp.ge.s32.totalorder %s14_s17, 6   ;;  %s2181_s16 = smov %s2183_s18 }
 0x23b   :  { %13 = sbr.rel (!%p11_p6) target bundleno = 2 (0x2), region = 72 }

// kernel: cnn_branch_forward.6
= control target key start
LH: loop header
LB: loop body
LE: loop exit
PB: predicated region body
PF: predicated region fallthrough
CT: control target
= control target key end

     0   :  { %s2901_s15 = smov 0   ;;  %s2903_s16 = smov 0   ;;  %s3519_s0 = inlined_call_operand.vmem [shape: bf16[128,1152], index: 0, kind: input, shape index: {}]   ;;  %s3520_s1 = inlined_call_operand.vmem [shape: bf16[1152,256], index: 1, kind: input, shape index: {}]   ;;  %s3521_s2 = inlined_call_operand.vmem [shape: f32[1,256], index: 2, kind: input, shape index: {}]   ;;  %s3522_s3 = inlined_call_operand.vmem [shape: f32[16,64], index: 3, kind: input, shape index: {}]   ;;  %s3523_s4 = inlined_call_operand.vmem [shape: bf16[32,256], index: 4, kind: output, shape index: {}]  }
   0x1   :  { %s2905_s17 = smov 0   ;;  %s2907_s18 = smov 0  }
   0x2   :  { %s2909_s19 = smov 0   ;;  %s2911_s20 = smov 0  }
   0x3   :  { %s2913_s21 = smov 0   ;;  %s2915_s22 = smov 0  }
   0x4   :  { %s2917_s23 = smov 0  }
   0x5 LB: > { %s2244_s24 = sadd.s32 4294967295, %s2874_s23   ;;  %s23_s25 = sadd.s32 1, %s2866_s21  ;;  %s2874_s23 = sphi %s2917_s23, %s14_s23   ;;  %s2870_s22 = sphi %s2915_s22, %s3544_s22   ;;  %s2866_s21 = sphi %s2913_s21, %s3543_s21   ;;  %s2862_s20 = sphi %s2911_s20, %s3542_s20   ;;  %s2858_s19 = sphi %s2909_s19, %s3541_s19   ;;  %s2854_s18 = sphi %s2907_s18, %s3540_s18   ;;  %s2850_s17 = sphi %s2905_s17, %s3539_s17   ;;  %s2846_s16 = sphi %s2903_s16, %s3538_s16   ;;  %s2842_s15 = sphi %s2901_s15, %s3537_s15  }
   0x6   : > { %p24_p0 = scmp.ge.s32.totalorder %s23_s25, 2  ;;  %s26_s26 = sadd.s32 1, %s2870_s22 }
   0x7   : > { %s59_s27 = sadd.s32 1, %s2854_s18  ;;  %p66_p1 = scmp.ne.s32.totalorder %s2854_s18, %s2850_s17 }
   0x8   : > { %s3546_s25 = smov (%p24_p0, %s23_s25), 0  ;;  %s3548_s26 = smov (!%p24_p0, %s26_s26), %s2870_s22 }
   0x9   : > { %s56_s28 = ssub.s32 %s2866_s21, %s3546_s25  ;;  %p67_p2 = scmp.eq.s32.totalorder %s2874_s23, 0 }
   0xa   : > { %p28_p3 = scmp.ge.s32.totalorder %s3548_s26, 2  ;;  %p57_p4 = scmp.eq.s32.totalorder %s56_s28, 0 }
   0xb   : > { %p68_p5 = por %p67_p2, %p66_p1  ;;  %s134_s29 = sadd.s32 1, %s2846_s16 }
   0xc   : > { %s3550_s26 = smov (%p28_p3, %s3548_s26), 0  ;;  %p144_p6 = scmp.ne.s32.totalorder %s2846_s16, %s2842_s15 }
   0xd   : > { %s2962_s30 = scalar_select %p57_p4, %s2854_s18, %s59_s27  }
   0xe   : > { %s129_s5 = ssub.s32 %s2870_s22, %s3550_s26  ;;  %p145_p7 = scmp.eq.s32.totalorder %s2244_s24, 3 }
   0xf   : > { %s131_s6 = sor.u32 %s129_s5, %s56_s28  ;;  %p2247_p10 = scmp.ge.s32.totalorder %s2874_s23, 4 }
  0x10   : > { %p132_p8 = scmp.eq.s32.totalorder %s131_s6, 0  ;;  %p2968_p9 = por %p145_p7, %p144_p6 }
  0x11   : > { %170 = sbr.rel (%p2247_p10) target bundleno = 122 (0x7a), region = 20 }
  0x12   : > { %s2973_s8 = scalar_select %p132_p8, %s2846_s16, %s134_s29  }
  0x16   : > { %183 = sbr.rel (!%p68_p5) target bundleno = 122 (0x7a), region = 28  ;;  %s185_s9 = sand.u32 (%p68_p5), 1, %s2854_s18  }
  0x17   : > { %s2248_s10 = sshll.u32 (%p68_p5), %s2866_s21, 2  ;;  %s2605_s11 = smul.u32 (%p68_p5), 576, %s185_s9 }
  0x18   : > { %s2981_s14 = scalar_lea.vmem (%p68_p5), %s3520_s1, %s2248_s10 }
  0x19   : > { %v206_v0 = vld [vmem:[%s2981_s14] sm:$0xf] (%p68_p5)  ;;  %v208_v1 = vld [vmem:[%s2981_s14 + $0x8] sm:$0xf] (%p68_p5)  ;;  %v210_v2 = vld [vmem:[%s2981_s14 + $0x10] sm:$0xf] (%p68_p5) }
  0x1a   : > { %v212_v3 = vld [vmem:[%s2981_s14 + $0x18] sm:$0xf] (%p68_p5)  ;;  %v214_v4 = vld [vmem:[%s2981_s14 + $0x20] sm:$0xf] (%p68_p5)  ;;  %s2988_s24 = scalar_lea.vmem (%p68_p5), [#allocation2], %s2605_s11 }
  0x1b   : > { %207 = vst [vmem:[%s2988_s24] sm:$0xf] %v206_v0  ;;  %209 = vst [vmem:[%s2988_s24 + $0x4] sm:$0xf] %v208_v1  ;;  %v216_v5 = vld [vmem:[%s2981_s14 + $0x28] sm:$0xf] }
  0x1c   : > { %211 = vst [vmem:[%s2988_s24 + $0x8] sm:$0xf] %v210_v2  ;;  %213 = vst [vmem:[%s2988_s24 + $0xc] sm:$0xf] %v212_v3  ;;  %v218_v6 = vld [vmem:[%s2981_s14 + $0x30] sm:$0xf] }
  0x1d   : > { %215 = vst [vmem:[%s2988_s24 + $0x10] sm:$0xf] %v214_v4  ;;  %v220_v7 = vld [vmem:[%s2981_s14 + $0x38] sm:$0xf]  ;;  %217 = vst [vmem:[%s2988_s24 + $0x14] sm:$0xf] %v216_v5 }
  0x1e   : > { %219 = vst [vmem:[%s2988_s24 + $0x18] sm:$0xf] %v218_v6  ;;  %221 = vst [vmem:[%s2988_s24 + $0x1c] sm:$0xf] %v220_v7  ;;  %v222_v8 = vld [vmem:[%s2981_s14 + $0x40] sm:$0xf] }
  0x1f   : > { %v224_v9 = vld [vmem:[%s2981_s14 + $0x48] sm:$0xf]  ;;  %v226_v10 = vld [vmem:[%s2981_s14 + $0x50] sm:$0xf]  ;;  %223 = vst [vmem:[%s2988_s24 + $0x20] sm:$0xf] %v222_v8 }
  0x20   : > { %225 = vst [vmem:[%s2988_s24 + $0x24] sm:$0xf] %v224_v9  ;;  %227 = vst [vmem:[%s2988_s24 + $0x28] sm:$0xf] %v226_v10  ;;  %v228_v11 = vld [vmem:[%s2981_s14 + $0x58] sm:$0xf] }
  0x21   : > { %v230_v12 = vld [vmem:[%s2981_s14 + $0x60] sm:$0xf]  ;;  %v232_v13 = vld [vmem:[%s2981_s14 + $0x68] sm:$0xf]  ;;  %229 = vst [vmem:[%s2988_s24 + $0x2c] sm:$0xf] %v228_v11 }
  0x22   : > { %231 = vst [vmem:[%s2988_s24 + $0x30] sm:$0xf] %v230_v12  ;;  %233 = vst [vmem:[%s2988_s24 + $0x34] sm:$0xf] %v232_v13  ;;  %v234_v14 = vld [vmem:[%s2981_s14 + $0x70] sm:$0xf] }
  0x23   : > { %v236_v15 = vld [vmem:[%s2981_s14 + $0x78] sm:$0xf]  ;;  %v238_v16 = vld [vmem:[%s2981_s14 + $0x80] sm:$0xf]  ;;  %235 = vst [vmem:[%s2988_s24 + $0x38] sm:$0xf] %v234_v14 }
  0x24   : > { %237 = vst [vmem:[%s2988_s24 + $0x3c] sm:$0xf] %v236_v15  ;;  %239 = vst [vmem:[%s2988_s24 + $0x40] sm:$0xf] %v238_v16  ;;  %v240_v17 = vld [vmem:[%s2981_s14 + $0x88] sm:$0xf] }
  0x25   : > { %v242_v18 = vld [vmem:[%s2981_s14 + $0x90] sm:$0xf]  ;;  %v244_v19 = vld [vmem:[%s2981_s14 + $0x98] sm:$0xf]  ;;  %241 = vst [vmem:[%s2988_s24 + $0x44] sm:$0xf] %v240_v17 }
  0x26   : > { %243 = vst [vmem:[%s2988_s24 + $0x48] sm:$0xf] %v242_v18  ;;  %245 = vst [vmem:[%s2988_s24 + $0x4c] sm:$0xf] %v244_v19  ;;  %v246_v20 = vld [vmem:[%s2981_s14 + $0xa0] sm:$0xf] }
  0x27   : > { %v248_v21 = vld [vmem:[%s2981_s14 + $0xa8] sm:$0xf]  ;;  %v250_v22 = vld [vmem:[%s2981_s14 + $0xb0] sm:$0xf]  ;;  %247 = vst [vmem:[%s2988_s24 + $0x50] sm:$0xf] %v246_v20 }
  0x28   : > { %249 = vst [vmem:[%s2988_s24 + $0x54] sm:$0xf] %v248_v21  ;;  %251 = vst [vmem:[%s2988_s24 + $0x58] sm:$0xf] %v250_v22  ;;  %v252_v23 = vld [vmem:[%s2981_s14 + $0xb8] sm:$0xf] }
  0x29   : > { %v254_v24 = vld [vmem:[%s2981_s14 + $0xc0] sm:$0xf]  ;;  %v256_v25 = vld [vmem:[%s2981_s14 + $0xc8] sm:$0xf]  ;;  %253 = vst [vmem:[%s2988_s24 + $0x5c] sm:$0xf] %v252_v23 }
  0x2a   : > { %255 = vst [vmem:[%s2988_s24 + $0x60] sm:$0xf] %v254_v24  ;;  %257 = vst [vmem:[%s2988_s24 + $0x64] sm:$0xf] %v256_v25  ;;  %v258_v26 = vld [vmem:[%s2981_s14 + $0xd0] sm:$0xf] }
  0x2b   : > { %v260_v27 = vld [vmem:[%s2981_s14 + $0xd8] sm:$0xf]  ;;  %v262_v28 = vld [vmem:[%s2981_s14 + $0xe0] sm:$0xf]  ;;  %259 = vst [vmem:[%s2988_s24 + $0x68] sm:$0xf] %v258_v26 }
  0x2c   : > { %261 = vst [vmem:[%s2988_s24 + $0x6c] sm:$0xf] %v260_v27  ;;  %263 = vst [vmem:[%s2988_s24 + $0x70] sm:$0xf] %v262_v28  ;;  %v264_v29 = vld [vmem:[%s2981_s14 + $0xe8] sm:$0xf] }
  0x2d   : > { %v266_v30 = vld [vmem:[%s2981_s14 + $0xf0] sm:$0xf]  ;;  %v268_v31 = vld [vmem:[%s2981_s14 + $0xf8] sm:$0xf]  ;;  %265 = vst [vmem:[%s2988_s24 + $0x74] sm:$0xf] %v264_v29 }
  0x2e   : > { %267 = vst [vmem:[%s2988_s24 + $0x78] sm:$0xf] %v266_v30  ;;  %269 = vst [vmem:[%s2988_s24 + $0x7c] sm:$0xf] %v268_v31  ;;  %v270_v32 = vld [vmem:[%s2981_s14 + $0x100] sm:$0xf] }
  0x2f   : > { %v272_v33 = vld [vmem:[%s2981_s14 + $0x108] sm:$0xf]  ;;  %v274_v34 = vld [vmem:[%s2981_s14 + $0x110] sm:$0xf]  ;;  %271 = vst [vmem:[%s2988_s24 + $0x80] sm:$0xf] %v270_v32 }
  0x30   : > { %273 = vst [vmem:[%s2988_s24 + $0x84] sm:$0xf] %v272_v33  ;;  %275 = vst [vmem:[%s2988_s24 + $0x88] sm:$0xf] %v274_v34  ;;  %v276_v35 = vld [vmem:[%s2981_s14 + $0x118] sm:$0xf] }
  0x31   : > { %v278_v36 = vld [vmem:[%s2981_s14 + $0x120] sm:$0xf]  ;;  %v280_v37 = vld [vmem:[%s2981_s14 + $0x128] sm:$0xf]  ;;  %277 = vst [vmem:[%s2988_s24 + $0x8c] sm:$0xf] %v276_v35 }
  0x32   : > { %279 = vst [vmem:[%s2988_s24 + $0x90] sm:$0xf] %v278_v36  ;;  %281 = vst [vmem:[%s2988_s24 + $0x94] sm:$0xf] %v280_v37  ;;  %v282_v38 = vld [vmem:[%s2981_s14 + $0x130] sm:$0xf] }
  0x33   : > { %v284_v39 = vld [vmem:[%s2981_s14 + $0x138] sm:$0xf]  ;;  %v286_v40 = vld [vmem:[%s2981_s14 + $0x140] sm:$0xf]  ;;  %283 = vst [vmem:[%s2988_s24 + $0x98] sm:$0xf] %v282_v38 }
  0x34   : > { %285 = vst [vmem:[%s2988_s24 + $0x9c] sm:$0xf] %v284_v39  ;;  %287 = vst [vmem:[%s2988_s24 + $0xa0] sm:$0xf] %v286_v40  ;;  %v288_v41 = vld [vmem:[%s2981_s14 + $0x148] sm:$0xf] }
  0x35   : > { %v290_v42 = vld [vmem:[%s2981_s14 + $0x150] sm:$0xf]  ;;  %v292_v43 = vld [vmem:[%s2981_s14 + $0x158] sm:$0xf]  ;;  %289 = vst [vmem:[%s2988_s24 + $0xa4] sm:$0xf] %v288_v41 }
  0x36   : > { %291 = vst [vmem:[%s2988_s24 + $0xa8] sm:$0xf] %v290_v42  ;;  %293 = vst [vmem:[%s2988_s24 + $0xac] sm:$0xf] %v292_v43  ;;  %v294_v44 = vld [vmem:[%s2981_s14 + $0x160] sm:$0xf] }
  0x37   : > { %v296_v45 = vld [vmem:[%s2981_s14 + $0x168] sm:$0xf]  ;;  %v298_v46 = vld [vmem:[%s2981_s14 + $0x170] sm:$0xf]  ;;  %295 = vst [vmem:[%s2988_s24 + $0xb0] sm:$0xf] %v294_v44 }
  0x38   : > { %297 = vst [vmem:[%s2988_s24 + $0xb4] sm:$0xf] %v296_v45  ;;  %299 = vst [vmem:[%s2988_s24 + $0xb8] sm:$0xf] %v298_v46  ;;  %v300_v47 = vld [vmem:[%s2981_s14 + $0x178] sm:$0xf] }
  0x39   : > { %v302_v48 = vld [vmem:[%s2981_s14 + $0x180] sm:$0xf]  ;;  %v304_v49 = vld [vmem:[%s2981_s14 + $0x188] sm:$0xf]  ;;  %301 = vst [vmem:[%s2988_s24 + $0xbc] sm:$0xf] %v300_v47 }
  0x3a   : > { %303 = vst [vmem:[%s2988_s24 + $0xc0] sm:$0xf] %v302_v48  ;;  %305 = vst [vmem:[%s2988_s24 + $0xc4] sm:$0xf] %v304_v49  ;;  %v306_v50 = vld [vmem:[%s2981_s14 + $0x190] sm:$0xf] }
  0x3b   : > { %v308_v51 = vld [vmem:[%s2981_s14 + $0x198] sm:$0xf]  ;;  %v310_v52 = vld [vmem:[%s2981_s14 + $0x1a0] sm:$0xf]  ;;  %307 = vst [vmem:[%s2988_s24 + $0xc8] sm:$0xf] %v306_v50 }
  0x3c   : > { %309 = vst [vmem:[%s2988_s24 + $0xcc] sm:$0xf] %v308_v51  ;;  %311 = vst [vmem:[%s2988_s24 + $0xd0] sm:$0xf] %v310_v52  ;;  %v312_v53 = vld [vmem:[%s2981_s14 + $0x1a8] sm:$0xf] }
  0x3d   : > { %v314_v54 = vld [vmem:[%s2981_s14 + $0x1b0] sm:$0xf]  ;;  %v316_v55 = vld [vmem:[%s2981_s14 + $0x1b8] sm:$0xf]  ;;  %313 = vst [vmem:[%s2988_s24 + $0xd4] sm:$0xf] %v312_v53 }
  0x3e   : > { %315 = vst [vmem:[%s2988_s24 + $0xd8] sm:$0xf] %v314_v54  ;;  %317 = vst [vmem:[%s2988_s24 + $0xdc] sm:$0xf] %v316_v55  ;;  %v318_v56 = vld [vmem:[%s2981_s14 + $0x1c0] sm:$0xf] }
  0x3f   : > { %v320_v57 = vld [vmem:[%s2981_s14 + $0x1c8] sm:$0xf]  ;;  %v322_v58 = vld [vmem:[%s2981_s14 + $0x1d0] sm:$0xf]  ;;  %319 = vst [vmem:[%s2988_s24 + $0xe0] sm:$0xf] %v318_v56 }
  0x40   : > { %321 = vst [vmem:[%s2988_s24 + $0xe4] sm:$0xf] %v320_v57  ;;  %323 = vst [vmem:[%s2988_s24 + $0xe8] sm:$0xf] %v322_v58  ;;  %v324_v59 = vld [vmem:[%s2981_s14 + $0x1d8] sm:$0xf] }
  0x41   : > { %v326_v60 = vld [vmem:[%s2981_s14 + $0x1e0] sm:$0xf]  ;;  %v328_v61 = vld [vmem:[%s2981_s14 + $0x1e8] sm:$0xf]  ;;  %325 = vst [vmem:[%s2988_s24 + $0xec] sm:$0xf] %v324_v59 }
  0x42   : > { %327 = vst [vmem:[%s2988_s24 + $0xf0] sm:$0xf] %v326_v60  ;;  %329 = vst [vmem:[%s2988_s24 + $0xf4] sm:$0xf] %v328_v61  ;;  %v330_v62 = vld [vmem:[%s2981_s14 + $0x1f0] sm:$0xf] }
  0x43   : > { %v332_v63 = vld [vmem:[%s2981_s14 + $0x1f8] sm:$0xf]  ;;  %v334_v0 = vld [vmem:[%s2981_s14 + $0x200] sm:$0xf]  ;;  %331 = vst [vmem:[%s2988_s24 + $0xf8] sm:$0xf] %v330_v62 }
  0x44   : > { %333 = vst [vmem:[%s2988_s24 + $0xfc] sm:$0xf] %v332_v63  ;;  %335 = vst [vmem:[%s2988_s24 + $0x100] sm:$0xf] %v334_v0  ;;  %v336_v1 = vld [vmem:[%s2981_s14 + $0x208] sm:$0xf] }
  0x45   : > { %v338_v2 = vld [vmem:[%s2981_s14 + $0x210] sm:$0xf]  ;;  %v340_v3 = vld [vmem:[%s2981_s14 + $0x218] sm:$0xf]  ;;  %337 = vst [vmem:[%s2988_s24 + $0x104] sm:$0xf] %v336_v1 }
  0x46   : > { %339 = vst [vmem:[%s2988_s24 + $0x108] sm:$0xf] %v338_v2  ;;  %341 = vst [vmem:[%s2988_s24 + $0x10c] sm:$0xf] %v340_v3  ;;  %v342_v4 = vld [vmem:[%s2981_s14 + $0x220] sm:$0xf] }
  0x47   : > { %v344_v5 = vld [vmem:[%s2981_s14 + $0x228] sm:$0xf]  ;;  %v346_v6 = vld [vmem:[%s2981_s14 + $0x230] sm:$0xf]  ;;  %343 = vst [vmem:[%s2988_s24 + $0x110] sm:$0xf] %v342_v4 }
  0x48   : > { %345 = vst [vmem:[%s2988_s24 + $0x114] sm:$0xf] %v344_v5  ;;  %347 = vst [vmem:[%s2988_s24 + $0x118] sm:$0xf] %v346_v6  ;;  %v348_v7 = vld [vmem:[%s2981_s14 + $0x238] sm:$0xf] }
  0x49   : > { %v350_v8 = vld [vmem:[%s2981_s14 + $0x240] sm:$0xf]  ;;  %v352_v9 = vld [vmem:[%s2981_s14 + $0x248] sm:$0xf]  ;;  %349 = vst [vmem:[%s2988_s24 + $0x11c] sm:$0xf] %v348_v7 }
  0x4a   : > { %351 = vst [vmem:[%s2988_s24 + $0x120] sm:$0xf] %v350_v8  ;;  %353 = vst [vmem:[%s2988_s24 + $0x124] sm:$0xf] %v352_v9  ;;  %v354_v10 = vld [vmem:[%s2981_s14 + $0x250] sm:$0xf] }
  0x4b   : > { %v356_v11 = vld [vmem:[%s2981_s14 + $0x258] sm:$0xf]  ;;  %v358_v12 = vld [vmem:[%s2981_s14 + $0x260] sm:$0xf]  ;;  %355 = vst [vmem:[%s2988_s24 + $0x128] sm:$0xf] %v354_v10 }
  0x4c   : > { %357 = vst [vmem:[%s2988_s24 + $0x12c] sm:$0xf] %v356_v11  ;;  %359 = vst [vmem:[%s2988_s24 + $0x130] sm:$0xf] %v358_v12  ;;  %v360_v13 = vld [vmem:[%s2981_s14 + $0x268] sm:$0xf] }
  0x4d   : > { %v362_v14 = vld [vmem:[%s2981_s14 + $0x270] sm:$0xf]  ;;  %v364_v15 = vld [vmem:[%s2981_s14 + $0x278] sm:$0xf]  ;;  %361 = vst [vmem:[%s2988_s24 + $0x134] sm:$0xf] %v360_v13 }
  0x4e   : > { %363 = vst [vmem:[%s2988_s24 + $0x138] sm:$0xf] %v362_v14  ;;  %365 = vst [vmem:[%s2988_s24 + $0x13c] sm:$0xf] %v364_v15  ;;  %v366_v16 = vld [vmem:[%s2981_s14 + $0x280] sm:$0xf] }
  0x4f   : > { %v368_v17 = vld [vmem:[%s2981_s14 + $0x288] sm:$0xf]  ;;  %v370_v18 = vld [vmem:[%s2981_s14 + $0x290] sm:$0xf]  ;;  %367 = vst [vmem:[%s2988_s24 + $0x140] sm:$0xf] %v366_v16 }
  0x50   : > { %369 = vst [vmem:[%s2988_s24 + $0x144] sm:$0xf] %v368_v17  ;;  %371 = vst [vmem:[%s2988_s24 + $0x148] sm:$0xf] %v370_v18  ;;  %v372_v19 = vld [vmem:[%s2981_s14 + $0x298] sm:$0xf] }
  0x51   : > { %v374_v20 = vld [vmem:[%s2981_s14 + $0x2a0] sm:$0xf]  ;;  %v376_v21 = vld [vmem:[%s2981_s14 + $0x2a8] sm:$0xf]  ;;  %373 = vst [vmem:[%s2988_s24 + $0x14c] sm:$0xf] %v372_v19 }
  0x52   : > { %375 = vst [vmem:[%s2988_s24 + $0x150] sm:$0xf] %v374_v20  ;;  %377 = vst [vmem:[%s2988_s24 + $0x154] sm:$0xf] %v376_v21  ;;  %v378_v22 = vld [vmem:[%s2981_s14 + $0x2b0] sm:$0xf] }
  0x53   : > { %v380_v23 = vld [vmem:[%s2981_s14 + $0x2b8] sm:$0xf]  ;;  %v382_v24 = vld [vmem:[%s2981_s14 + $0x2c0] sm:$0xf]  ;;  %379 = vst [vmem:[%s2988_s24 + $0x158] sm:$0xf] %v378_v22 }
  0x54   : > { %381 = vst [vmem:[%s2988_s24 + $0x15c] sm:$0xf] %v380_v23  ;;  %383 = vst [vmem:[%s2988_s24 + $0x160] sm:$0xf] %v382_v24  ;;  %v384_v25 = vld [vmem:[%s2981_s14 + $0x2c8] sm:$0xf] }
  0x55   : > { %v386_v26 = vld [vmem:[%s2981_s14 + $0x2d0] sm:$0xf]  ;;  %v388_v27 = vld [vmem:[%s2981_s14 + $0x2d8] sm:$0xf]  ;;  %385 = vst [vmem:[%s2988_s24 + $0x164] sm:$0xf] %v384_v25 }
  0x56   : > { %387 = vst [vmem:[%s2988_s24 + $0x168] sm:$0xf] %v386_v26  ;;  %389 = vst [vmem:[%s2988_s24 + $0x16c] sm:$0xf] %v388_v27  ;;  %v390_v28 = vld [vmem:[%s2981_s14 + $0x2e0] sm:$0xf] }
  0x57   : > { %v392_v29 = vld [vmem:[%s2981_s14 + $0x2e8] sm:$0xf]  ;;  %v394_v30 = vld [vmem:[%s2981_s14 + $0x2f0] sm:$0xf]  ;;  %391 = vst [vmem:[%s2988_s24 + $0x170] sm:$0xf] %v390_v28 }
  0x58   : > { %393 = vst [vmem:[%s2988_s24 + $0x174] sm:$0xf] %v392_v29  ;;  %395 = vst [vmem:[%s2988_s24 + $0x178] sm:$0xf] %v394_v30  ;;  %v396_v31 = vld [vmem:[%s2981_s14 + $0x2f8] sm:$0xf] }
  0x59   : > { %v398_v32 = vld [vmem:[%s2981_s14 + $0x300] sm:$0xf]  ;;  %v400_v33 = vld [vmem:[%s2981_s14 + $0x308] sm:$0xf]  ;;  %397 = vst [vmem:[%s2988_s24 + $0x17c] sm:$0xf] %v396_v31 }
  0x5a   : > { %399 = vst [vmem:[%s2988_s24 + $0x180] sm:$0xf] %v398_v32  ;;  %401 = vst [vmem:[%s2988_s24 + $0x184] sm:$0xf] %v400_v33  ;;  %v402_v34 = vld [vmem:[%s2981_s14 + $0x310] sm:$0xf] }
  0x5b   : > { %v404_v35 = vld [vmem:[%s2981_s14 + $0x318] sm:$0xf]  ;;  %v406_v36 = vld [vmem:[%s2981_s14 + $0x320] sm:$0xf]  ;;  %403 = vst [vmem:[%s2988_s24 + $0x188] sm:$0xf] %v402_v34 }
  0x5c   : > { %405 = vst [vmem:[%s2988_s24 + $0x18c] sm:$0xf] %v404_v35  ;;  %407 = vst [vmem:[%s2988_s24 + $0x190] sm:$0xf] %v406_v36  ;;  %v408_v37 = vld [vmem:[%s2981_s14 + $0x328] sm:$0xf] }
  0x5d   : > { %v410_v38 = vld [vmem:[%s2981_s14 + $0x330] sm:$0xf]  ;;  %v412_v39 = vld [vmem:[%s2981_s14 + $0x338] sm:$0xf]  ;;  %409 = vst [vmem:[%s2988_s24 + $0x194] sm:$0xf] %v408_v37 }
  0x5e   : > { %411 = vst [vmem:[%s2988_s24 + $0x198] sm:$0xf] %v410_v38  ;;  %413 = vst [vmem:[%s2988_s24 + $0x19c] sm:$0xf] %v412_v39  ;;  %v414_v40 = vld [vmem:[%s2981_s14 + $0x340] sm:$0xf] }
  0x5f   : > { %v416_v41 = vld [vmem:[%s2981_s14 + $0x348] sm:$0xf]  ;;  %v418_v42 = vld [vmem:[%s2981_s14 + $0x350] sm:$0xf]  ;;  %415 = vst [vmem:[%s2988_s24 + $0x1a0] sm:$0xf] %v414_v40 }
  0x60   : > { %417 = vst [vmem:[%s2988_s24 + $0x1a4] sm:$0xf] %v416_v41  ;;  %419 = vst [vmem:[%s2988_s24 + $0x1a8] sm:$0xf] %v418_v42  ;;  %v420_v43 = vld [vmem:[%s2981_s14 + $0x358] sm:$0xf] }
  0x61   : > { %v422_v44 = vld [vmem:[%s2981_s14 + $0x360] sm:$0xf]  ;;  %v424_v45 = vld [vmem:[%s2981_s14 + $0x368] sm:$0xf]  ;;  %421 = vst [vmem:[%s2988_s24 + $0x1ac] sm:$0xf] %v420_v43 }
  0x62   : > { %423 = vst [vmem:[%s2988_s24 + $0x1b0] sm:$0xf] %v422_v44  ;;  %425 = vst [vmem:[%s2988_s24 + $0x1b4] sm:$0xf] %v424_v45  ;;  %v426_v46 = vld [vmem:[%s2981_s14 + $0x370] sm:$0xf] }
  0x63   : > { %v428_v47 = vld [vmem:[%s2981_s14 + $0x378] sm:$0xf]  ;;  %v430_v48 = vld [vmem:[%s2981_s14 + $0x380] sm:$0xf]  ;;  %427 = vst [vmem:[%s2988_s24 + $0x1b8] sm:$0xf] %v426_v46 }
  0x64   : > { %429 = vst [vmem:[%s2988_s24 + $0x1bc] sm:$0xf] %v428_v47  ;;  %431 = vst [vmem:[%s2988_s24 + $0x1c0] sm:$0xf] %v430_v48  ;;  %v432_v49 = vld [vmem:[%s2981_s14 + $0x388] sm:$0xf] }
  0x65   : > { %v434_v50 = vld [vmem:[%s2981_s14 + $0x390] sm:$0xf]  ;;  %v436_v51 = vld [vmem:[%s2981_s14 + $0x398] sm:$0xf]  ;;  %433 = vst [vmem:[%s2988_s24 + $0x1c4] sm:$0xf] %v432_v49 }
  0x66   : > { %435 = vst [vmem:[%s2988_s24 + $0x1c8] sm:$0xf] %v434_v50  ;;  %437 = vst [vmem:[%s2988_s24 + $0x1cc] sm:$0xf] %v436_v51  ;;  %v438_v52 = vld [vmem:[%s2981_s14 + $0x3a0] sm:$0xf] }
  0x67   : > { %v440_v53 = vld [vmem:[%s2981_s14 + $0x3a8] sm:$0xf]  ;;  %v442_v54 = vld [vmem:[%s2981_s14 + $0x3b0] sm:$0xf]  ;;  %439 = vst [vmem:[%s2988_s24 + $0x1d0] sm:$0xf] %v438_v52 }
  0x68   : > { %441 = vst [vmem:[%s2988_s24 + $0x1d4] sm:$0xf] %v440_v53  ;;  %443 = vst [vmem:[%s2988_s24 + $0x1d8] sm:$0xf] %v442_v54  ;;  %v444_v55 = vld [vmem:[%s2981_s14 + $0x3b8] sm:$0xf] }
  0x69   : > { %v446_v56 = vld [vmem:[%s2981_s14 + $0x3c0] sm:$0xf]  ;;  %v448_v57 = vld [vmem:[%s2981_s14 + $0x3c8] sm:$0xf]  ;;  %445 = vst [vmem:[%s2988_s24 + $0x1dc] sm:$0xf] %v444_v55 }
  0x6a   : > { %447 = vst [vmem:[%s2988_s24 + $0x1e0] sm:$0xf] %v446_v56  ;;  %449 = vst [vmem:[%s2988_s24 + $0x1e4] sm:$0xf] %v448_v57  ;;  %v450_v58 = vld [vmem:[%s2981_s14 + $0x3d0] sm:$0xf] }
  0x6b   : > { %v452_v59 = vld [vmem:[%s2981_s14 + $0x3d8] sm:$0xf]  ;;  %v454_v60 = vld [vmem:[%s2981_s14 + $0x3e0] sm:$0xf]  ;;  %451 = vst [vmem:[%s2988_s24 + $0x1e8] sm:$0xf] %v450_v58 }
  0x6c   : > { %453 = vst [vmem:[%s2988_s24 + $0x1ec] sm:$0xf] %v452_v59  ;;  %455 = vst [vmem:[%s2988_s24 + $0x1f0] sm:$0xf] %v454_v60  ;;  %v456_v61 = vld [vmem:[%s2981_s14 + $0x3e8] sm:$0xf] }
  0x6d   : > { %v458_v62 = vld [vmem:[%s2981_s14 + $0x3f0] sm:$0xf]  ;;  %v460_v63 = vld [vmem:[%s2981_s14 + $0x3f8] sm:$0xf]  ;;  %457 = vst [vmem:[%s2988_s24 + $0x1f4] sm:$0xf] %v456_v61 }
  0x6e   : > { %459 = vst [vmem:[%s2988_s24 + $0x1f8] sm:$0xf] %v458_v62  ;;  %461 = vst [vmem:[%s2988_s24 + $0x1fc] sm:$0xf] %v460_v63  ;;  %v462_v0 = vld [vmem:[%s2981_s14 + $0x400] sm:$0xf] }
  0x6f   : > { %v464_v1 = vld [vmem:[%s2981_s14 + $0x408] sm:$0xf]  ;;  %v466_v2 = vld [vmem:[%s2981_s14 + $0x410] sm:$0xf]  ;;  %463 = vst [vmem:[%s2988_s24 + $0x200] sm:$0xf] %v462_v0 }
  0x70   : > { %465 = vst [vmem:[%s2988_s24 + $0x204] sm:$0xf] %v464_v1  ;;  %467 = vst [vmem:[%s2988_s24 + $0x208] sm:$0xf] %v466_v2  ;;  %v468_v3 = vld [vmem:[%s2981_s14 + $0x418] sm:$0xf] }
  0x71   : > { %v470_v4 = vld [vmem:[%s2981_s14 + $0x420] sm:$0xf]  ;;  %v472_v5 = vld [vmem:[%s2981_s14 + $0x428] sm:$0xf]  ;;  %469 = vst [vmem:[%s2988_s24 + $0x20c] sm:$0xf] %v468_v3 }
  0x72   : > { %471 = vst [vmem:[%s2988_s24 + $0x210] sm:$0xf] %v470_v4  ;;  %473 = vst [vmem:[%s2988_s24 + $0x214] sm:$0xf] %v472_v5  ;;  %v474_v6 = vld [vmem:[%s2981_s14 + $0x430] sm:$0xf] }
  0x73   : > { %v476_v7 = vld [vmem:[%s2981_s14 + $0x438] sm:$0xf]  ;;  %v478_v8 = vld [vmem:[%s2981_s14 + $0x440] sm:$0xf]  ;;  %475 = vst [vmem:[%s2988_s24 + $0x218] sm:$0xf] %v474_v6 }
  0x74   : > { %477 = vst [vmem:[%s2988_s24 + $0x21c] sm:$0xf] %v476_v7  ;;  %479 = vst [vmem:[%s2988_s24 + $0x220] sm:$0xf] %v478_v8  ;;  %v480_v9 = vld [vmem:[%s2981_s14 + $0x448] sm:$0xf] }
  0x75   : > { %v482_v10 = vld [vmem:[%s2981_s14 + $0x450] sm:$0xf]  ;;  %v484_v11 = vld [vmem:[%s2981_s14 + $0x458] sm:$0xf]  ;;  %481 = vst [vmem:[%s2988_s24 + $0x224] sm:$0xf] %v480_v9 }
  0x76   : > { %483 = vst [vmem:[%s2988_s24 + $0x228] sm:$0xf] %v482_v10  ;;  %485 = vst [vmem:[%s2988_s24 + $0x22c] sm:$0xf] %v484_v11  ;;  %v486_v12 = vld [vmem:[%s2981_s14 + $0x460] sm:$0xf] }
  0x77   : > { %v488_v13 = vld [vmem:[%s2981_s14 + $0x468] sm:$0xf]  ;;  %v490_v14 = vld [vmem:[%s2981_s14 + $0x470] sm:$0xf]  ;;  %487 = vst [vmem:[%s2988_s24 + $0x230] sm:$0xf] %v486_v12 }
  0x78   : > { %489 = vst [vmem:[%s2988_s24 + $0x234] sm:$0xf] %v488_v13  ;;  %491 = vst [vmem:[%s2988_s24 + $0x238] sm:$0xf] %v490_v14  ;;  %v492_v15 = vld [vmem:[%s2981_s14 + $0x478] sm:$0xf] }
  0x79   : > { %493 = vst [vmem:[%s2988_s24 + $0x23c] sm:$0xf] %v492_v15 }
  0x7a PF: > { %p2249_p11 = scmp.ge.s32.totalorder %s2874_s23, 1  ;;  %p810_p12 = scmp.lt.s32.totalorder %s2874_s23, 5 }
  0x7c   : > { %p811_p13 = pnand %p2249_p11, %p810_p12 }
  0x7e   : > { %814 = sbr.rel (%p811_p13) target bundleno = 663 (0x297), region = 73 }
  0x83   : > { %s817_s27 = sand.u32 1, %s2850_s17   ;;  %s2251_s17 = sshll.u32 %s2862_s20, 3  ;;  %vm2004_vm0 = vcmask 523264  }
  0x84   : > { %s2606_s28 = smul.u32 576, %s817_s27  ;;  %p851_p0 = scmp.lt.s32.totalorder %s2251_s17, 15 }
  0x85   : > { %p857_p1 = scmp.lt.s32.totalorder %s2858_s19, 1  ;;  %s2374_s9 = sshll.u32 (%p2968_p9), %s2862_s20, 2 }
  0x86   : > { %s3276_s29 = scalar_lea.vmem [#allocation2], %s2606_s28  ;;  %s3552_s17 = smov (!%p851_p0, %s2251_s17), 15 }
  0x87   : > { %v2680_v16 = vld [vmem:[%s3276_s29 + $0x78] sm:$0xff]   ;;  %v2684_v20 = vld [vmem:[%s3276_s29 + $0x70] sm:$0xff]   ;;  %v2688_v24 = vld [vmem:[%s3276_s29 + $0x68] sm:$0xff]   ;;  %s2607_s5 = smul.u32 36, %s3552_s17  ;;  %s847_s17 = sand.u32 1, %s2842_s15  }
  0x88   : > { %v2681_v17 = vld [vmem:[%s3276_s29 + $0x38] sm:$0xff]   ;;  %2380 = vmatprep.subr.bf16.mxu0 %v2680_v16  ;;  %v2685_v21 = vld [vmem:[%s3276_s29 + $0x30] sm:$0xff]   ;;  %v2689_v25 = vld [vmem:[%s3276_s29 + $0x28] sm:$0xff]   ;;  %s858_s13 = scalar_select %p857_p1, %s2858_s19, 1 }
  0x89   : > { %v2682_v18 = vld [vmem:[%s3276_s29 + $0xf8] sm:$0xff]   ;;  %2381 = vmatpush3.bf16.msra.mxu0 %v2681_v17  ;;  %v2686_v22 = vld [vmem:[%s3276_s29 + $0xf0] sm:$0xff]   ;;  %v2690_v26 = vld [vmem:[%s3276_s29 + $0xe8] sm:$0xff]   ;;  %s3311_s10 = scalar_lea.vmem %s3519_s0, %s2607_s5  ;;  %s2250_s5 = sshll.u32 %s847_s17, 3 }
  0x8a   : > { %v2683_v19 = vld [vmem:[%s3276_s29 + $0xb8] sm:$0xff]   ;;  %2420 = vmatprep.subr.bf16.mxu1 %v2682_v18  ;;  %2382 = vmatprep.subr.bf16.mxu0 %v2684_v20  ;;  %v2687_v23 = vld [vmem:[%s3276_s29 + $0xb0] sm:$0xff]   ;;  %v2691_v27 = vld [vmem:[%s3276_s29 + $0xa8] sm:$0xff]   ;;  %s859_s27 = scalar_lea.vmem %s3521_s2, %s858_s13  ;;  %s849_s6 = scalar_lea.vmem [#allocation3], %s2250_s5 }
  0x8b   : > { %2421 = vmatpush3.bf16.msra.mxu1 %v2683_v19  ;;  %v2692_v28 = vld [vmem:[%s3276_s29 + $0x60] sm:$0xff]   ;;  %v2696_v32 = vld [vmem:[%s3276_s29 + $0x58] sm:$0xff]   ;;  %v2700_v36 = vld [vmem:[%s3276_s29 + $0x50] sm:$0xff]  }
  0x8c   : > { %2422 = vmatprep.subr.bf16.mxu1 %v2686_v22  ;;  %v2693_v29 = vld [vmem:[%s3276_s29 + $0x20] sm:$0xff]   ;;  %v2697_v33 = vld [vmem:[%s3276_s29 + $0x18] sm:$0xff]   ;;  %v2701_v37 = vld [vmem:[%s3276_s29 + $0x10] sm:$0xff]  }
  0x8d   : > { %2383 = vmatpush3.bf16.msra.mxu0 %v2685_v21  ;;  %v2694_v30 = vld [vmem:[%s3276_s29 + $0xe0] sm:$0xff]   ;;  %v2698_v34 = vld [vmem:[%s3276_s29 + $0xd8] sm:$0xff]   ;;  %v2702_v38 = vld [vmem:[%s3276_s29 + $0xd0] sm:$0xff]  }
  0x8e   : > { %2384 = vmatprep.subr.bf16.mxu0 %v2688_v24  ;;  %v2695_v31 = vld [vmem:[%s3276_s29 + $0xa0] sm:$0xff]   ;;  %v2699_v35 = vld [vmem:[%s3276_s29 + $0x98] sm:$0xff]   ;;  %v2703_v39 = vld [vmem:[%s3276_s29 + $0x90] sm:$0xff]  }
  0x8f   : > { %2423 = vmatpush3.bf16.msra.mxu1 %v2687_v23  ;;  %v2704_v40 = vld [vmem:[%s3276_s29 + $0x48] sm:$0xff]   ;;  %v2708_v44 = vld [vmem:[%s3276_s29 + $0x40] sm:$0xff]   ;;  %v2715_v50 = vld [vmem:[%s3276_s29 + $0x178] sm:$0xff]  }
  0x90   : > { %2424 = vmatprep.subr.bf16.mxu1 %v2690_v26  ;;  %v2705_v41 = vld [vmem:[%s3276_s29 + $0x8] sm:$0xff]   ;;  %v2709_v45 = vld [vmem:[%s3276_s29] sm:$0xff]   ;;  %v2719_v53 = vld [vmem:[%s3276_s29 + $0x138] sm:$0xff]  }
  0x91   : > { %2385 = vmatpush3.bf16.msra.mxu0 %v2689_v25  ;;  %v2706_v42 = vld [vmem:[%s3276_s29 + $0xc8] sm:$0xff]   ;;  %v2710_v46 = vld [vmem:[%s3276_s29 + $0xc0] sm:$0xff]   ;;  %v2720_v54 = vld [vmem:[%s3276_s29 + $0x1f8] sm:$0xff]  }
  0x92   : > { %2386 = vmatprep.subr.bf16.mxu0 %v2692_v28  ;;  %v2707_v43 = vld [vmem:[%s3276_s29 + $0x88] sm:$0xff]   ;;  %v2711_v47 = vld [vmem:[%s3311_s10] ss:$36 sps:$4 sm:$0xff]   ;;  %v2721_v55 = vld [vmem:[%s3276_s29 + $0x1b8] sm:$0xff]  }
  0x93   : > { %2425 = vmatpush3.bf16.msra.mxu1 %v2691_v27  ;;  %v2713_v48 = vld [vmem:[%s3311_s10 + $0x4] ss:$36 sps:$4 sm:$0xff]   ;;  %v2718_v52 = vld [vmem:[%s3311_s10 + $0xc] ss:$36 sps:$4 sm:$0xff]   ;;  %v2730_v63 = vld [vmem:[%s3311_s10 + $0x54] ss:$36 sps:$4 sm:$0xff]  }
  0x94   : > { %2426 = vmatprep.subr.bf16.mxu1 %v2694_v30  ;;  %v2714_v49 = vld [vmem:[%s3276_s29 + $0x80] sm:$0xff]   ;;  %1701 = vmatprep.mubr.bf16.mxu0 %v2713_v48  ;;  %v2716_v51 = vld [vmem:[%s3311_s10 + $0x8] ss:$36 sps:$4 sm:$0xff]   ;;  %v2722_v56 = vld [vmem:[%s3276_s29 + $0x170] sm:$0xff]  }
  0x95   : > { %2387 = vmatpush3.bf16.msra.mxu0 %v2693_v29  ;;  %1766 = vmatprep.mubr.bf16.mxu1 %v2718_v52  ;;  %v2723_v57 = vld [vmem:[%s3276_s29 + $0x130] sm:$0xff]   ;;  %v2728_v61 = vld [vmem:[%s3311_s10 + $0x48] ss:$36 sps:$4 sm:$0xff]   ;;  %v2736_v4 = vld [vmem:[%s3276_s29 + $0x160] sm:$0xff]  }
  0x96   : > { %2388 = vmatprep.subr.bf16.mxu0 %v2696_v32  ;;  %v2724_v58 = vld [vmem:[%s3276_s29 + $0x1f0] sm:$0xff]   ;;  %v2729_v62 = vld [vmem:[%s3276_s29 + $0x168] sm:$0xff]   ;;  %v2737_v5 = vld [vmem:[%s3276_s29 + $0x120] sm:$0xff]  }
  0x97   : > { %2427 = vmatpush3.bf16.msra.mxu1 %v2695_v31  ;;  %v2725_v59 = vld [vmem:[%s3311_s10 + $0x4c] ss:$36 sps:$4 sm:$0xff]   ;;  %v2738_v6 = vld [vmem:[%s3276_s29 + $0x1e0] sm:$0xff]   ;;  %v2739_v7 = vld [vmem:[%s3311_s10 + $0x94] ss:$36 sps:$4 sm:$0xff]  }
  0x98   : > { %2428 = vmatprep.subr.bf16.mxu1 %v2698_v34  ;;  %v2727_v60 = vld [vmem:[%s3276_s29 + $0x1b0] sm:$0xff]   ;;  %v2732_v0 = vld [vmem:[%s3276_s29 + $0x128] sm:$0xff]   ;;  %v2741_v8 = vld [vmem:[%s3276_s29 + $0x1a0] sm:$0xff]  }
  0x99   : > { %2389 = vmatpush3.bf16.msra.mxu0 %v2697_v33  ;;  %v2733_v1 = vld [vmem:[%s3311_s10 + $0x50] ss:$36 sps:$4 sm:$0xff]   ;;  %v2734_v2 = vld [vmem:[%s3276_s29 + $0x1e8] sm:$0xff]   ;;  %v2743_v10 = vld [vmem:[%s3276_s29 + $0x158] sm:$0xff]  }
  0x9a   : > { %2390 = vmatprep.subr.bf16.mxu0 %v2700_v36  ;;  %v2735_v3 = vld [vmem:[%s3276_s29 + $0x1a8] sm:$0xff]   ;;  %v2742_v9 = vld [vmem:[%s3311_s10 + $0x90] ss:$36 sps:$4 sm:$0xff]   ;;  %v2744_v11 = vld [vmem:[%s3311_s10 + $0x9c] ss:$36 sps:$4 sm:$0xff]  }
  0x9b   : > { %2429 = vmatpush3.bf16.msra.mxu1 %v2699_v35  ;;  %v2746_v12 = vld [vmem:[%s3276_s29 + $0x118] sm:$0xff]   ;;  %v2750_v16 = vld [vmem:[%s3276_s29 + $0x150] sm:$0xff]   ;;  %v2757_v22 = vld [vmem:[%s3276_s29 + $0x148] sm:$0xff]  }
  0x9c   : > { %2430 = vmatprep.subr.bf16.mxu1 %v2702_v38  ;;  %v2747_v13 = vld [vmem:[%s3311_s10 + $0x98] ss:$36 sps:$4 sm:$0xff]   ;;  %v2751_v17 = vld [vmem:[%s3276_s29 + $0x110] sm:$0xff]   ;;  %v2758_v23 = vld [vmem:[%s3311_s10 + $0xe4] ss:$36 sps:$4 sm:$0xff]  }
  0x9d   : > { %2391 = vmatpush3.bf16.msra.mxu0 %v2701_v37  ;;  %v2748_v14 = vld [vmem:[%s3276_s29 + $0x1d8] sm:$0xff]   ;;  %v2752_v18 = vld [vmem:[%s3276_s29 + $0x1d0] sm:$0xff]   ;;  %v2760_v24 = vld [vmem:[%s3276_s29 + $0x108] sm:$0xff]  }
  0x9e   : > { %2392 = vmatprep.subr.bf16.mxu0 %v2704_v40  ;;  %v2749_v15 = vld [vmem:[%s3276_s29 + $0x198] sm:$0xff]   ;;  %v2755_v20 = vld [vmem:[%s3276_s29 + $0x190] sm:$0xff]   ;;  %v2761_v25 = vld [vmem:[%s3311_s10 + $0xe0] ss:$36 sps:$4 sm:$0xff]  }
  0x9f   : > { %2431 = vmatpush3.bf16.msra.mxu1 %v2703_v39  ;;  %v2753_v19 = vld [vmem:[%s3311_s10 + $0xdc] ss:$36 sps:$4 sm:$0xff]   ;;  %v2762_v26 = vld [vmem:[%s3276_s29 + $0x1c8] sm:$0xff]   ;;  %v2767_v31 = vld [vmem:[%s3311_s10 + $0x10] ss:$36 sps:$4 sm:$0xff]  }
  0xa0   : > { %2432 = vmatprep.subr.bf16.mxu1 %v2706_v42  ;;  %v2756_v21 = vld [vmem:[%s3311_s10 + $0xd8] ss:$36 sps:$4 sm:$0xff]   ;;  %v2763_v27 = vld [vmem:[%s3276_s29 + $0x188] sm:$0xff]   ;;  %v2764_v28 = vld [vmem:[%s3276_s29 + $0x140] sm:$0xff]  }
  0xa1   : > { %2393 = vmatpush3.bf16.msra.mxu0 %v2705_v41  ;;  %v2765_v29 = vld [vmem:[%s3276_s29 + $0x100] sm:$0xff]   ;;  %v2769_v32 = vld [vmem:[%s3311_s10 + $0x14] ss:$36 sps:$4 sm:$0xff]   ;;  %v2779_v40 = vld [vmem:[%s3276_s29 + $0x228] sm:$0xff]  }
  0xa2   : > { %2394 = vmatprep.subr.bf16.mxu0 %v2708_v44  ;;  %v2766_v30 = vld [vmem:[%s3276_s29 + $0x1c0] sm:$0xff]   ;;  %v2771_v34 = vld [vmem:[%s3276_s29 + $0x238] sm:$0xff]   ;;  %v2775_v37 = vld [vmem:[%s3276_s29 + $0x230] sm:$0xff]  }
  0xa3   : > { %2433 = vmatpush3.bf16.msra.mxu1 %v2707_v43  ;;  %v2770_v33 = vld [vmem:[%s3276_s29 + $0x180] sm:$0xff]   ;;  %v2772_v35 = vld [vmem:[%s3311_s10 + $0x18] ss:$36 sps:$4 sm:$0xff]   ;;  %v2792_v48 = vld [vmem:[%s3311_s10 + $0xec] ss:$36 sps:$4 sm:$0xff]  }
  0xa4   : > { %2434 = vmatprep.subr.bf16.mxu1 %v2710_v46  ;;  %v2774_v36 = vld [vmem:[%s3311_s10 + $0x1c] ss:$36 sps:$4 sm:$0xff]   ;;  %v2780_v41 = vld [vmem:[%s3311_s10 + $0x64] ss:$36 sps:$4 sm:$0xff]  }
  0xa5   : > { %2395 = vmatpush3.bf16.msra.mxu0 %v2709_v45  ;;  %v2776_v38 = vld [vmem:[%s3311_s10 + $0x5c] ss:$36 sps:$4 sm:$0xff]   ;;  %v2784_v43 = vld [vmem:[%s3311_s10 + $0xa4] ss:$36 sps:$4 sm:$0xff]   ;;  %v2788_v45 = vld [vmem:[%s3311_s10 + $0xac] ss:$36 sps:$4 sm:$0xff]  }
  0xa6   : > { %2460 = vmatprep.subr.bf16.mxu0 %v2715_v50  ;;  %v2778_v39 = vld [vmem:[%s3311_s10 + $0x58] ss:$36 sps:$4 sm:$0xff]   ;;  %v2783_v42 = vld [vmem:[%s3276_s29 + $0x220] sm:$0xff]   ;;  %v2790_v50 = vld [vmem:[%s3311_s10 + $0xa8] ss:$36 sps:$4 sm:$0xff]  }
  0xa7   : > { %2435 = vmatpush3.bf16.msra.mxu1 %v2714_v49  ;;  %v2782_v44 = vld [vmem:[%s3311_s10 + $0x60] ss:$36 sps:$4 sm:$0xff]   ;;  %v2787_v46 = vld [vmem:[%s3276_s29 + $0x218] sm:$0xff]   ;;  %v2791_v49 = vld [vmem:[%s3276_s29 + $0x210] sm:$0xff]  }
  0xa8   : > { %1702 = vmatmul.mubr.bf16.vlgmr.msra.gmra.mxu0 %v2711_v47  ;;  %2500 = vmatprep.subr.bf16.mxu1 %v2720_v54  ;;  %v2786_v47 = vld [vmem:[%s3311_s10 + $0xa0] ss:$36 sps:$4 sm:$0xff]   ;;  %v2795_v52 = vld [vmem:[%s3276_s29 + $0x208] sm:$0xff]  }
  0xa9   : > { %2461 = vmatpush3.bf16.msra.mxu0 %v2719_v53  ;;  %1709 = vmatprep.mubr.bf16.mxu0 %v2725_v59  ;;  %v2794_v53 = vld [vmem:[%s3311_s10 + $0xe8] ss:$36 sps:$4 sm:$0xff]   ;;  %v2800_v54 = vld [vmem:[%s3311_s10 + $0x20] ss:$36 sps:$4 sm:$0xff]   ;;  %v2803_v59 = vld [vmem:[%s3311_s10 + $0xf8] ss:$36 sps:$4 sm:$0xff]  }
  0xaa   : > { %1767 = vmatmul.mubr.bf16.vlgmr.msra.gmra.mxu1 %v2716_v51  ;;  %2462 = vmatprep.subr.bf16.mxu0 %v2722_v56  ;;  %v2796_v51 = vld [vmem:[%s3311_s10 + $0xf4] ss:$36 sps:$4 sm:$0xff]  }
  0xab   : > { %2501 = vmatpush3.bf16.msra.mxu1 %v2721_v55  ;;  %1774 = vmatprep.mubr.bf16.mxu1 %v2730_v63  ;;  %v2799_v55 = vld [vmem:[%s3276_s29 + $0x200] sm:$0xff]   ;;  %v2798_v56 = vld [vmem:[%s3311_s10 + $0xf0] ss:$36 sps:$4 sm:$0xff]  }
  0xac   : > { %2502 = vmatprep.subr.bf16.mxu1 %v2724_v58  ;;  %v2802_v58 = vld [vmem:[%s3311_s10 + $0xb0] ss:$36 sps:$4 sm:$0xff]  }
  0xad   : > { %2463 = vmatpush3.bf16.msra.mxu0 %v2723_v57  ;;  %v2801_v57 = vld [vmem:[%s3311_s10 + $0x68] ss:$36 sps:$4 sm:$0xff]   ;;  %s2105_s10 = sadd.s32 (%p2968_p9), %s2858_s19, %s2374_s9 }
  0xae   : > { %2464 = vmatprep.subr.bf16.mxu0 %v2729_v62  ;;  %v3401_v62 = vld [vmem:[%s859_s27] ss:$0 sm:$0xff]  ;;  %s2369_s11 = sshll.u32 (%p2968_p9), %s2105_s10, 2 }
  0xaf   : > { %2503 = vmatpush3.bf16.msra.mxu1 %v2727_v60  ;;  %v2002_v60 = vld [vmem:[%s3522_s3] sm:$0xff]  ;;  %s2107_s15 = scalar_lea.vmem (%p2968_p9), %s3523_s4, %s2369_s11 }
  0xb0   : > { %1710 = vmatmul.mubr.bf16.gmra.mxu0 %v2728_v61  ;;  %2504 = vmatprep.subr.bf16.mxu1 %v2734_v2 }
  0xb1   : > { %2465 = vmatpush3.bf16.msra.mxu0 %v2732_v0  ;;  %1717 = vmatprep.mubr.bf16.mxu0 %v2739_v7 }
  0xb2   : > { %1775 = vmatmul.mubr.bf16.gmra.mxu1 %v2733_v1  ;;  %2466 = vmatprep.subr.bf16.mxu0 %v2736_v4 }
  0xb3   : > { %2505 = vmatpush3.bf16.msra.mxu1 %v2735_v3  ;;  %1782 = vmatprep.mubr.bf16.mxu1 %v2744_v11 }
  0xb4   : > { %2506 = vmatprep.subr.bf16.mxu1 %v2738_v6 }
  0xb5   : > { %2467 = vmatpush3.bf16.msra.mxu0 %v2737_v5 }
  0xb6   : > { %2468 = vmatprep.subr.bf16.mxu0 %v2743_v10 }
  0xb7   : > { %2507 = vmatpush3.bf16.msra.mxu1 %v2741_v8 }
  0xb8   : > { %1718 = vmatmul.mubr.bf16.gmra.mxu0 %v2742_v9  ;;  %2508 = vmatprep.subr.bf16.mxu1 %v2748_v14 }
  0xb9   : > { %2469 = vmatpush3.bf16.msra.mxu0 %v2746_v12  ;;  %1725 = vmatprep.mubr.bf16.mxu0 %v2753_v19 }
  0xba   : > { %1783 = vmatmul.mubr.bf16.gmra.mxu1 %v2747_v13  ;;  %2470 = vmatprep.subr.bf16.mxu0 %v2750_v16 }
  0xbb   : > { %2509 = vmatpush3.bf16.msra.mxu1 %v2749_v15  ;;  %1790 = vmatprep.mubr.bf16.mxu1 %v2758_v23 }
  0xbc   : > { %2510 = vmatprep.subr.bf16.mxu1 %v2752_v18 }
  0xbd   : > { %2471 = vmatpush3.bf16.msra.mxu0 %v2751_v17 }
  0xbe   : > { %2472 = vmatprep.subr.bf16.mxu0 %v2757_v22 }
  0xbf   : > { %2511 = vmatpush3.bf16.msra.mxu1 %v2755_v20 }
  0xc0   : > { %1726 = vmatmul.mubr.bf16.gmra.mxu0 %v2756_v21  ;;  %2512 = vmatprep.subr.bf16.mxu1 %v2762_v26 }
  0xc1   : > { %2473 = vmatpush3.bf16.msra.mxu0 %v2760_v24  ;;  %1831 = vmatprep.mubr.bf16.mxu0 %v2769_v32 }
  0xc2   : > { %1791 = vmatmul.mubr.bf16.gmra.mxu1 %v2761_v25  ;;  %2474 = vmatprep.subr.bf16.mxu0 %v2764_v28 }
  0xc3   : > { %2513 = vmatpush3.bf16.msra.mxu1 %v2763_v27  ;;  %1896 = vmatprep.mubr.bf16.mxu1 %v2774_v36 }
  0xc4   : > { %2514 = vmatprep.subr.bf16.mxu1 %v2766_v30 }
  0xc5   : > { %2475 = vmatpush3.bf16.msra.mxu0 %v2765_v29 }
  0xc6   : > { %2562 = vmatprep.subr.bf16.mxu0 %v2771_v34 }
  0xc7   : > { %2515 = vmatpush3.bf16.msra.mxu1 %v2770_v33 }
  0xc8   : > { %1832 = vmatmul.mubr.bf16.vlgmr.msra.gmra.mxu0 %v2767_v31 }
  0xc9   : > { %2563 = vmatpush3.bf16.msra.mxu0 %v2771_v34  ;;  %1839 = vmatprep.mubr.bf16.mxu0 %v2776_v38 }
  0xca   : > { %1897 = vmatmul.mubr.bf16.vlgmr.msra.gmra.mxu1 %v2772_v35  ;;  %2564 = vmatprep.subr.bf16.mxu0 %v2775_v37 }
  0xcb   : > { %1904 = vmatprep.mubr.bf16.mxu1 %v2780_v41 }
  0xcd   : > { %2565 = vmatpush3.bf16.msra.mxu0 %v2775_v37 }
  0xce   : > { %2566 = vmatprep.subr.bf16.mxu0 %v2779_v40 }
  0xd0   : > { %1840 = vmatmul.mubr.bf16.gmra.mxu0 %v2778_v39 }
  0xd1   : > { %1847 = vmatprep.mubr.bf16.mxu0 %v2784_v43  ;;  %2567 = vmatpush3.bf16.msra.mxu0 %v2779_v40 }
  0xd2   : > { %2568 = vmatprep.subr.bf16.mxu0 %v2783_v42  ;;  %1905 = vmatmul.mubr.bf16.gmra.mxu1 %v2782_v44 }
  0xd3   : > { %1912 = vmatprep.mubr.bf16.mxu1 %v2788_v45 }
  0xd5   : > { %2569 = vmatpush3.bf16.msra.mxu0 %v2783_v42 }
  0xd6   : > { %2570 = vmatprep.subr.bf16.mxu0 %v2787_v46 }
  0xd8   : > { %1848 = vmatmul.mubr.bf16.gmra.mxu0 %v2786_v47 }
  0xd9   : > { %1855 = vmatprep.mubr.bf16.mxu0 %v2792_v48  ;;  %2571 = vmatpush3.bf16.msra.mxu0 %v2787_v46 }
  0xda   : > { %2572 = vmatprep.subr.bf16.mxu0 %v2791_v49  ;;  %1913 = vmatmul.mubr.bf16.gmra.mxu1 %v2790_v50 }
  0xdb   : > { %1920 = vmatprep.mubr.bf16.mxu1 %v2796_v51 }
  0xdd   : > { %2573 = vmatpush3.bf16.msra.mxu0 %v2791_v49 }
  0xde   : > { %2574 = vmatprep.subr.bf16.mxu0 %v2795_v52 }
  0xe0   : > { %1856 = vmatmul.mubr.bf16.gmra.mxu0 %v2794_v53 }
  0xe1   : > { %2578 = vmatprep.mubr.bf16.mxu0 %v2800_v54  ;;  %2575 = vmatpush3.bf16.msra.mxu0 %v2795_v52 }
  0xe2   : > { %2576 = vmatprep.subr.bf16.mxu0 %v2799_v55  ;;  %1921 = vmatmul.mubr.bf16.gmra.mxu1 %v2798_v56 }
  0xe3   : > { %2602 = vmatprep.mubr.msk.f32.mxu1 %vm2004_vm0, %v2002_v60 }
  0xe5   : > { %2577 = vmatpush3.bf16.msra.mxu0 %v2799_v55 }
  0xe8   : > { %2579 = vmatmul.mubr.bf16.vlgmr.msra.gmra.mxu0 %v2801_v57 }
  0xe9   : > { %2582 = vmatprep.mubr.bf16.mxu0 %v2802_v58 }
  0xf0   : > { %2583 = vmatmul.mubr.bf16.gmra.mxu0 %v2803_v59 }
 0x168   : > { %v2396_v61 = vpop.f32.mrf.mxu0 }
 0x16a   : > { %v2397_v63 = vpop.f32.mrf.mxu0  ;;  %v2436_v1 = vpop.f32.mrf.mxu1 }
 0x16b   : > { %v2398_v0 = vadd.f32 %v2397_v63, %v2396_v61 }
 0x16c   : > { %v2399_v2 = vpop.f32.mrf.mxu0  ;;  %v2437_v4 = vpop.f32.mrf.mxu1 }
 0x16d   : > { %v1704_v3 = vadd.f32 %v2398_v0, %v3401_v62  ;;  %v2438_v5 = vadd.f32 %v2437_v4, %v2436_v1 }
 0x16e   : > { %v2400_v6 = vpop.f32.mrf.mxu0  ;;  %v2439_v8 = vpop.f32.mrf.mxu1 }
 0x16f   : > { %v2401_v7 = vadd.f32 %v2400_v6, %v2399_v2  ;;  %v3404_v9 = vadd.f32 %v2438_v5, %v1704_v3 }
 0x170   : > { %v2440_v11 = vpop.f32.mrf.mxu1  ;;  %v2402_v12 = vpop.f32.mrf.mxu0 }
 0x171   : > { %3525 = vst [vmem:[#allocation4_spill] sm:$0xff] %v3404_v9  ;;  %v1707_v10 = vadd.f32 %v2401_v7, %v3401_v62  ;;  %v2441_v13 = vadd.f32 %v2440_v11, %v2439_v8 }
 0x172   : > { %v2403_v15 = vpop.f32.mrf.mxu0  ;;  %v3411_v17 = vpop.f32.mrf.mxu1 }
 0x173   : > { %v3407_v14 = vadd.f32 %v2441_v13, %v1707_v10  ;;  %v3409_v16 = vadd.f32 %v2403_v15, %v2402_v12 }
 0x174   : > { %v2405_v18 = vpop.f32.mrf.mxu0  ;;  %v3413_v19 = vpop.f32.mrf.mxu1 }
 0x175   : > { %3526 = vst [vmem:[#allocation5_spill] sm:$0xff] %v3407_v14 }
 0x176   : > { %v2406_v20 = vpop.f32.mrf.mxu0  ;;  %v3415_v21 = vpop.f32.mrf.mxu1 }
 0x177   : > { %v2407_v9 = vadd.f32 %v2406_v20, %v2405_v18 }
 0x178   : > { %v3417_v22 = vpop.f32.mrf.mxu1  ;;  %v2408_v23 = vpop.f32.mrf.mxu0 }
 0x179   : > { %v2447_v18 = vadd.f32 %v3417_v22, %v3415_v21 }
 0x17a   : > { %v2409_v24 = vpop.f32.mrf.mxu0  ;;  %v3419_v25 = vpop.f32.mrf.mxu1 }
 0x17b   : > { %v2410_v10 = vadd.f32 %v2409_v24, %v2408_v23 }
 0x17c   : > { %v2411_v26 = vpop.f32.mrf.mxu0  ;;  %v2449_v27 = vpop.f32.mrf.mxu1 }
 0x17e   : > { %v2412_v28 = vpop.f32.mrf.mxu0  ;;  %v2451_v29 = vpop.f32.mrf.mxu1 }
 0x17f   : > { %v2413_v8 = vadd.f32 %v2412_v28, %v2411_v26  ;;  %v1720_v26 = vadd.f32 %v2410_v10, %v3401_v62  ;;  %v2450_v28 = vadd.f32 %v2449_v27, %v3419_v25  ;;  %v2444_v25 = vadd.f32 %v3413_v19, %v3411_v17 }
 0x180   : > { %v2452_v30 = vpop.f32.mrf.mxu1  ;;  %v2414_v31 = vpop.f32.mrf.mxu0 }
 0x182   : > { %v2415_v32 = vpop.f32.mrf.mxu0  ;;  %v2454_v33 = vpop.f32.mrf.mxu1 }
 0x183   : > { %v2416_v4 = vadd.f32 %v2415_v32, %v2414_v31 }
 0x184   : > { %v2417_v34 = vpop.f32.mrf.mxu0  ;;  %v2455_v35 = vpop.f32.mrf.mxu1 }
 0x185   : > { %v1728_v13 = vadd.f32 %v2416_v4, %v3401_v62  ;;  %v2456_v15 = vadd.f32 %v2455_v35, %v2454_v33  ;;  %v1715_v35 = vadd.f32 %v2407_v9, %v3401_v62 }
 0x186   : > { %v2418_v36 = vpop.f32.mrf.mxu0  ;;  %v2457_v37 = vpop.f32.mrf.mxu1 }
 0x187   : > { %v2419_v5 = vadd.f32 %v2418_v36, %v2417_v34  ;;  %v1793_v34 = vadd.f32 %v2456_v15, %v1728_v13 }
 0x188   : > { %v2458_v38 = vpop.f32.mrf.mxu1  ;;  %v3421_v39 = vpop.f32.mrf.mxu0 }
 0x18a   : > { %v3423_v40 = vpop.f32.mrf.mxu0  ;;  %v3425_v41 = vpop.f32.mrf.mxu1 }
 0x18b   : > { %3527 = vst [vmem:[#allocation6_spill] sm:$0xff] %v3425_v41  ;;  %v2459_v41 = vadd.f32 %v2458_v38, %v2457_v37 }
 0x18c   : > { %v3427_v42 = vpop.f32.mrf.mxu0  ;;  %v3429_v43 = vpop.f32.mrf.mxu1 }
 0x18d   : > { %3528 = vst [vmem:[#allocation7_spill] sm:$0xff] %v3429_v43  ;;  %v1731_v43 = vadd.f32 %v2419_v5, %v3401_v62 }
 0x18e   : > { %v3431_v44 = vpop.f32.mrf.mxu0  ;;  %v3433_v45 = vpop.f32.mrf.mxu1 }
 0x18f   : > { %3529 = vst [vmem:[#allocation8_spill] sm:$0xff] %v3433_v45  ;;  %v2453_v45 = vadd.f32 %v2452_v30, %v2451_v29  ;;  %v1796_v36 = vadd.f32 %v2459_v41, %v1731_v43  ;;  %v1785_v43 = vadd.f32 %v2450_v28, %v1720_v26 }
 0x190   : > { %v3435_v46 = vpop.f32.mrf.mxu0  ;;  %v3437_v47 = vpop.f32.mrf.mxu1 }
 0x191   : > { %3530 = vst [vmem:[#allocation9_spill] sm:$0xff] %v3437_v47  ;;  %v1723_v47 = vadd.f32 %v2413_v8, %v3401_v62 }
 0x192   : > { %v2483_v48 = vpop.f32.mrf.mxu0  ;;  %v3439_v49 = vpop.f32.mrf.mxu1 }
 0x193   : > { %v1788_v20 = vadd.f32 %v2453_v45, %v1723_v47  ;;  %v2484_v21 = vadd.f32 %v2483_v48, %v3435_v46  ;;  %v2478_v46 = vadd.f32 %v3423_v40, %v3421_v39  ;;  %v3535_v39 = vld [vmem:[#allocation6_spill] sm:$0xff] }
 0x194   : > { %v2485_v50 = vpop.f32.mrf.mxu0  ;;  %v3441_v51 = vpop.f32.mrf.mxu1  ;;  %v3536_v40 = vld [vmem:[#allocation7_spill] sm:$0xff] }
 0x195   : > { %v2518_v15 = vadd.f32 %v3536_v40, %v3535_v39 }
 0x196   : > { %v2486_v52 = vpop.f32.mrf.mxu0  ;;  %v3443_v53 = vpop.f32.mrf.mxu1 }
 0x197   : > { %v2487_v27 = vadd.f32 %v2486_v52, %v2485_v50 }
 0x198   : > { %v2488_v54 = vpop.f32.mrf.mxu0  ;;  %v3445_v55 = vpop.f32.mrf.mxu1 }
 0x199   : > { %v2527_v17 = vadd.f32 %v3445_v55, %v3443_v53 }
 0x19a   : > { %v2489_v56 = vpop.f32.mrf.mxu0  ;;  %v2528_v57 = vpop.f32.mrf.mxu1 }
 0x19b   : > { %v2490_v29 = vadd.f32 %v2489_v56, %v2488_v54 }
 0x19c   : > { %v2491_v58 = vpop.f32.mrf.mxu0  ;;  %v2529_v59 = vpop.f32.mrf.mxu1 }
 0x19d   : > { %v1850_v45 = vadd.f32 %v2490_v29, %v1785_v43  ;;  %v2530_v47 = vadd.f32 %v2529_v59, %v2528_v57  ;;  %v2524_v57 = vadd.f32 %v3441_v51, %v3439_v49 }
 0x19e   : > { %v2492_v60 = vpop.f32.mrf.mxu0  ;;  %v2531_v61 = vpop.f32.mrf.mxu1 }
 0x19f   : > { %v2493_v33 = vadd.f32 %v2492_v60, %v2491_v58  ;;  %v1780_v60 = vadd.f32 %v2447_v18, %v1715_v35  ;;  %v1915_v59 = vadd.f32 %v2530_v47, %v1850_v45 }
 0x1a0   : > { %v2494_v63 = vpop.f32.mrf.mxu0  ;;  %v2532_v0 = vpop.f32.mrf.mxu1 }
 0x1a1   : > { %v1853_v9 = vadd.f32 %v2493_v33, %v1788_v20  ;;  %v2533_v58 = vadd.f32 %v2532_v0, %v2531_v61 }
 0x1a2   : > { %v2495_v1 = vpop.f32.mrf.mxu0  ;;  %v2534_v2 = vpop.f32.mrf.mxu1 }
 0x1a3   : > { %v2496_v31 = vadd.f32 %v2495_v1, %v2494_v63  ;;  %v1918_v52 = vadd.f32 %v2533_v58, %v1853_v9 }
 0x1a4   : > { %v2497_v3 = vpop.f32.mrf.mxu0  ;;  %v2535_v6 = vpop.f32.mrf.mxu1 }
 0x1a5   : > { %v1858_v37 = vadd.f32 %v2496_v31, %v1793_v34  ;;  %v2536_v38 = vadd.f32 %v2535_v6, %v2534_v2  ;;  %v3532_v6 = vld [vmem:[#allocation8_spill] sm:$0xff] }
 0x1a6   : > { %v2498_v7 = vpop.f32.mrf.mxu0  ;;  %v2537_v11 = vpop.f32.mrf.mxu1 }
 0x1a7   : > { %v2499_v32 = vadd.f32 %v2498_v7, %v2497_v3  ;;  %v1712_v3 = vadd.f32 %v3409_v16, %v3401_v62  ;;  %v1923_v54 = vadd.f32 %v2536_v38, %v1858_v37  ;;  %v2481_v62 = vadd.f32 %v3431_v44, %v3427_v42  ;;  %v3531_v42 = vld [vmem:[#allocation5_spill] sm:$0xff] }
 0x1a8   : > { %v3447_v12 = vpop.f32.mrf.mxu0  ;;  %v2538_v23 = vpop.f32.mrf.mxu1  ;;  %v1845_v16 = vadd.f32 %v2487_v27, %v1780_v60  ;;  %v3533_v7 = vld [vmem:[#allocation9_spill] sm:$0xff] }
 0x1a9   : > { %v1861_v63 = vadd.f32 %v2499_v32, %v1796_v36  ;;  %v2539_v1 = vadd.f32 %v2538_v23, %v2537_v11  ;;  %v1777_v2 = vadd.f32 %v2444_v25, %v1712_v3  ;;  %v1837_v44 = vadd.f32 %v2481_v62, %v3531_v42  ;;  %v3534_v11 = vld [vmem:[#allocation4_spill] sm:$0xff] }
 0x1aa   : > { %v3452_v14 = vpop.f32.mrf.mxu0  ;;  %v2521_v8 = vadd.f32 %v3533_v7, %v3532_v6  ;;  %v1910_v53 = vadd.f32 %v2527_v17, %v1845_v16  ;;  %v1834_v13 = vadd.f32 %v2478_v46, %v3534_v11 }
 0x1ab   : > { %v1926_v56 = vadd.f32 %v2539_v1, %v1861_v63  ;;  %v1842_v48 = vadd.f32 %v2484_v21, %v1777_v2 }
 0x1ac   : > { %v2581_v24 = vpop.f32.mrf.mxu0  ;;  %v1902_v26 = vadd.f32 %v2521_v8, %v1837_v44  ;;  %v1899_v28 = vadd.f32 %v2518_v15, %v1834_v13 }
 0x1ad   : > { %v1907_v31 = vadd.f32 %v2524_v57, %v1842_v48  ;;  %v1975_v49 = vadd.f32 %v2581_v24, %v1910_v53 }
 0x1ae   : > { %v1966_v30 = vpop.f32.mrf.mxu0  ;;  %v1964_v35 = vadd.f32 %v3452_v14, %v1899_v28 }
 0x1af   : > { %v1972_v32 = vadd.f32 %v3447_v12, %v1907_v31  ;;  %v1997_v34 = vmax.f32 %v1975_v49, 0.0  ;;  %v1967_v36 = vadd.f32 %v1966_v30, %v1902_v26  ;;  %v2003_v12 = vld [vmem:[%s3522_s3 + $0x8] sm:$0xff] }
 0x1b0   : > { %v2584_v41 = vpop.f32.mrf.mxu0  ;;  %v1994_v18 = vmax.f32 %v1964_v35, 0.0 }
 0x1b1   : > { %v1988_v19 = vadd.f32 %v2584_v41, %v1923_v54  ;;  %v1996_v33 = vmax.f32 %v1972_v32, 0.0  ;;  %v1995_v24 = vmax.f32 %v1967_v36, 0.0 }
 0x1b2   : > { %v1979_v22 = vpop.f32.mrf.mxu0 }
 0x1b3   : > { %v2000_v55 = vmax.f32 %v1988_v19, 0.0  ;;  %v1980_v10 = vadd.f32 %v1979_v22, %v1915_v59 }
 0x1b4   : > { %v2585_v4 = vpop.f32.mrf.mxu0 }
 0x1b5   : > { %v1991_v50 = vadd.f32 %v2585_v4, %v1926_v56  ;;  %v1998_v23 = vmax.f32 %v1980_v10, 0.0 }
 0x1b6   : > { %v1982_v61 = vpop.f32.mrf.mxu0 }
 0x1b7   : > { %v2001_v0 = vmax.f32 %v1991_v50, 0.0  ;;  %v1983_v5 = vadd.f32 %v1982_v61, %v1918_v52 }
 0x1b9   : > { %2586 = vmatprep.subr.mxu1 %v2001_v0  ;;  %v1999_v51 = vmax.f32 %v1983_v5, 0.0 }
 0x1ba   : > { %2587 = vmatpush3.msra.mxu1 %v2001_v0 }
 0x1bb   : > { %2588 = vmatprep.subr.mxu1 %v2000_v55 }
 0x1bc   : > { %2589 = vmatpush3.msra.mxu1 %v2000_v55 }
 0x1bd   : > { %2590 = vmatprep.subr.mxu1 %v1999_v51 }
 0x1be   : > { %2591 = vmatpush3.msra.mxu1 %v1999_v51 }
 0x1bf   : > { %2592 = vmatprep.subr.mxu1 %v1998_v23 }
 0x1c0   : > { %2593 = vmatpush3.msra.mxu1 %v1998_v23 }
 0x1c1   : > { %2594 = vmatprep.subr.mxu1 %v1997_v34 }
 0x1c2   : > { %2595 = vmatpush3.msra.mxu1 %v1997_v34 }
 0x1c3   : > { %2596 = vmatprep.subr.mxu1 %v1996_v33 }
 0x1c4   : > { %2597 = vmatpush3.msra.mxu1 %v1996_v33 }
 0x1c5   : > { %2598 = vmatprep.subr.mxu1 %v1995_v24 }
 0x1c6   : > { %2599 = vmatpush3.msra.mxu1 %v1995_v24 }
 0x1c7   : > { %2600 = vmatprep.subr.mxu1 %v1994_v18 }
 0x1c8   : > { %2601 = vmatpush3.msra.mxu1 %v1994_v18 }
 0x1c9   : > { %2603 = vmatmul.mubr.msk.f32.vlgmr.msra.gmra.mxu1 %vm2004_vm0, %v2003_v12 }
 0x289   : > { %v2604_v20 = vpop.f32.mrf.mxu1 }
 0x28a   : > { %2102 = sbr.rel (!%p2968_p9) target bundleno = 663 (0x297), region = 81 }
 0x28b   : > { %v2077_v14 = vpop.f32.mrf.mxu1 }
 0x28c   : > { %v2378_v29 = vpack.c.bf16 %v2604_v20, %v2077_v14 }
 0x28e   : > { %2379 = vst [vmem:[%s849_s6] sm:$0xff] %v2378_v29  }
 0x295   : > { %v2124_v30 = vld [vmem:[%s849_s6] sm:$0xf]  ;;  %v2126_v37 = vld [vmem:[%s849_s6 + $0x4] sm:$0xf] }
 0x296   : > { %2125 = vst [vmem:[%s2107_s15] sm:$0xf] %v2124_v30  ;;  %2127 = vst [vmem:[%s2107_s15 + $0x8] sm:$0xf] %v2126_v37 }
 0x297 PF: > { %s14_s23 = sadd.s32 1, %s2874_s23   ;;  %s3537_s15 = smov %s2846_s16 }
 0x298   : > { %p11_p2 = scmp.ge.s32.totalorder %s14_s23, 6   ;;  %s3538_s16 = smov %s2973_s8 }
 0x299   : > { %s3539_s17 = smov %s2854_s18  ;;  %s3540_s18 = smov %s2962_s30 }
 0x29a   : > { %s3541_s19 = smov %s2866_s21  ;;  %s3542_s20 = smov %s2870_s22 }
 0x29b   : > { %s3543_s21 = smov %s3546_s25  ;;  %s3544_s22 = smov %s3550_s26 }
 0x29c   :  { %13 = sbr.rel (!%p11_p2) target bundleno = 5 (0x5), region = 159 }

// kernel: cnn_branch_forward.7
= control target key start
LH: loop header
LB: loop body
LE: loop exit
PB: predicated region body
PF: predicated region fallthrough
CT: control target
= control target key end

     0   :  { %8 = vsyncpa [#allocation4], 0  ;;  %s5313_s0 = inlined_call_operand.vmem [shape: bf16[2,4096], index: 0, kind: input, shape index: {}]   ;;  %s5314_s1 = inlined_call_operand.vmem [shape: bf16[4096,512], index: 1, kind: input, shape index: {}]   ;;  %s5315_s2 = inlined_call_operand.vmem [shape: f32[1,512], index: 2, kind: input, shape index: {}]   ;;  %s5316_s3 = inlined_call_operand.hbm [shape: f32[2,512], index: 3, kind: output, shape index: {}]  }
   0x1   :  { %10 = vsyncpa [#allocation4 + $0x1], 0  ;;  %s4312_s12 = smov 0   ;;  %s4314_s13 = smov 0  }
   0x2   :  { %s4316_s14 = smov 0   ;;  %s4318_s15 = smov 0  }
   0x3   :  { %s4320_s16 = smov 0   ;;  %s4322_s17 = smov 0  }
   0x4   :  { %s4324_s18 = smov 0   ;;  %s4326_s19 = smov 0  }
   0x5   :  { %s4328_s20 = smov 0   ;;  %s4330_s21 = smov 0  }
   0x6 LB: > { %s3423_s22 = sadd.s32 4294967295, %s4286_s21   ;;  %s3424_s23 = sadd.s32 4294967294, %s4286_s21   ;;  %s4286_s21 = sphi %s4330_s21, %s16_s21   ;;  %s4282_s20 = sphi %s4328_s20, %s5330_s20   ;;  %s4278_s19 = sphi %s4326_s19, %s5329_s19   ;;  %s4274_s18 = sphi %s4324_s18, %s5328_s18   ;;  %s4270_s17 = sphi %s4322_s17, %s5327_s17   ;;  %s4266_s16 = sphi %s4320_s16, %s5326_s16   ;;  %s4262_s15 = sphi %s4318_s15, %s5325_s15   ;;  %s4258_s14 = sphi %s4316_s14, %s5324_s14   ;;  %s4254_s13 = sphi %s4314_s13, %s5323_s13   ;;  %s4250_s12 = sphi %s4312_s12, %s5322_s12  }
   0x7   : > { %s25_s24 = sadd.s32 1, %s4278_s19  ;;  %s28_s25 = sadd.s32 1, %s4282_s20 }
   0x8   : > { %p26_p0 = scmp.ge.s32.totalorder %s25_s24, 2  ;;  %s63_s26 = sadd.s32 1, %s4266_s16 }
   0x9   : > { %p70_p1 = scmp.ne.s32.totalorder %s4266_s16, %s4262_s15  ;;  %p71_p2 = scmp.eq.s32.totalorder %s4286_s21, 0 }
   0xa   : > { %s5332_s24 = smov (%p26_p0, %s25_s24), 0  ;;  %s5334_s25 = smov (!%p26_p0, %s28_s25), %s4282_s20 }
   0xb   : > { %s58_s27 = ssub.s32 %s4278_s19, %s5332_s24  ;;  %p4375_p3 = por %p71_p2, %p70_p1 }
   0xc   : > { %p30_p4 = scmp.ge.s32.totalorder %s5334_s25, 2  ;;  %s115_s29 = sadd.s32 1, %s4258_s14 }
   0xd   : > { %p125_p5 = scmp.ne.s32.totalorder %s4258_s14, %s4254_s13  ;;  %p126_p6 = scmp.eq.s32.totalorder %s3423_s22, 3 }
   0xe   : > { %s5336_s25 = smov (%p30_p4, %s5334_s25), 0  ;;  %p131_p8 = scmp.ne.s32.totalorder %s4254_s13, %s4250_s12 }
   0xf   : > { %p4384_p7 = por %p126_p6, %p125_p5  ;;  %s59_s4 = ssub.s32 %s4282_s20, %s5336_s25 }
  0x10   : > { %p132_p9 = scmp.eq.s32.totalorder %s3424_s23, 3  ;;  %s60_s5 = sor.u32 %s59_s4, %s58_s27 }
  0x11   : > { %p113_p10 = scmp.eq.s32.totalorder %s59_s4, 0  ;;  %p61_p11 = scmp.eq.s32.totalorder %s60_s5, 0 }
  0x12   : > { %p4392_p12 = por %p132_p9, %p131_p8  ;;  %p3426_p13 = scmp.ge.s32.totalorder %s4286_s21, 4 }
  0x13   : > { %s4397_s7 = scalar_select %p113_p10, %s4258_s14, %s115_s29  }
  0x14   : > { %s4400_s8 = scalar_select %p61_p11, %s4266_s16, %s63_s26  }
  0x15   : > { %148 = sbr.rel (%p3426_p13) target bundleno = 161 (0xa1), region = 16 }
  0x1a   : > { %159 = sbr.rel (!%p4375_p3) target bundleno = 161 (0xa1), region = 24  ;;  %s161_s9 = sand.u32 (%p4375_p3), 1, %s4266_s16  }
  0x1b   : > { %s3429_s10 = sshll.u32 (%p4375_p3), %s4282_s20, 1  ;;  %s3427_s11 = sshll.u32 (%p4375_p3), %s161_s9, 11 }
  0x1c   : > { %s3700_s22 = sshll.u32 (%p4375_p3), %s4278_s19, 10  ;;  %s4416_s28 = scalar_lea.vmem (%p4375_p3), [#allocation2], %s3427_s11 }
  0x1d   : > { %s167_s23 = sadd.s32 (%p4375_p3), %s3700_s22, %s3429_s10 }
  0x1e   : > { %s3431_s27 = sshll.u32 (%p4375_p3), %s167_s23, 2 }
  0x1f   : > { %s4411_s26 = scalar_lea.vmem %s5314_s1, %s3431_s27 }
  0x20   : > { %v708_v0 = vld [vmem:[%s4411_s26] sm:$0xff]  ;;  %v710_v1 = vld [vmem:[%s4411_s26 + $0x10] sm:$0xff] }
  0x21   : > { %v712_v2 = vld [vmem:[%s4411_s26 + $0x20] sm:$0xff]  ;;  %709 = vst [vmem:[%s4416_s28] sm:$0xff] %v708_v0  ;;  %711 = vst [vmem:[%s4416_s28 + $0x8] sm:$0xff] %v710_v1  ;;  %v714_v3 = vld [vmem:[%s4411_s26 + $0x30] sm:$0xff] }
  0x22   : > { %713 = vst [vmem:[%s4416_s28 + $0x10] sm:$0xff] %v712_v2  ;;  %v716_v4 = vld [vmem:[%s4411_s26 + $0x40] sm:$0xff]  ;;  %v718_v5 = vld [vmem:[%s4411_s26 + $0x50] sm:$0xff]  ;;  %715 = vst [vmem:[%s4416_s28 + $0x18] sm:$0xff] %v714_v3 }
  0x23   : > { %717 = vst [vmem:[%s4416_s28 + $0x20] sm:$0xff] %v716_v4  ;;  %719 = vst [vmem:[%s4416_s28 + $0x28] sm:$0xff] %v718_v5  ;;  %v720_v6 = vld [vmem:[%s4411_s26 + $0x60] sm:$0xff]  ;;  %v722_v7 = vld [vmem:[%s4411_s26 + $0x70] sm:$0xff] }
  0x24   : > { %v724_v8 = vld [vmem:[%s4411_s26 + $0x80] sm:$0xff]  ;;  %721 = vst [vmem:[%s4416_s28 + $0x30] sm:$0xff] %v720_v6  ;;  %723 = vst [vmem:[%s4416_s28 + $0x38] sm:$0xff] %v722_v7  ;;  %v726_v9 = vld [vmem:[%s4411_s26 + $0x90] sm:$0xff] }
  0x25   : > { %725 = vst [vmem:[%s4416_s28 + $0x40] sm:$0xff] %v724_v8  ;;  %v728_v10 = vld [vmem:[%s4411_s26 + $0xa0] sm:$0xff]  ;;  %v730_v11 = vld [vmem:[%s4411_s26 + $0xb0] sm:$0xff]  ;;  %727 = vst [vmem:[%s4416_s28 + $0x48] sm:$0xff] %v726_v9 }
  0x26   : > { %729 = vst [vmem:[%s4416_s28 + $0x50] sm:$0xff] %v728_v10  ;;  %731 = vst [vmem:[%s4416_s28 + $0x58] sm:$0xff] %v730_v11  ;;  %v732_v12 = vld [vmem:[%s4411_s26 + $0xc0] sm:$0xff]  ;;  %v734_v13 = vld [vmem:[%s4411_s26 + $0xd0] sm:$0xff] }
  0x27   : > { %v736_v14 = vld [vmem:[%s4411_s26 + $0xe0] sm:$0xff]  ;;  %733 = vst [vmem:[%s4416_s28 + $0x60] sm:$0xff] %v732_v12  ;;  %735 = vst [vmem:[%s4416_s28 + $0x68] sm:$0xff] %v734_v13  ;;  %v738_v15 = vld [vmem:[%s4411_s26 + $0xf0] sm:$0xff] }
  0x28   : > { %737 = vst [vmem:[%s4416_s28 + $0x70] sm:$0xff] %v736_v14  ;;  %v740_v16 = vld [vmem:[%s4411_s26 + $0x100] sm:$0xff]  ;;  %v742_v17 = vld [vmem:[%s4411_s26 + $0x110] sm:$0xff]  ;;  %739 = vst [vmem:[%s4416_s28 + $0x78] sm:$0xff] %v738_v15 }
  0x29   : > { %741 = vst [vmem:[%s4416_s28 + $0x80] sm:$0xff] %v740_v16  ;;  %743 = vst [vmem:[%s4416_s28 + $0x88] sm:$0xff] %v742_v17  ;;  %v744_v18 = vld [vmem:[%s4411_s26 + $0x120] sm:$0xff]  ;;  %v746_v19 = vld [vmem:[%s4411_s26 + $0x130] sm:$0xff] }
  0x2a   : > { %v748_v20 = vld [vmem:[%s4411_s26 + $0x140] sm:$0xff]  ;;  %745 = vst [vmem:[%s4416_s28 + $0x90] sm:$0xff] %v744_v18  ;;  %747 = vst [vmem:[%s4416_s28 + $0x98] sm:$0xff] %v746_v19  ;;  %v750_v21 = vld [vmem:[%s4411_s26 + $0x150] sm:$0xff] }
  0x2b   : > { %749 = vst [vmem:[%s4416_s28 + $0xa0] sm:$0xff] %v748_v20  ;;  %v752_v22 = vld [vmem:[%s4411_s26 + $0x160] sm:$0xff]  ;;  %v754_v23 = vld [vmem:[%s4411_s26 + $0x170] sm:$0xff]  ;;  %751 = vst [vmem:[%s4416_s28 + $0xa8] sm:$0xff] %v750_v21 }
  0x2c   : > { %753 = vst [vmem:[%s4416_s28 + $0xb0] sm:$0xff] %v752_v22  ;;  %755 = vst [vmem:[%s4416_s28 + $0xb8] sm:$0xff] %v754_v23  ;;  %v756_v24 = vld [vmem:[%s4411_s26 + $0x180] sm:$0xff]  ;;  %v758_v25 = vld [vmem:[%s4411_s26 + $0x190] sm:$0xff] }
  0x2d   : > { %v760_v26 = vld [vmem:[%s4411_s26 + $0x1a0] sm:$0xff]  ;;  %757 = vst [vmem:[%s4416_s28 + $0xc0] sm:$0xff] %v756_v24  ;;  %759 = vst [vmem:[%s4416_s28 + $0xc8] sm:$0xff] %v758_v25  ;;  %v762_v27 = vld [vmem:[%s4411_s26 + $0x1b0] sm:$0xff] }
  0x2e   : > { %761 = vst [vmem:[%s4416_s28 + $0xd0] sm:$0xff] %v760_v26  ;;  %v764_v28 = vld [vmem:[%s4411_s26 + $0x1c0] sm:$0xff]  ;;  %v766_v29 = vld [vmem:[%s4411_s26 + $0x1d0] sm:$0xff]  ;;  %763 = vst [vmem:[%s4416_s28 + $0xd8] sm:$0xff] %v762_v27 }
  0x2f   : > { %765 = vst [vmem:[%s4416_s28 + $0xe0] sm:$0xff] %v764_v28  ;;  %767 = vst [vmem:[%s4416_s28 + $0xe8] sm:$0xff] %v766_v29  ;;  %v768_v30 = vld [vmem:[%s4411_s26 + $0x1e0] sm:$0xff]  ;;  %v770_v31 = vld [vmem:[%s4411_s26 + $0x1f0] sm:$0xff] }
  0x30   : > { %v772_v32 = vld [vmem:[%s4411_s26 + $0x200] sm:$0xff]  ;;  %769 = vst [vmem:[%s4416_s28 + $0xf0] sm:$0xff] %v768_v30  ;;  %771 = vst [vmem:[%s4416_s28 + $0xf8] sm:$0xff] %v770_v31  ;;  %v774_v33 = vld [vmem:[%s4411_s26 + $0x210] sm:$0xff] }
  0x31   : > { %773 = vst [vmem:[%s4416_s28 + $0x100] sm:$0xff] %v772_v32  ;;  %v776_v34 = vld [vmem:[%s4411_s26 + $0x220] sm:$0xff]  ;;  %v778_v35 = vld [vmem:[%s4411_s26 + $0x230] sm:$0xff]  ;;  %775 = vst [vmem:[%s4416_s28 + $0x108] sm:$0xff] %v774_v33 }
  0x32   : > { %777 = vst [vmem:[%s4416_s28 + $0x110] sm:$0xff] %v776_v34  ;;  %779 = vst [vmem:[%s4416_s28 + $0x118] sm:$0xff] %v778_v35  ;;  %v780_v36 = vld [vmem:[%s4411_s26 + $0x240] sm:$0xff]  ;;  %v782_v37 = vld [vmem:[%s4411_s26 + $0x250] sm:$0xff] }
  0x33   : > { %v784_v38 = vld [vmem:[%s4411_s26 + $0x260] sm:$0xff]  ;;  %781 = vst [vmem:[%s4416_s28 + $0x120] sm:$0xff] %v780_v36  ;;  %783 = vst [vmem:[%s4416_s28 + $0x128] sm:$0xff] %v782_v37  ;;  %v786_v39 = vld [vmem:[%s4411_s26 + $0x270] sm:$0xff] }
  0x34   : > { %785 = vst [vmem:[%s4416_s28 + $0x130] sm:$0xff] %v784_v38  ;;  %v788_v40 = vld [vmem:[%s4411_s26 + $0x280] sm:$0xff]  ;;  %v790_v41 = vld [vmem:[%s4411_s26 + $0x290] sm:$0xff]  ;;  %787 = vst [vmem:[%s4416_s28 + $0x138] sm:$0xff] %v786_v39 }
  0x35   : > { %789 = vst [vmem:[%s4416_s28 + $0x140] sm:$0xff] %v788_v40  ;;  %791 = vst [vmem:[%s4416_s28 + $0x148] sm:$0xff] %v790_v41  ;;  %v792_v42 = vld [vmem:[%s4411_s26 + $0x2a0] sm:$0xff]  ;;  %v794_v43 = vld [vmem:[%s4411_s26 + $0x2b0] sm:$0xff] }
  0x36   : > { %v796_v44 = vld [vmem:[%s4411_s26 + $0x2c0] sm:$0xff]  ;;  %793 = vst [vmem:[%s4416_s28 + $0x150] sm:$0xff] %v792_v42  ;;  %795 = vst [vmem:[%s4416_s28 + $0x158] sm:$0xff] %v794_v43  ;;  %v798_v45 = vld [vmem:[%s4411_s26 + $0x2d0] sm:$0xff] }
  0x37   : > { %797 = vst [vmem:[%s4416_s28 + $0x160] sm:$0xff] %v796_v44  ;;  %v800_v46 = vld [vmem:[%s4411_s26 + $0x2e0] sm:$0xff]  ;;  %v802_v47 = vld [vmem:[%s4411_s26 + $0x2f0] sm:$0xff]  ;;  %799 = vst [vmem:[%s4416_s28 + $0x168] sm:$0xff] %v798_v45 }
  0x38   : > { %801 = vst [vmem:[%s4416_s28 + $0x170] sm:$0xff] %v800_v46  ;;  %803 = vst [vmem:[%s4416_s28 + $0x178] sm:$0xff] %v802_v47  ;;  %v804_v48 = vld [vmem:[%s4411_s26 + $0x300] sm:$0xff]  ;;  %v806_v49 = vld [vmem:[%s4411_s26 + $0x310] sm:$0xff] }
  0x39   : > { %v808_v50 = vld [vmem:[%s4411_s26 + $0x320] sm:$0xff]  ;;  %805 = vst [vmem:[%s4416_s28 + $0x180] sm:$0xff] %v804_v48  ;;  %807 = vst [vmem:[%s4416_s28 + $0x188] sm:$0xff] %v806_v49  ;;  %v810_v51 = vld [vmem:[%s4411_s26 + $0x330] sm:$0xff] }
  0x3a   : > { %809 = vst [vmem:[%s4416_s28 + $0x190] sm:$0xff] %v808_v50  ;;  %v812_v52 = vld [vmem:[%s4411_s26 + $0x340] sm:$0xff]  ;;  %v814_v53 = vld [vmem:[%s4411_s26 + $0x350] sm:$0xff]  ;;  %811 = vst [vmem:[%s4416_s28 + $0x198] sm:$0xff] %v810_v51 }
  0x3b   : > { %813 = vst [vmem:[%s4416_s28 + $0x1a0] sm:$0xff] %v812_v52  ;;  %815 = vst [vmem:[%s4416_s28 + $0x1a8] sm:$0xff] %v814_v53  ;;  %v816_v54 = vld [vmem:[%s4411_s26 + $0x360] sm:$0xff]  ;;  %v818_v55 = vld [vmem:[%s4411_s26 + $0x370] sm:$0xff] }
  0x3c   : > { %v820_v56 = vld [vmem:[%s4411_s26 + $0x380] sm:$0xff]  ;;  %817 = vst [vmem:[%s4416_s28 + $0x1b0] sm:$0xff] %v816_v54  ;;  %819 = vst [vmem:[%s4416_s28 + $0x1b8] sm:$0xff] %v818_v55  ;;  %v822_v57 = vld [vmem:[%s4411_s26 + $0x390] sm:$0xff] }
  0x3d   : > { %821 = vst [vmem:[%s4416_s28 + $0x1c0] sm:$0xff] %v820_v56  ;;  %v824_v58 = vld [vmem:[%s4411_s26 + $0x3a0] sm:$0xff]  ;;  %v826_v59 = vld [vmem:[%s4411_s26 + $0x3b0] sm:$0xff]  ;;  %823 = vst [vmem:[%s4416_s28 + $0x1c8] sm:$0xff] %v822_v57 }
  0x3e   : > { %825 = vst [vmem:[%s4416_s28 + $0x1d0] sm:$0xff] %v824_v58  ;;  %827 = vst [vmem:[%s4416_s28 + $0x1d8] sm:$0xff] %v826_v59  ;;  %v828_v60 = vld [vmem:[%s4411_s26 + $0x3c0] sm:$0xff]  ;;  %v830_v61 = vld [vmem:[%s4411_s26 + $0x3d0] sm:$0xff] }
  0x3f   : > { %v832_v62 = vld [vmem:[%s4411_s26 + $0x3e0] sm:$0xff]  ;;  %829 = vst [vmem:[%s4416_s28 + $0x1e0] sm:$0xff] %v828_v60  ;;  %831 = vst [vmem:[%s4416_s28 + $0x1e8] sm:$0xff] %v830_v61  ;;  %v834_v63 = vld [vmem:[%s4411_s26 + $0x3f0] sm:$0xff] }
  0x40   : > { %833 = vst [vmem:[%s4416_s28 + $0x1f0] sm:$0xff] %v832_v62  ;;  %v836_v0 = vld [vmem:[%s4411_s26 + $0x400] sm:$0xff]  ;;  %v838_v1 = vld [vmem:[%s4411_s26 + $0x410] sm:$0xff]  ;;  %835 = vst [vmem:[%s4416_s28 + $0x1f8] sm:$0xff] %v834_v63 }
  0x41   : > { %837 = vst [vmem:[%s4416_s28 + $0x200] sm:$0xff] %v836_v0  ;;  %839 = vst [vmem:[%s4416_s28 + $0x208] sm:$0xff] %v838_v1  ;;  %v840_v2 = vld [vmem:[%s4411_s26 + $0x420] sm:$0xff]  ;;  %v842_v3 = vld [vmem:[%s4411_s26 + $0x430] sm:$0xff] }
  0x42   : > { %v844_v4 = vld [vmem:[%s4411_s26 + $0x440] sm:$0xff]  ;;  %841 = vst [vmem:[%s4416_s28 + $0x210] sm:$0xff] %v840_v2  ;;  %843 = vst [vmem:[%s4416_s28 + $0x218] sm:$0xff] %v842_v3  ;;  %v846_v5 = vld [vmem:[%s4411_s26 + $0x450] sm:$0xff] }
  0x43   : > { %845 = vst [vmem:[%s4416_s28 + $0x220] sm:$0xff] %v844_v4  ;;  %v848_v6 = vld [vmem:[%s4411_s26 + $0x460] sm:$0xff]  ;;  %v850_v7 = vld [vmem:[%s4411_s26 + $0x470] sm:$0xff]  ;;  %847 = vst [vmem:[%s4416_s28 + $0x228] sm:$0xff] %v846_v5 }
  0x44   : > { %849 = vst [vmem:[%s4416_s28 + $0x230] sm:$0xff] %v848_v6  ;;  %851 = vst [vmem:[%s4416_s28 + $0x238] sm:$0xff] %v850_v7  ;;  %v852_v8 = vld [vmem:[%s4411_s26 + $0x480] sm:$0xff]  ;;  %v854_v9 = vld [vmem:[%s4411_s26 + $0x490] sm:$0xff] }
  0x45   : > { %v856_v10 = vld [vmem:[%s4411_s26 + $0x4a0] sm:$0xff]  ;;  %853 = vst [vmem:[%s4416_s28 + $0x240] sm:$0xff] %v852_v8  ;;  %855 = vst [vmem:[%s4416_s28 + $0x248] sm:$0xff] %v854_v9  ;;  %v858_v11 = vld [vmem:[%s4411_s26 + $0x4b0] sm:$0xff] }
  0x46   : > { %857 = vst [vmem:[%s4416_s28 + $0x250] sm:$0xff] %v856_v10  ;;  %v860_v12 = vld [vmem:[%s4411_s26 + $0x4c0] sm:$0xff]  ;;  %v862_v13 = vld [vmem:[%s4411_s26 + $0x4d0] sm:$0xff]  ;;  %859 = vst [vmem:[%s4416_s28 + $0x258] sm:$0xff] %v858_v11 }
  0x47   : > { %861 = vst [vmem:[%s4416_s28 + $0x260] sm:$0xff] %v860_v12  ;;  %863 = vst [vmem:[%s4416_s28 + $0x268] sm:$0xff] %v862_v13  ;;  %v864_v14 = vld [vmem:[%s4411_s26 + $0x4e0] sm:$0xff]  ;;  %v866_v15 = vld [vmem:[%s4411_s26 + $0x4f0] sm:$0xff] }
  0x48   : > { %v868_v16 = vld [vmem:[%s4411_s26 + $0x500] sm:$0xff]  ;;  %865 = vst [vmem:[%s4416_s28 + $0x270] sm:$0xff] %v864_v14  ;;  %867 = vst [vmem:[%s4416_s28 + $0x278] sm:$0xff] %v866_v15  ;;  %v870_v17 = vld [vmem:[%s4411_s26 + $0x510] sm:$0xff] }
  0x49   : > { %869 = vst [vmem:[%s4416_s28 + $0x280] sm:$0xff] %v868_v16  ;;  %v872_v18 = vld [vmem:[%s4411_s26 + $0x520] sm:$0xff]  ;;  %v874_v19 = vld [vmem:[%s4411_s26 + $0x530] sm:$0xff]  ;;  %871 = vst [vmem:[%s4416_s28 + $0x288] sm:$0xff] %v870_v17 }
  0x4a   : > { %873 = vst [vmem:[%s4416_s28 + $0x290] sm:$0xff] %v872_v18  ;;  %875 = vst [vmem:[%s4416_s28 + $0x298] sm:$0xff] %v874_v19  ;;  %v876_v20 = vld [vmem:[%s4411_s26 + $0x540] sm:$0xff]  ;;  %v878_v21 = vld [vmem:[%s4411_s26 + $0x550] sm:$0xff] }
  0x4b   : > { %v880_v22 = vld [vmem:[%s4411_s26 + $0x560] sm:$0xff]  ;;  %877 = vst [vmem:[%s4416_s28 + $0x2a0] sm:$0xff] %v876_v20  ;;  %879 = vst [vmem:[%s4416_s28 + $0x2a8] sm:$0xff] %v878_v21  ;;  %v882_v23 = vld [vmem:[%s4411_s26 + $0x570] sm:$0xff] }
  0x4c   : > { %881 = vst [vmem:[%s4416_s28 + $0x2b0] sm:$0xff] %v880_v22  ;;  %v884_v24 = vld [vmem:[%s4411_s26 + $0x580] sm:$0xff]  ;;  %v886_v25 = vld [vmem:[%s4411_s26 + $0x590] sm:$0xff]  ;;  %883 = vst [vmem:[%s4416_s28 + $0x2b8] sm:$0xff] %v882_v23 }
  0x4d   : > { %885 = vst [vmem:[%s4416_s28 + $0x2c0] sm:$0xff] %v884_v24  ;;  %887 = vst [vmem:[%s4416_s28 + $0x2c8] sm:$0xff] %v886_v25  ;;  %v888_v26 = vld [vmem:[%s4411_s26 + $0x5a0] sm:$0xff]  ;;  %v890_v27 = vld [vmem:[%s4411_s26 + $0x5b0] sm:$0xff] }
  0x4e   : > { %v892_v28 = vld [vmem:[%s4411_s26 + $0x5c0] sm:$0xff]  ;;  %889 = vst [vmem:[%s4416_s28 + $0x2d0] sm:$0xff] %v888_v26  ;;  %891 = vst [vmem:[%s4416_s28 + $0x2d8] sm:$0xff] %v890_v27  ;;  %v894_v29 = vld [vmem:[%s4411_s26 + $0x5d0] sm:$0xff] }
  0x4f   : > { %893 = vst [vmem:[%s4416_s28 + $0x2e0] sm:$0xff] %v892_v28  ;;  %v896_v30 = vld [vmem:[%s4411_s26 + $0x5e0] sm:$0xff]  ;;  %v898_v31 = vld [vmem:[%s4411_s26 + $0x5f0] sm:$0xff]  ;;  %895 = vst [vmem:[%s4416_s28 + $0x2e8] sm:$0xff] %v894_v29 }
  0x50   : > { %897 = vst [vmem:[%s4416_s28 + $0x2f0] sm:$0xff] %v896_v30  ;;  %899 = vst [vmem:[%s4416_s28 + $0x2f8] sm:$0xff] %v898_v31  ;;  %v900_v32 = vld [vmem:[%s4411_s26 + $0x600] sm:$0xff]  ;;  %v902_v33 = vld [vmem:[%s4411_s26 + $0x610] sm:$0xff] }
  0x51   : > { %v904_v34 = vld [vmem:[%s4411_s26 + $0x620] sm:$0xff]  ;;  %901 = vst [vmem:[%s4416_s28 + $0x300] sm:$0xff] %v900_v32  ;;  %903 = vst [vmem:[%s4416_s28 + $0x308] sm:$0xff] %v902_v33  ;;  %v906_v35 = vld [vmem:[%s4411_s26 + $0x630] sm:$0xff] }
  0x52   : > { %905 = vst [vmem:[%s4416_s28 + $0x310] sm:$0xff] %v904_v34  ;;  %v908_v36 = vld [vmem:[%s4411_s26 + $0x640] sm:$0xff]  ;;  %v910_v37 = vld [vmem:[%s4411_s26 + $0x650] sm:$0xff]  ;;  %907 = vst [vmem:[%s4416_s28 + $0x318] sm:$0xff] %v906_v35 }
  0x53   : > { %909 = vst [vmem:[%s4416_s28 + $0x320] sm:$0xff] %v908_v36  ;;  %911 = vst [vmem:[%s4416_s28 + $0x328] sm:$0xff] %v910_v37  ;;  %v912_v38 = vld [vmem:[%s4411_s26 + $0x660] sm:$0xff]  ;;  %v914_v39 = vld [vmem:[%s4411_s26 + $0x670] sm:$0xff] }
  0x54   : > { %v916_v40 = vld [vmem:[%s4411_s26 + $0x680] sm:$0xff]  ;;  %913 = vst [vmem:[%s4416_s28 + $0x330] sm:$0xff] %v912_v38  ;;  %915 = vst [vmem:[%s4416_s28 + $0x338] sm:$0xff] %v914_v39  ;;  %v918_v41 = vld [vmem:[%s4411_s26 + $0x690] sm:$0xff] }
  0x55   : > { %917 = vst [vmem:[%s4416_s28 + $0x340] sm:$0xff] %v916_v40  ;;  %v920_v42 = vld [vmem:[%s4411_s26 + $0x6a0] sm:$0xff]  ;;  %v922_v43 = vld [vmem:[%s4411_s26 + $0x6b0] sm:$0xff]  ;;  %919 = vst [vmem:[%s4416_s28 + $0x348] sm:$0xff] %v918_v41 }
  0x56   : > { %921 = vst [vmem:[%s4416_s28 + $0x350] sm:$0xff] %v920_v42  ;;  %923 = vst [vmem:[%s4416_s28 + $0x358] sm:$0xff] %v922_v43  ;;  %v924_v44 = vld [vmem:[%s4411_s26 + $0x6c0] sm:$0xff]  ;;  %v926_v45 = vld [vmem:[%s4411_s26 + $0x6d0] sm:$0xff] }
  0x57   : > { %v928_v46 = vld [vmem:[%s4411_s26 + $0x6e0] sm:$0xff]  ;;  %925 = vst [vmem:[%s4416_s28 + $0x360] sm:$0xff] %v924_v44  ;;  %927 = vst [vmem:[%s4416_s28 + $0x368] sm:$0xff] %v926_v45  ;;  %v930_v47 = vld [vmem:[%s4411_s26 + $0x6f0] sm:$0xff] }
  0x58   : > { %929 = vst [vmem:[%s4416_s28 + $0x370] sm:$0xff] %v928_v46  ;;  %v932_v48 = vld [vmem:[%s4411_s26 + $0x700] sm:$0xff]  ;;  %v934_v49 = vld [vmem:[%s4411_s26 + $0x710] sm:$0xff]  ;;  %931 = vst [vmem:[%s4416_s28 + $0x378] sm:$0xff] %v930_v47 }
  0x59   : > { %933 = vst [vmem:[%s4416_s28 + $0x380] sm:$0xff] %v932_v48  ;;  %935 = vst [vmem:[%s4416_s28 + $0x388] sm:$0xff] %v934_v49  ;;  %v936_v50 = vld [vmem:[%s4411_s26 + $0x720] sm:$0xff]  ;;  %v938_v51 = vld [vmem:[%s4411_s26 + $0x730] sm:$0xff] }
  0x5a   : > { %v940_v52 = vld [vmem:[%s4411_s26 + $0x740] sm:$0xff]  ;;  %937 = vst [vmem:[%s4416_s28 + $0x390] sm:$0xff] %v936_v50  ;;  %939 = vst [vmem:[%s4416_s28 + $0x398] sm:$0xff] %v938_v51  ;;  %v942_v53 = vld [vmem:[%s4411_s26 + $0x750] sm:$0xff] }
  0x5b   : > { %941 = vst [vmem:[%s4416_s28 + $0x3a0] sm:$0xff] %v940_v52  ;;  %v944_v54 = vld [vmem:[%s4411_s26 + $0x760] sm:$0xff]  ;;  %v946_v55 = vld [vmem:[%s4411_s26 + $0x770] sm:$0xff]  ;;  %943 = vst [vmem:[%s4416_s28 + $0x3a8] sm:$0xff] %v942_v53 }
  0x5c   : > { %945 = vst [vmem:[%s4416_s28 + $0x3b0] sm:$0xff] %v944_v54  ;;  %947 = vst [vmem:[%s4416_s28 + $0x3b8] sm:$0xff] %v946_v55  ;;  %v948_v56 = vld [vmem:[%s4411_s26 + $0x780] sm:$0xff]  ;;  %v950_v57 = vld [vmem:[%s4411_s26 + $0x790] sm:$0xff] }
  0x5d   : > { %v952_v58 = vld [vmem:[%s4411_s26 + $0x7a0] sm:$0xff]  ;;  %949 = vst [vmem:[%s4416_s28 + $0x3c0] sm:$0xff] %v948_v56  ;;  %951 = vst [vmem:[%s4416_s28 + $0x3c8] sm:$0xff] %v950_v57  ;;  %v954_v59 = vld [vmem:[%s4411_s26 + $0x7b0] sm:$0xff] }
  0x5e   : > { %953 = vst [vmem:[%s4416_s28 + $0x3d0] sm:$0xff] %v952_v58  ;;  %v956_v60 = vld [vmem:[%s4411_s26 + $0x7c0] sm:$0xff]  ;;  %v958_v61 = vld [vmem:[%s4411_s26 + $0x7d0] sm:$0xff]  ;;  %955 = vst [vmem:[%s4416_s28 + $0x3d8] sm:$0xff] %v954_v59 }
  0x5f   : > { %957 = vst [vmem:[%s4416_s28 + $0x3e0] sm:$0xff] %v956_v60  ;;  %959 = vst [vmem:[%s4416_s28 + $0x3e8] sm:$0xff] %v958_v61  ;;  %v960_v62 = vld [vmem:[%s4411_s26 + $0x7e0] sm:$0xff]  ;;  %v962_v63 = vld [vmem:[%s4411_s26 + $0x7f0] sm:$0xff] }
  0x60   : > { %v964_v0 = vld [vmem:[%s4411_s26 + $0x800] sm:$0xff]  ;;  %961 = vst [vmem:[%s4416_s28 + $0x3f0] sm:$0xff] %v960_v62  ;;  %963 = vst [vmem:[%s4416_s28 + $0x3f8] sm:$0xff] %v962_v63  ;;  %v966_v1 = vld [vmem:[%s4411_s26 + $0x810] sm:$0xff] }
  0x61   : > { %965 = vst [vmem:[%s4416_s28 + $0x400] sm:$0xff] %v964_v0  ;;  %v968_v2 = vld [vmem:[%s4411_s26 + $0x820] sm:$0xff]  ;;  %v970_v3 = vld [vmem:[%s4411_s26 + $0x830] sm:$0xff]  ;;  %967 = vst [vmem:[%s4416_s28 + $0x408] sm:$0xff] %v966_v1 }
  0x62   : > { %969 = vst [vmem:[%s4416_s28 + $0x410] sm:$0xff] %v968_v2  ;;  %971 = vst [vmem:[%s4416_s28 + $0x418] sm:$0xff] %v970_v3  ;;  %v972_v4 = vld [vmem:[%s4411_s26 + $0x840] sm:$0xff]  ;;  %v974_v5 = vld [vmem:[%s4411_s26 + $0x850] sm:$0xff] }
  0x63   : > { %v976_v6 = vld [vmem:[%s4411_s26 + $0x860] sm:$0xff]  ;;  %973 = vst [vmem:[%s4416_s28 + $0x420] sm:$0xff] %v972_v4  ;;  %975 = vst [vmem:[%s4416_s28 + $0x428] sm:$0xff] %v974_v5  ;;  %v978_v7 = vld [vmem:[%s4411_s26 + $0x870] sm:$0xff] }
  0x64   : > { %977 = vst [vmem:[%s4416_s28 + $0x430] sm:$0xff] %v976_v6  ;;  %v980_v8 = vld [vmem:[%s4411_s26 + $0x880] sm:$0xff]  ;;  %v982_v9 = vld [vmem:[%s4411_s26 + $0x890] sm:$0xff]  ;;  %979 = vst [vmem:[%s4416_s28 + $0x438] sm:$0xff] %v978_v7 }
  0x65   : > { %981 = vst [vmem:[%s4416_s28 + $0x440] sm:$0xff] %v980_v8  ;;  %983 = vst [vmem:[%s4416_s28 + $0x448] sm:$0xff] %v982_v9  ;;  %v984_v10 = vld [vmem:[%s4411_s26 + $0x8a0] sm:$0xff]  ;;  %v986_v11 = vld [vmem:[%s4411_s26 + $0x8b0] sm:$0xff] }
  0x66   : > { %v988_v12 = vld [vmem:[%s4411_s26 + $0x8c0] sm:$0xff]  ;;  %985 = vst [vmem:[%s4416_s28 + $0x450] sm:$0xff] %v984_v10  ;;  %987 = vst [vmem:[%s4416_s28 + $0x458] sm:$0xff] %v986_v11  ;;  %v990_v13 = vld [vmem:[%s4411_s26 + $0x8d0] sm:$0xff] }
  0x67   : > { %989 = vst [vmem:[%s4416_s28 + $0x460] sm:$0xff] %v988_v12  ;;  %v992_v14 = vld [vmem:[%s4411_s26 + $0x8e0] sm:$0xff]  ;;  %v994_v15 = vld [vmem:[%s4411_s26 + $0x8f0] sm:$0xff]  ;;  %991 = vst [vmem:[%s4416_s28 + $0x468] sm:$0xff] %v990_v13 }
  0x68   : > { %993 = vst [vmem:[%s4416_s28 + $0x470] sm:$0xff] %v992_v14  ;;  %995 = vst [vmem:[%s4416_s28 + $0x478] sm:$0xff] %v994_v15  ;;  %v996_v16 = vld [vmem:[%s4411_s26 + $0x900] sm:$0xff]  ;;  %v998_v17 = vld [vmem:[%s4411_s26 + $0x910] sm:$0xff] }
  0x69   : > { %v1000_v18 = vld [vmem:[%s4411_s26 + $0x920] sm:$0xff]  ;;  %997 = vst [vmem:[%s4416_s28 + $0x480] sm:$0xff] %v996_v16  ;;  %999 = vst [vmem:[%s4416_s28 + $0x488] sm:$0xff] %v998_v17  ;;  %v1002_v19 = vld [vmem:[%s4411_s26 + $0x930] sm:$0xff] }
  0x6a   : > { %1001 = vst [vmem:[%s4416_s28 + $0x490] sm:$0xff] %v1000_v18  ;;  %v1004_v20 = vld [vmem:[%s4411_s26 + $0x940] sm:$0xff]  ;;  %v1006_v21 = vld [vmem:[%s4411_s26 + $0x950] sm:$0xff]  ;;  %1003 = vst [vmem:[%s4416_s28 + $0x498] sm:$0xff] %v1002_v19 }
  0x6b   : > { %1005 = vst [vmem:[%s4416_s28 + $0x4a0] sm:$0xff] %v1004_v20  ;;  %1007 = vst [vmem:[%s4416_s28 + $0x4a8] sm:$0xff] %v1006_v21  ;;  %v1008_v22 = vld [vmem:[%s4411_s26 + $0x960] sm:$0xff]  ;;  %v1010_v23 = vld [vmem:[%s4411_s26 + $0x970] sm:$0xff] }
  0x6c   : > { %v1012_v24 = vld [vmem:[%s4411_s26 + $0x980] sm:$0xff]  ;;  %1009 = vst [vmem:[%s4416_s28 + $0x4b0] sm:$0xff] %v1008_v22  ;;  %1011 = vst [vmem:[%s4416_s28 + $0x4b8] sm:$0xff] %v1010_v23  ;;  %v1014_v25 = vld [vmem:[%s4411_s26 + $0x990] sm:$0xff] }
  0x6d   : > { %1013 = vst [vmem:[%s4416_s28 + $0x4c0] sm:$0xff] %v1012_v24  ;;  %v1016_v26 = vld [vmem:[%s4411_s26 + $0x9a0] sm:$0xff]  ;;  %v1018_v27 = vld [vmem:[%s4411_s26 + $0x9b0] sm:$0xff]  ;;  %1015 = vst [vmem:[%s4416_s28 + $0x4c8] sm:$0xff] %v1014_v25 }
  0x6e   : > { %1017 = vst [vmem:[%s4416_s28 + $0x4d0] sm:$0xff] %v1016_v26  ;;  %1019 = vst [vmem:[%s4416_s28 + $0x4d8] sm:$0xff] %v1018_v27  ;;  %v1020_v28 = vld [vmem:[%s4411_s26 + $0x9c0] sm:$0xff]  ;;  %v1022_v29 = vld [vmem:[%s4411_s26 + $0x9d0] sm:$0xff] }
  0x6f   : > { %v1024_v30 = vld [vmem:[%s4411_s26 + $0x9e0] sm:$0xff]  ;;  %1021 = vst [vmem:[%s4416_s28 + $0x4e0] sm:$0xff] %v1020_v28  ;;  %1023 = vst [vmem:[%s4416_s28 + $0x4e8] sm:$0xff] %v1022_v29  ;;  %v1026_v31 = vld [vmem:[%s4411_s26 + $0x9f0] sm:$0xff] }
  0x70   : > { %1025 = vst [vmem:[%s4416_s28 + $0x4f0] sm:$0xff] %v1024_v30  ;;  %v1028_v32 = vld [vmem:[%s4411_s26 + $0xa00] sm:$0xff]  ;;  %v1030_v33 = vld [vmem:[%s4411_s26 + $0xa10] sm:$0xff]  ;;  %1027 = vst [vmem:[%s4416_s28 + $0x4f8] sm:$0xff] %v1026_v31 }
  0x71   : > { %1029 = vst [vmem:[%s4416_s28 + $0x500] sm:$0xff] %v1028_v32  ;;  %1031 = vst [vmem:[%s4416_s28 + $0x508] sm:$0xff] %v1030_v33  ;;  %v1032_v34 = vld [vmem:[%s4411_s26 + $0xa20] sm:$0xff]  ;;  %v1034_v35 = vld [vmem:[%s4411_s26 + $0xa30] sm:$0xff] }
  0x72   : > { %v1036_v36 = vld [vmem:[%s4411_s26 + $0xa40] sm:$0xff]  ;;  %1033 = vst [vmem:[%s4416_s28 + $0x510] sm:$0xff] %v1032_v34  ;;  %1035 = vst [vmem:[%s4416_s28 + $0x518] sm:$0xff] %v1034_v35  ;;  %v1038_v37 = vld [vmem:[%s4411_s26 + $0xa50] sm:$0xff] }
  0x73   : > { %1037 = vst [vmem:[%s4416_s28 + $0x520] sm:$0xff] %v1036_v36  ;;  %v1040_v38 = vld [vmem:[%s4411_s26 + $0xa60] sm:$0xff]  ;;  %v1042_v39 = vld [vmem:[%s4411_s26 + $0xa70] sm:$0xff]  ;;  %1039 = vst [vmem:[%s4416_s28 + $0x528] sm:$0xff] %v1038_v37 }
  0x74   : > { %1041 = vst [vmem:[%s4416_s28 + $0x530] sm:$0xff] %v1040_v38  ;;  %1043 = vst [vmem:[%s4416_s28 + $0x538] sm:$0xff] %v1042_v39  ;;  %v1044_v40 = vld [vmem:[%s4411_s26 + $0xa80] sm:$0xff]  ;;  %v1046_v41 = vld [vmem:[%s4411_s26 + $0xa90] sm:$0xff] }
  0x75   : > { %v1048_v42 = vld [vmem:[%s4411_s26 + $0xaa0] sm:$0xff]  ;;  %1045 = vst [vmem:[%s4416_s28 + $0x540] sm:$0xff] %v1044_v40  ;;  %1047 = vst [vmem:[%s4416_s28 + $0x548] sm:$0xff] %v1046_v41  ;;  %v1050_v43 = vld [vmem:[%s4411_s26 + $0xab0] sm:$0xff] }
  0x76   : > { %1049 = vst [vmem:[%s4416_s28 + $0x550] sm:$0xff] %v1048_v42  ;;  %v1052_v44 = vld [vmem:[%s4411_s26 + $0xac0] sm:$0xff]  ;;  %v1054_v45 = vld [vmem:[%s4411_s26 + $0xad0] sm:$0xff]  ;;  %1051 = vst [vmem:[%s4416_s28 + $0x558] sm:$0xff] %v1050_v43 }
  0x77   : > { %1053 = vst [vmem:[%s4416_s28 + $0x560] sm:$0xff] %v1052_v44  ;;  %1055 = vst [vmem:[%s4416_s28 + $0x568] sm:$0xff] %v1054_v45  ;;  %v1056_v46 = vld [vmem:[%s4411_s26 + $0xae0] sm:$0xff]  ;;  %v1058_v47 = vld [vmem:[%s4411_s26 + $0xaf0] sm:$0xff] }
  0x78   : > { %v1060_v48 = vld [vmem:[%s4411_s26 + $0xb00] sm:$0xff]  ;;  %1057 = vst [vmem:[%s4416_s28 + $0x570] sm:$0xff] %v1056_v46  ;;  %1059 = vst [vmem:[%s4416_s28 + $0x578] sm:$0xff] %v1058_v47  ;;  %v1062_v49 = vld [vmem:[%s4411_s26 + $0xb10] sm:$0xff] }
  0x79   : > { %1061 = vst [vmem:[%s4416_s28 + $0x580] sm:$0xff] %v1060_v48  ;;  %v1064_v50 = vld [vmem:[%s4411_s26 + $0xb20] sm:$0xff]  ;;  %v1066_v51 = vld [vmem:[%s4411_s26 + $0xb30] sm:$0xff]  ;;  %1063 = vst [vmem:[%s4416_s28 + $0x588] sm:$0xff] %v1062_v49 }
  0x7a   : > { %1065 = vst [vmem:[%s4416_s28 + $0x590] sm:$0xff] %v1064_v50  ;;  %1067 = vst [vmem:[%s4416_s28 + $0x598] sm:$0xff] %v1066_v51  ;;  %v1068_v52 = vld [vmem:[%s4411_s26 + $0xb40] sm:$0xff]  ;;  %v1070_v53 = vld [vmem:[%s4411_s26 + $0xb50] sm:$0xff] }
  0x7b   : > { %v1072_v54 = vld [vmem:[%s4411_s26 + $0xb60] sm:$0xff]  ;;  %1069 = vst [vmem:[%s4416_s28 + $0x5a0] sm:$0xff] %v1068_v52  ;;  %1071 = vst [vmem:[%s4416_s28 + $0x5a8] sm:$0xff] %v1070_v53  ;;  %v1074_v55 = vld [vmem:[%s4411_s26 + $0xb70] sm:$0xff] }
  0x7c   : > { %1073 = vst [vmem:[%s4416_s28 + $0x5b0] sm:$0xff] %v1072_v54  ;;  %v1076_v56 = vld [vmem:[%s4411_s26 + $0xb80] sm:$0xff]  ;;  %v1078_v57 = vld [vmem:[%s4411_s26 + $0xb90] sm:$0xff]  ;;  %1075 = vst [vmem:[%s4416_s28 + $0x5b8] sm:$0xff] %v1074_v55 }
  0x7d   : > { %1077 = vst [vmem:[%s4416_s28 + $0x5c0] sm:$0xff] %v1076_v56  ;;  %1079 = vst [vmem:[%s4416_s28 + $0x5c8] sm:$0xff] %v1078_v57  ;;  %v1080_v58 = vld [vmem:[%s4411_s26 + $0xba0] sm:$0xff]  ;;  %v1082_v59 = vld [vmem:[%s4411_s26 + $0xbb0] sm:$0xff] }
  0x7e   : > { %v1084_v60 = vld [vmem:[%s4411_s26 + $0xbc0] sm:$0xff]  ;;  %1081 = vst [vmem:[%s4416_s28 + $0x5d0] sm:$0xff] %v1080_v58  ;;  %1083 = vst [vmem:[%s4416_s28 + $0x5d8] sm:$0xff] %v1082_v59  ;;  %v1086_v61 = vld [vmem:[%s4411_s26 + $0xbd0] sm:$0xff] }
  0x7f   : > { %1085 = vst [vmem:[%s4416_s28 + $0x5e0] sm:$0xff] %v1084_v60  ;;  %v1088_v62 = vld [vmem:[%s4411_s26 + $0xbe0] sm:$0xff]  ;;  %v1090_v63 = vld [vmem:[%s4411_s26 + $0xbf0] sm:$0xff]  ;;  %1087 = vst [vmem:[%s4416_s28 + $0x5e8] sm:$0xff] %v1086_v61 }
  0x80   : > { %1089 = vst [vmem:[%s4416_s28 + $0x5f0] sm:$0xff] %v1088_v62  ;;  %1091 = vst [vmem:[%s4416_s28 + $0x5f8] sm:$0xff] %v1090_v63  ;;  %v1092_v0 = vld [vmem:[%s4411_s26 + $0xc00] sm:$0xff]  ;;  %v1094_v1 = vld [vmem:[%s4411_s26 + $0xc10] sm:$0xff] }
  0x81   : > { %v1096_v2 = vld [vmem:[%s4411_s26 + $0xc20] sm:$0xff]  ;;  %1093 = vst [vmem:[%s4416_s28 + $0x600] sm:$0xff] %v1092_v0  ;;  %1095 = vst [vmem:[%s4416_s28 + $0x608] sm:$0xff] %v1094_v1  ;;  %v1098_v3 = vld [vmem:[%s4411_s26 + $0xc30] sm:$0xff] }
  0x82   : > { %1097 = vst [vmem:[%s4416_s28 + $0x610] sm:$0xff] %v1096_v2  ;;  %v1100_v4 = vld [vmem:[%s4411_s26 + $0xc40] sm:$0xff]  ;;  %v1102_v5 = vld [vmem:[%s4411_s26 + $0xc50] sm:$0xff]  ;;  %1099 = vst [vmem:[%s4416_s28 + $0x618] sm:$0xff] %v1098_v3 }
  0x83   : > { %1101 = vst [vmem:[%s4416_s28 + $0x620] sm:$0xff] %v1100_v4  ;;  %1103 = vst [vmem:[%s4416_s28 + $0x628] sm:$0xff] %v1102_v5  ;;  %v1104_v6 = vld [vmem:[%s4411_s26 + $0xc60] sm:$0xff]  ;;  %v1106_v7 = vld [vmem:[%s4411_s26 + $0xc70] sm:$0xff] }
  0x84   : > { %v1108_v8 = vld [vmem:[%s4411_s26 + $0xc80] sm:$0xff]  ;;  %1105 = vst [vmem:[%s4416_s28 + $0x630] sm:$0xff] %v1104_v6  ;;  %1107 = vst [vmem:[%s4416_s28 + $0x638] sm:$0xff] %v1106_v7  ;;  %v1110_v9 = vld [vmem:[%s4411_s26 + $0xc90] sm:$0xff] }
  0x85   : > { %1109 = vst [vmem:[%s4416_s28 + $0x640] sm:$0xff] %v1108_v8  ;;  %v1112_v10 = vld [vmem:[%s4411_s26 + $0xca0] sm:$0xff]  ;;  %v1114_v11 = vld [vmem:[%s4411_s26 + $0xcb0] sm:$0xff]  ;;  %1111 = vst [vmem:[%s4416_s28 + $0x648] sm:$0xff] %v1110_v9 }
  0x86   : > { %1113 = vst [vmem:[%s4416_s28 + $0x650] sm:$0xff] %v1112_v10  ;;  %1115 = vst [vmem:[%s4416_s28 + $0x658] sm:$0xff] %v1114_v11  ;;  %v1116_v12 = vld [vmem:[%s4411_s26 + $0xcc0] sm:$0xff]  ;;  %v1118_v13 = vld [vmem:[%s4411_s26 + $0xcd0] sm:$0xff] }
  0x87   : > { %v1120_v14 = vld [vmem:[%s4411_s26 + $0xce0] sm:$0xff]  ;;  %1117 = vst [vmem:[%s4416_s28 + $0x660] sm:$0xff] %v1116_v12  ;;  %1119 = vst [vmem:[%s4416_s28 + $0x668] sm:$0xff] %v1118_v13  ;;  %v1122_v15 = vld [vmem:[%s4411_s26 + $0xcf0] sm:$0xff] }
  0x88   : > { %1121 = vst [vmem:[%s4416_s28 + $0x670] sm:$0xff] %v1120_v14  ;;  %v1124_v16 = vld [vmem:[%s4411_s26 + $0xd00] sm:$0xff]  ;;  %v1126_v17 = vld [vmem:[%s4411_s26 + $0xd10] sm:$0xff]  ;;  %1123 = vst [vmem:[%s4416_s28 + $0x678] sm:$0xff] %v1122_v15 }
  0x89   : > { %1125 = vst [vmem:[%s4416_s28 + $0x680] sm:$0xff] %v1124_v16  ;;  %1127 = vst [vmem:[%s4416_s28 + $0x688] sm:$0xff] %v1126_v17  ;;  %v1128_v18 = vld [vmem:[%s4411_s26 + $0xd20] sm:$0xff]  ;;  %v1130_v19 = vld [vmem:[%s4411_s26 + $0xd30] sm:$0xff] }
  0x8a   : > { %v1132_v20 = vld [vmem:[%s4411_s26 + $0xd40] sm:$0xff]  ;;  %1129 = vst [vmem:[%s4416_s28 + $0x690] sm:$0xff] %v1128_v18  ;;  %1131 = vst [vmem:[%s4416_s28 + $0x698] sm:$0xff] %v1130_v19  ;;  %v1134_v21 = vld [vmem:[%s4411_s26 + $0xd50] sm:$0xff] }
  0x8b   : > { %1133 = vst [vmem:[%s4416_s28 + $0x6a0] sm:$0xff] %v1132_v20  ;;  %v1136_v22 = vld [vmem:[%s4411_s26 + $0xd60] sm:$0xff]  ;;  %v1138_v23 = vld [vmem:[%s4411_s26 + $0xd70] sm:$0xff]  ;;  %1135 = vst [vmem:[%s4416_s28 + $0x6a8] sm:$0xff] %v1134_v21 }
  0x8c   : > { %1137 = vst [vmem:[%s4416_s28 + $0x6b0] sm:$0xff] %v1136_v22  ;;  %1139 = vst [vmem:[%s4416_s28 + $0x6b8] sm:$0xff] %v1138_v23  ;;  %v1140_v24 = vld [vmem:[%s4411_s26 + $0xd80] sm:$0xff]  ;;  %v1142_v25 = vld [vmem:[%s4411_s26 + $0xd90] sm:$0xff] }
  0x8d   : > { %v1144_v26 = vld [vmem:[%s4411_s26 + $0xda0] sm:$0xff]  ;;  %1141 = vst [vmem:[%s4416_s28 + $0x6c0] sm:$0xff] %v1140_v24  ;;  %1143 = vst [vmem:[%s4416_s28 + $0x6c8] sm:$0xff] %v1142_v25  ;;  %v1146_v27 = vld [vmem:[%s4411_s26 + $0xdb0] sm:$0xff] }
  0x8e   : > { %1145 = vst [vmem:[%s4416_s28 + $0x6d0] sm:$0xff] %v1144_v26  ;;  %v1148_v28 = vld [vmem:[%s4411_s26 + $0xdc0] sm:$0xff]  ;;  %v1150_v29 = vld [vmem:[%s4411_s26 + $0xdd0] sm:$0xff]  ;;  %1147 = vst [vmem:[%s4416_s28 + $0x6d8] sm:$0xff] %v1146_v27 }
  0x8f   : > { %1149 = vst [vmem:[%s4416_s28 + $0x6e0] sm:$0xff] %v1148_v28  ;;  %1151 = vst [vmem:[%s4416_s28 + $0x6e8] sm:$0xff] %v1150_v29  ;;  %v1152_v30 = vld [vmem:[%s4411_s26 + $0xde0] sm:$0xff]  ;;  %v1154_v31 = vld [vmem:[%s4411_s26 + $0xdf0] sm:$0xff] }
  0x90   : > { %v1156_v32 = vld [vmem:[%s4411_s26 + $0xe00] sm:$0xff]  ;;  %1153 = vst [vmem:[%s4416_s28 + $0x6f0] sm:$0xff] %v1152_v30  ;;  %1155 = vst [vmem:[%s4416_s28 + $0x6f8] sm:$0xff] %v1154_v31  ;;  %v1158_v33 = vld [vmem:[%s4411_s26 + $0xe10] sm:$0xff] }
  0x91   : > { %1157 = vst [vmem:[%s4416_s28 + $0x700] sm:$0xff] %v1156_v32  ;;  %v1160_v34 = vld [vmem:[%s4411_s26 + $0xe20] sm:$0xff]  ;;  %v1162_v35 = vld [vmem:[%s4411_s26 + $0xe30] sm:$0xff]  ;;  %1159 = vst [vmem:[%s4416_s28 + $0x708] sm:$0xff] %v1158_v33 }
  0x92   : > { %1161 = vst [vmem:[%s4416_s28 + $0x710] sm:$0xff] %v1160_v34  ;;  %1163 = vst [vmem:[%s4416_s28 + $0x718] sm:$0xff] %v1162_v35  ;;  %v1164_v36 = vld [vmem:[%s4411_s26 + $0xe40] sm:$0xff]  ;;  %v1166_v37 = vld [vmem:[%s4411_s26 + $0xe50] sm:$0xff] }
  0x93   : > { %v1168_v38 = vld [vmem:[%s4411_s26 + $0xe60] sm:$0xff]  ;;  %1165 = vst [vmem:[%s4416_s28 + $0x720] sm:$0xff] %v1164_v36  ;;  %1167 = vst [vmem:[%s4416_s28 + $0x728] sm:$0xff] %v1166_v37  ;;  %v1170_v39 = vld [vmem:[%s4411_s26 + $0xe70] sm:$0xff] }
  0x94   : > { %1169 = vst [vmem:[%s4416_s28 + $0x730] sm:$0xff] %v1168_v38  ;;  %v1172_v40 = vld [vmem:[%s4411_s26 + $0xe80] sm:$0xff]  ;;  %v1174_v41 = vld [vmem:[%s4411_s26 + $0xe90] sm:$0xff]  ;;  %1171 = vst [vmem:[%s4416_s28 + $0x738] sm:$0xff] %v1170_v39 }
  0x95   : > { %1173 = vst [vmem:[%s4416_s28 + $0x740] sm:$0xff] %v1172_v40  ;;  %1175 = vst [vmem:[%s4416_s28 + $0x748] sm:$0xff] %v1174_v41  ;;  %v1176_v42 = vld [vmem:[%s4411_s26 + $0xea0] sm:$0xff]  ;;  %v1178_v43 = vld [vmem:[%s4411_s26 + $0xeb0] sm:$0xff] }
  0x96   : > { %v1180_v44 = vld [vmem:[%s4411_s26 + $0xec0] sm:$0xff]  ;;  %1177 = vst [vmem:[%s4416_s28 + $0x750] sm:$0xff] %v1176_v42  ;;  %1179 = vst [vmem:[%s4416_s28 + $0x758] sm:$0xff] %v1178_v43  ;;  %v1182_v45 = vld [vmem:[%s4411_s26 + $0xed0] sm:$0xff] }
  0x97   : > { %1181 = vst [vmem:[%s4416_s28 + $0x760] sm:$0xff] %v1180_v44  ;;  %v1184_v46 = vld [vmem:[%s4411_s26 + $0xee0] sm:$0xff]  ;;  %v1186_v47 = vld [vmem:[%s4411_s26 + $0xef0] sm:$0xff]  ;;  %1183 = vst [vmem:[%s4416_s28 + $0x768] sm:$0xff] %v1182_v45 }
  0x98   : > { %1185 = vst [vmem:[%s4416_s28 + $0x770] sm:$0xff] %v1184_v46  ;;  %1187 = vst [vmem:[%s4416_s28 + $0x778] sm:$0xff] %v1186_v47  ;;  %v1188_v48 = vld [vmem:[%s4411_s26 + $0xf00] sm:$0xff]  ;;  %v1190_v49 = vld [vmem:[%s4411_s26 + $0xf10] sm:$0xff] }
  0x99   : > { %v1192_v50 = vld [vmem:[%s4411_s26 + $0xf20] sm:$0xff]  ;;  %1189 = vst [vmem:[%s4416_s28 + $0x780] sm:$0xff] %v1188_v48  ;;  %1191 = vst [vmem:[%s4416_s28 + $0x788] sm:$0xff] %v1190_v49  ;;  %v1194_v51 = vld [vmem:[%s4411_s26 + $0xf30] sm:$0xff] }
  0x9a   : > { %1193 = vst [vmem:[%s4416_s28 + $0x790] sm:$0xff] %v1192_v50  ;;  %v1196_v52 = vld [vmem:[%s4411_s26 + $0xf40] sm:$0xff]  ;;  %v1198_v53 = vld [vmem:[%s4411_s26 + $0xf50] sm:$0xff]  ;;  %1195 = vst [vmem:[%s4416_s28 + $0x798] sm:$0xff] %v1194_v51 }
  0x9b   : > { %1197 = vst [vmem:[%s4416_s28 + $0x7a0] sm:$0xff] %v1196_v52  ;;  %1199 = vst [vmem:[%s4416_s28 + $0x7a8] sm:$0xff] %v1198_v53  ;;  %v1200_v54 = vld [vmem:[%s4411_s26 + $0xf60] sm:$0xff]  ;;  %v1202_v55 = vld [vmem:[%s4411_s26 + $0xf70] sm:$0xff] }
  0x9c   : > { %v1204_v56 = vld [vmem:[%s4411_s26 + $0xf80] sm:$0xff]  ;;  %1201 = vst [vmem:[%s4416_s28 + $0x7b0] sm:$0xff] %v1200_v54  ;;  %1203 = vst [vmem:[%s4416_s28 + $0x7b8] sm:$0xff] %v1202_v55  ;;  %v1206_v57 = vld [vmem:[%s4411_s26 + $0xf90] sm:$0xff] }
  0x9d   : > { %1205 = vst [vmem:[%s4416_s28 + $0x7c0] sm:$0xff] %v1204_v56  ;;  %v1208_v58 = vld [vmem:[%s4411_s26 + $0xfa0] sm:$0xff]  ;;  %v1210_v59 = vld [vmem:[%s4411_s26 + $0xfb0] sm:$0xff]  ;;  %1207 = vst [vmem:[%s4416_s28 + $0x7c8] sm:$0xff] %v1206_v57 }
  0x9e   : > { %1209 = vst [vmem:[%s4416_s28 + $0x7d0] sm:$0xff] %v1208_v58  ;;  %1211 = vst [vmem:[%s4416_s28 + $0x7d8] sm:$0xff] %v1210_v59  ;;  %v1212_v60 = vld [vmem:[%s4411_s26 + $0xfc0] sm:$0xff]  ;;  %v1214_v61 = vld [vmem:[%s4411_s26 + $0xfd0] sm:$0xff] }
  0x9f   : > { %v1216_v62 = vld [vmem:[%s4411_s26 + $0xfe0] sm:$0xff]  ;;  %1213 = vst [vmem:[%s4416_s28 + $0x7e0] sm:$0xff] %v1212_v60  ;;  %1215 = vst [vmem:[%s4416_s28 + $0x7e8] sm:$0xff] %v1214_v61  ;;  %v1218_v63 = vld [vmem:[%s4411_s26 + $0xff0] sm:$0xff] }
  0xa0   : > { %1217 = vst [vmem:[%s4416_s28 + $0x7f0] sm:$0xff] %v1216_v62  ;;  %1219 = vst [vmem:[%s4416_s28 + $0x7f8] sm:$0xff] %v1218_v63 }
  0xa1 PF: > { %p3432_p0 = scmp.ge.s32.totalorder %s4286_s21, 1  ;;  %p1232_p1 = scmp.lt.s32.totalorder %s4286_s21, 5 }
  0xa3   : > { %p1233_p2 = pnand %p3432_p0, %p1232_p1 }
  0xa4   : > { %s1239_s5 = sand.u32 (!%p1233_p2), 1, %s4262_s15   ;;  %s5317_s9 = sand.u32 (!%p1233_p2), 1, %s4254_s13  }
  0xa5   : > { %1236 = sbr.rel (%p1233_p2) target bundleno = 679 (0x2a7), region = 66  ;;  %s3433_s10 = sshll.u32 (!%p1233_p2), %s1239_s5, 11 }
  0xa6   : > { %s3434_s11 = sshll.u32 (!%p1233_p2), %s5317_s9, 2  ;;  %s3435_s22 = sshll.u32 (!%p1233_p2), %s4270_s17, 4 }
  0xa7   : > { %s3436_s23 = sshll.u32 (!%p1233_p2), %s4274_s18, 1  ;;  %p1271_p3 = scmp.lt.s32.totalorder (!%p1233_p2), %s3435_s22, 31 }
  0xa8   : > { %p1278_p4 = scmp.lt.s32.totalorder (!%p1233_p2), %s3436_s23, 3  ;;  %s4946_s5 = scalar_lea.vmem (!%p1233_p2), [#allocation2], %s3433_s10 }
  0xa9   : > { %s4948_s9 = scalar_lea.vmem (!%p1233_p2), [#allocation3], %s3434_s11  ;;  %p3437_p5 = scmp.ne.s32.totalorder (!%p1233_p2), %s4270_s17, 0 }
  0xaa   : > { %s5338_s22 = smov (!%p1271_p3, %s3435_s22), 31  ;;  %s5340_s23 = smov (!%p1278_p4, %s3436_s23), 3 }
  0xab   : > { %s4940_s29 = scalar_lea.vmem %s5313_s0, %s5338_s22  ;;  %s1280_s15 = scalar_lea.vmem %s5315_s2, %s5340_s23 }
  0xac   : > { %1286 = sbr.rel (%p3437_p5) target bundleno = 179 (0xb3), region = 74 }
  0xb1   : > { %v4288_v0 = vmov 0.0  }
  0xb2   : > { %1287 = vst [vmem:[%s4948_s9] sm:$0xf] %v4288_v0 }
  0xb3 PF: > { %v3792_v1 = vld [vmem:[%s4946_s5 + $0x74] ss:$8 sps:$4 sm:$0xff]   ;;  %v3796_v3 = vld [vmem:[%s4946_s5 + $0x70] ss:$8 sps:$4 sm:$0xff]   ;;  %v3798_v5 = vld [vmem:[%s4946_s5 + $0x64] ss:$8 sps:$4 sm:$0xff]   ;;  %v1553_v39 = vlaneseq }
  0xb4   : > { %v3794_v2 = vld [vmem:[%s4946_s5 + $0x174] ss:$8 sps:$4 sm:$0xff]   ;;  %2943 = vmatprep.subr.bf16.mxu0 %v3792_v1  ;;  %v3797_v4 = vld [vmem:[%s4946_s5 + $0x170] ss:$8 sps:$4 sm:$0xff]   ;;  %v3800_v6 = vld [vmem:[%s4946_s5 + $0x164] ss:$8 sps:$4 sm:$0xff]  }
  0xb5   : > { %2984 = vmatprep.subr.bf16.mxu1 %v3794_v2  ;;  %2944 = vmatpush1.bf16.msra.mxu0 %v3796_v3  ;;  %v3802_v7 = vld [vmem:[%s4946_s5 + $0x60] ss:$8 sps:$4 sm:$0xff]   ;;  %v3804_v9 = vld [vmem:[%s4946_s5 + $0x54] ss:$8 sps:$4 sm:$0xff]   ;;  %v3808_v11 = vld [vmem:[%s4946_s5 + $0x50] ss:$8 sps:$4 sm:$0xff]  }
  0xb6   : > { %2985 = vmatpush1.bf16.msra.mxu1 %v3797_v4  ;;  %2945 = vmatprep.subr.bf16.mxu0 %v3798_v5  ;;  %v3803_v8 = vld [vmem:[%s4946_s5 + $0x160] ss:$8 sps:$4 sm:$0xff]   ;;  %v3806_v10 = vld [vmem:[%s4946_s5 + $0x154] ss:$8 sps:$4 sm:$0xff]   ;;  %v3809_v12 = vld [vmem:[%s4946_s5 + $0x150] ss:$8 sps:$4 sm:$0xff]  }
  0xb7   : > { %2986 = vmatprep.subr.bf16.mxu1 %v3800_v6  ;;  %v3810_v13 = vld [vmem:[%s4946_s5 + $0x44] ss:$8 sps:$4 sm:$0xff]   ;;  %v3814_v15 = vld [vmem:[%s4946_s5 + $0x40] ss:$8 sps:$4 sm:$0xff]   ;;  %v3816_v17 = vld [vmem:[%s4946_s5 + $0x34] ss:$8 sps:$4 sm:$0xff]  }
  0xb8   : > { %v3812_v14 = vld [vmem:[%s4946_s5 + $0x144] ss:$8 sps:$4 sm:$0xff]   ;;  %v3815_v16 = vld [vmem:[%s4946_s5 + $0x140] ss:$8 sps:$4 sm:$0xff]   ;;  %v3818_v18 = vld [vmem:[%s4946_s5 + $0x134] ss:$8 sps:$4 sm:$0xff]  }
  0xb9   : > { %2946 = vmatpush1.bf16.msra.mxu0 %v3802_v7  ;;  %v3820_v19 = vld [vmem:[%s4946_s5 + $0x30] ss:$8 sps:$4 sm:$0xff]   ;;  %v3822_v21 = vld [vmem:[%s4946_s5 + $0x24] ss:$8 sps:$4 sm:$0xff]   ;;  %v3826_v23 = vld [vmem:[%s4946_s5 + $0x20] ss:$8 sps:$4 sm:$0xff]  }
  0xba   : > { %2987 = vmatpush1.bf16.msra.mxu1 %v3803_v8  ;;  %2947 = vmatprep.subr.bf16.mxu0 %v3804_v9  ;;  %v3821_v20 = vld [vmem:[%s4946_s5 + $0x130] ss:$8 sps:$4 sm:$0xff]   ;;  %v3824_v22 = vld [vmem:[%s4946_s5 + $0x124] ss:$8 sps:$4 sm:$0xff]   ;;  %v3827_v24 = vld [vmem:[%s4946_s5 + $0x120] ss:$8 sps:$4 sm:$0xff]  }
  0xbb   : > { %2988 = vmatprep.subr.bf16.mxu1 %v3806_v10  ;;  %v3828_v25 = vld [vmem:[%s4946_s5 + $0x14] ss:$8 sps:$4 sm:$0xff]   ;;  %v3832_v27 = vld [vmem:[%s4946_s5 + $0x10] ss:$8 sps:$4 sm:$0xff]   ;;  %v3834_v29 = vld [vmem:[%s4946_s5 + $0x4] ss:$8 sps:$4 sm:$0xff]  }
  0xbc   : > { %v3830_v26 = vld [vmem:[%s4946_s5 + $0x114] ss:$8 sps:$4 sm:$0xff]   ;;  %v3833_v28 = vld [vmem:[%s4946_s5 + $0x110] ss:$8 sps:$4 sm:$0xff]   ;;  %v3836_v30 = vld [vmem:[%s4946_s5 + $0x104] ss:$8 sps:$4 sm:$0xff]  }
  0xbd   : > { %2948 = vmatpush1.bf16.msra.mxu0 %v3808_v11  ;;  %v3838_v31 = vld [vmem:[%s4946_s5] ss:$8 sps:$4 sm:$0xff]   ;;  %v3840_v33 = vld [vmem:[%s4946_s5 + $0xf4] ss:$8 sps:$4 sm:$0xff]   ;;  %v3844_v35 = vld [vmem:[%s4946_s5 + $0xf0] ss:$8 sps:$4 sm:$0xff]  }
  0xbe   : > { %2989 = vmatpush1.bf16.msra.mxu1 %v3809_v12  ;;  %2949 = vmatprep.subr.bf16.mxu0 %v3810_v13  ;;  %v3839_v32 = vld [vmem:[%s4946_s5 + $0x100] ss:$8 sps:$4 sm:$0xff]   ;;  %v3842_v34 = vld [vmem:[%s4946_s5 + $0x1f4] ss:$8 sps:$4 sm:$0xff]   ;;  %v3845_v36 = vld [vmem:[%s4946_s5 + $0x1f0] ss:$8 sps:$4 sm:$0xff]  }
  0xbf   : > { %2990 = vmatprep.subr.bf16.mxu1 %v3812_v14  ;;  %v4289_v37 = vmov 1966171168   ;;  %v3846_v40 = vld [vmem:[%s4946_s5 + $0xe4] ss:$8 sps:$4 sm:$0xff]   ;;  %v3850_v42 = vld [vmem:[%s4946_s5 + $0xe0] ss:$8 sps:$4 sm:$0xff]  }
  0xc0   : > { %v1551_v38 = vunpack.c.l.s4 %v4289_v37  ;;  %v3848_v41 = vld [vmem:[%s4946_s5 + $0x1e4] ss:$8 sps:$4 sm:$0xff]   ;;  %v4991_v44 = vshrl.u32 %v1553_v39, 7  ;;  %v3851_v45 = vld [vmem:[%s4946_s5 + $0x1e0] ss:$8 sps:$4 sm:$0xff]   ;;  %p3694_p6 = scmp.ne.s32.totalorder %s4270_s17, 1 }
  0xc1   : > { %2950 = vmatpush1.bf16.msra.mxu0 %v3814_v15  ;;  %v3852_v46 = vld [vmem:[%s4946_s5 + $0xd4] ss:$8 sps:$4 sm:$0xff]   ;;  %v3856_v48 = vld [vmem:[%s4946_s5 + $0xd0] ss:$8 sps:$4 sm:$0xff]   ;;  %v3858_v51 = vld [vmem:[%s4946_s5 + $0xc4] ss:$8 sps:$4 sm:$0xff]  }
  0xc2   : > { %2991 = vmatpush1.bf16.msra.mxu1 %v3815_v16  ;;  %2951 = vmatprep.subr.bf16.mxu0 %v3816_v17  ;;  %v1552_v43 = vunpack.c.0.s8 %v1551_v38  ;;  %v3854_v47 = vld [vmem:[%s4946_s5 + $0x1d4] ss:$8 sps:$4 sm:$0xff]   ;;  %v3857_v49 = vld [vmem:[%s4946_s5 + $0x1d0] ss:$8 sps:$4 sm:$0xff]   ;;  %v3860_v52 = vld [vmem:[%s4946_s5 + $0x1c4] ss:$8 sps:$4 sm:$0xff]  }
  0xc3   : > { %2992 = vmatprep.subr.bf16.mxu1 %v3818_v18  ;;  %v1289_v53 = vld [vmem:[%s4940_s29] sm:$0xff]  ;;  %v3864_v57 = vld [vmem:[%s4946_s5 + $0xb4] ss:$8 sps:$4 sm:$0xff]   ;;  %v3868_v60 = vld [vmem:[%s4946_s5 + $0xb0] ss:$8 sps:$4 sm:$0xff]  }
  0xc4   : > { %v4999_v50 = vsub.s32 %v1552_v43, %v4991_v44  ;;  %v3862_v54 = vld [vmem:[%s4946_s5 + $0xc0] ss:$8 sps:$4 sm:$0xff]   ;;  %v3866_v58 = vld [vmem:[%s4946_s5 + $0x1b4] ss:$8 sps:$4 sm:$0xff]   ;;  %v3869_v62 = vld [vmem:[%s4946_s5 + $0x1b0] ss:$8 sps:$4 sm:$0xff]   ;;  %v1549_v2 = vcombine.high %v1289_v53, %v1289_v53 }
  0xc5   : > { %2952 = vmatpush1.bf16.msra.mxu0 %v3820_v19  ;;  %v3863_v56 = vld [vmem:[%s4946_s5 + $0x1c0] ss:$8 sps:$4 sm:$0xff]   ;;  %v3870_v63 = vld [vmem:[%s4946_s5 + $0xa4] ss:$8 sps:$4 sm:$0xff]   ;;  %v3876_v5 = vld [vmem:[%s4946_s5 + $0x94] ss:$8 sps:$4 sm:$0xff]  }
  0xc6   : > { %2993 = vmatpush1.bf16.msra.mxu1 %v3821_v20  ;;  %2953 = vmatprep.subr.bf16.mxu0 %v3822_v21  ;;  %v1556_v55 = vrot.slane %v1289_v53, %v4999_v50  ;;  %v3872_v0 = vld [vmem:[%s4946_s5 + $0x1a4] ss:$8 sps:$4 sm:$0xff]   ;;  %v3874_v3 = vld [vmem:[%s4946_s5 + $0xa0] ss:$8 sps:$4 sm:$0xff]   ;;  %v3878_v6 = vld [vmem:[%s4946_s5 + $0x194] ss:$8 sps:$4 sm:$0xff]   ;;  %v5019_v7 = vrot.slane %v1549_v2, %v4999_v50 }
  0xc7   : > { %2994 = vmatprep.subr.bf16.mxu1 %v3824_v22  ;;  %v3875_v4 = vld [vmem:[%s4946_s5 + $0x1a0] ss:$8 sps:$4 sm:$0xff]   ;;  %v3880_v8 = vld [vmem:[%s4946_s5 + $0x90] ss:$8 sps:$4 sm:$0xff]   ;;  %v3882_v10 = vld [vmem:[%s4946_s5 + $0x84] ss:$8 sps:$4 sm:$0xff]  }
  0xc8   : > { %v1564_v59 = vcombine.high %v1556_v55, %v1556_v55  ;;  %v3881_v9 = vld [vmem:[%s4946_s5 + $0x190] ss:$8 sps:$4 sm:$0xff]   ;;  %v3884_v11 = vld [vmem:[%s4946_s5 + $0x184] ss:$8 sps:$4 sm:$0xff]   ;;  %v1565_v12 = vcombine.high %v5019_v7, %v5019_v7  ;;  %v3886_v13 = vld [vmem:[%s4946_s5 + $0x80] ss:$8 sps:$4 sm:$0xff]   ;;  %v1572_v14 = vrot.slane %v1556_v55, %v4999_v50 }
  0xc9   : > { %2954 = vmatpush1.bf16.msra.mxu0 %v3826_v23  ;;  %v3887_v15 = vld [vmem:[%s4946_s5 + $0x180] ss:$8 sps:$4 sm:$0xff]   ;;  %v3891_v16 = vld [vmem:[%s4946_s5 + $0x274] ss:$8 sps:$4 sm:$0xff]   ;;  %v3889_v20 = vld [vmem:[%s4946_s5 + $0x270] ss:$8 sps:$4 sm:$0xff]  }
  0xca   : > { %2995 = vmatpush1.bf16.msra.mxu1 %v3827_v24  ;;  %2955 = vmatprep.subr.bf16.mxu0 %v3828_v25  ;;  %v1586_v61 = vrot.slane %v1564_v59, %v4999_v50  ;;  %v3894_v17 = vld [vmem:[%s4946_s5 + $0x374] ss:$8 sps:$4 sm:$0xff]   ;;  %v1593_v18 = vrot.slane %v1565_v12, %v4999_v50  ;;  %v1594_v19 = vcombine.high %v1572_v14, %v1572_v14  ;;  %v3892_v21 = vld [vmem:[%s4946_s5 + $0x370] ss:$8 sps:$4 sm:$0xff]   ;;  %v3897_v22 = vld [vmem:[%s4946_s5 + $0x264] ss:$8 sps:$4 sm:$0xff]  }
  0xcb   : > { %2996 = vmatprep.subr.bf16.mxu1 %v3830_v26  ;;  %v3900_v23 = vld [vmem:[%s4946_s5 + $0x364] ss:$8 sps:$4 sm:$0xff]   ;;  %v3895_v25 = vld [vmem:[%s4946_s5 + $0x260] ss:$8 sps:$4 sm:$0xff]   ;;  %v3913_v37 = vld [vmem:[%s4946_s5 + $0x230] ss:$8 sps:$4 sm:$0xff]  }
  0xcc   : > { %v1596_v1 = vcombine.high %v1586_v61, %v1586_v61  ;;  %2975 = vmatprep.mubr.bf16.mxu0 %v1586_v61  ;;  %v1597_v24 = vcombine.high %v1593_v18, %v1593_v18  ;;  %v3898_v26 = vld [vmem:[%s4946_s5 + $0x360] ss:$8 sps:$4 sm:$0xff]   ;;  %v3916_v38 = vld [vmem:[%s4946_s5 + $0x330] ss:$8 sps:$4 sm:$0xff]   ;;  %v3921_v39 = vld [vmem:[%s4946_s5 + $0x224] ss:$8 sps:$4 sm:$0xff]  }
  0xcd   : > { %2956 = vmatpush1.bf16.msra.mxu0 %v3832_v27  ;;  %v3903_v27 = vld [vmem:[%s4946_s5 + $0x254] ss:$8 sps:$4 sm:$0xff]   ;;  %v3937_v55 = vld [vmem:[%s4946_s5 + $0x2f0] ss:$8 sps:$4 sm:$0xff]   ;;  %v3943_v59 = vld [vmem:[%s4946_s5 + $0x2e0] ss:$8 sps:$4 sm:$0xff]  }
  0xce   : > { %2997 = vmatpush1.bf16.msra.mxu1 %v3833_v28  ;;  %2957 = vmatprep.subr.bf16.mxu0 %v3834_v29  ;;  %v3906_v28 = vld [vmem:[%s4946_s5 + $0x354] ss:$8 sps:$4 sm:$0xff]   ;;  %v3901_v29 = vld [vmem:[%s4946_s5 + $0x250] ss:$8 sps:$4 sm:$0xff]   ;;  %v3960_v2 = vld [vmem:[%s4946_s5 + $0x3c4] ss:$8 sps:$4 sm:$0xff]  }
  0xcf   : > { %2998 = vmatprep.subr.bf16.mxu1 %v3836_v30  ;;  %3016 = vmatprep.mubr.bf16.mxu1 %v1596_v1  ;;  %v3904_v30 = vld [vmem:[%s4946_s5 + $0x350] ss:$8 sps:$4 sm:$0xff]   ;;  %v3927_v43 = vld [vmem:[%s4946_s5 + $0x214] ss:$8 sps:$4 sm:$0xff]   ;;  %v3957_v1 = vld [vmem:[%s4946_s5 + $0x2c4] ss:$8 sps:$4 sm:$0xff]  }
  0xd0   : > { %v3939_v53 = vld [vmem:[%s4946_s5 + $0x2f4] ss:$8 sps:$4 sm:$0xff]   ;;  %v3967_v12 = vld [vmem:[%s4946_s5 + $0x2a0] ss:$8 sps:$4 sm:$0xff]  }
  0xd1   : > { %2958 = vmatpush1.bf16.msra.mxu0 %v3838_v31  ;;  %v3909_v31 = vld [vmem:[%s4946_s5 + $0x244] ss:$8 sps:$4 sm:$0xff]   ;;  %v3951_v61 = vld [vmem:[%s4946_s5 + $0x2d4] ss:$8 sps:$4 sm:$0xff]  }
  0xd2   : > { %2999 = vmatpush1.bf16.msra.mxu1 %v3839_v32  ;;  %2959 = vmatprep.subr.bf16.mxu0 %v3840_v33  ;;  %v3912_v32 = vld [vmem:[%s4946_s5 + $0x344] ss:$8 sps:$4 sm:$0xff]   ;;  %v3907_v33 = vld [vmem:[%s4946_s5 + $0x240] ss:$8 sps:$4 sm:$0xff]  }
  0xd3   : > { %3000 = vmatprep.subr.bf16.mxu1 %v3842_v34  ;;  %v3910_v34 = vld [vmem:[%s4946_s5 + $0x340] ss:$8 sps:$4 sm:$0xff]  }
  0xd5   : > { %2960 = vmatpush2.bf16.msra.mxu0 %v3844_v35  ;;  %v3915_v35 = vld [vmem:[%s4946_s5 + $0x234] ss:$8 sps:$4 sm:$0xff]  }
  0xd6   : > { %3001 = vmatpush2.bf16.msra.mxu1 %v3845_v36  ;;  %2961 = vmatprep.subr.bf16.mxu0 %v3846_v40  ;;  %v3918_v36 = vld [vmem:[%s4946_s5 + $0x334] ss:$8 sps:$4 sm:$0xff]   ;;  %v3924_v40 = vld [vmem:[%s4946_s5 + $0x324] ss:$8 sps:$4 sm:$0xff]  }
  0xd7   : > { %3002 = vmatprep.subr.bf16.mxu1 %v3848_v41  ;;  %v3919_v41 = vld [vmem:[%s4946_s5 + $0x220] ss:$8 sps:$4 sm:$0xff]  }
  0xd9   : > { %2962 = vmatpush2.bf16.msra.mxu0 %v3850_v42  ;;  %v3922_v42 = vld [vmem:[%s4946_s5 + $0x320] ss:$8 sps:$4 sm:$0xff]  }
  0xda   : > { %3003 = vmatpush2.bf16.msra.mxu1 %v3851_v45  ;;  %2963 = vmatprep.subr.bf16.mxu0 %v3852_v46  ;;  %v3930_v45 = vld [vmem:[%s4946_s5 + $0x314] ss:$8 sps:$4 sm:$0xff]   ;;  %v3925_v46 = vld [vmem:[%s4946_s5 + $0x210] ss:$8 sps:$4 sm:$0xff]  }
  0xdb   : > { %3004 = vmatprep.subr.bf16.mxu1 %v3854_v47  ;;  %v3928_v47 = vld [vmem:[%s4946_s5 + $0x310] ss:$8 sps:$4 sm:$0xff]  }
  0xdd   : > { %2964 = vmatpush2.bf16.msra.mxu0 %v3856_v48  ;;  %v3933_v48 = vld [vmem:[%s4946_s5 + $0x204] ss:$8 sps:$4 sm:$0xff]  }
  0xde   : > { %3005 = vmatpush2.bf16.msra.mxu1 %v3857_v49  ;;  %2965 = vmatprep.subr.bf16.mxu0 %v3858_v51  ;;  %v3936_v49 = vld [vmem:[%s4946_s5 + $0x304] ss:$8 sps:$4 sm:$0xff]   ;;  %v3931_v51 = vld [vmem:[%s4946_s5 + $0x200] ss:$8 sps:$4 sm:$0xff]  }
  0xdf   : > { %3006 = vmatprep.subr.bf16.mxu1 %v3860_v52  ;;  %v3934_v52 = vld [vmem:[%s4946_s5 + $0x300] ss:$8 sps:$4 sm:$0xff]  }
  0xe1   : > { %2966 = vmatpush2.bf16.msra.mxu0 %v3862_v54  ;;  %v3942_v54 = vld [vmem:[%s4946_s5 + $0x3f4] ss:$8 sps:$4 sm:$0xff]  }
  0xe2   : > { %3007 = vmatpush2.bf16.msra.mxu1 %v3863_v56  ;;  %2967 = vmatprep.subr.bf16.mxu0 %v3864_v57  ;;  %v3940_v56 = vld [vmem:[%s4946_s5 + $0x3f0] ss:$8 sps:$4 sm:$0xff]   ;;  %v3945_v57 = vld [vmem:[%s4946_s5 + $0x2e4] ss:$8 sps:$4 sm:$0xff]  }
  0xe3   : > { %3008 = vmatprep.subr.bf16.mxu1 %v3866_v58  ;;  %v3948_v58 = vld [vmem:[%s4946_s5 + $0x3e4] ss:$8 sps:$4 sm:$0xff]  }
  0xe5   : > { %2968 = vmatpush2.bf16.msra.mxu0 %v3868_v60  ;;  %v3946_v60 = vld [vmem:[%s4946_s5 + $0x3e0] ss:$8 sps:$4 sm:$0xff]  }
  0xe6   : > { %3009 = vmatpush2.bf16.msra.mxu1 %v3869_v62  ;;  %2969 = vmatprep.subr.bf16.mxu0 %v3870_v63  ;;  %v3954_v62 = vld [vmem:[%s4946_s5 + $0x3d4] ss:$8 sps:$4 sm:$0xff]   ;;  %v3949_v63 = vld [vmem:[%s4946_s5 + $0x2d0] ss:$8 sps:$4 sm:$0xff]  }
  0xe7   : > { %3010 = vmatprep.subr.bf16.mxu1 %v3872_v0  ;;  %v3952_v0 = vld [vmem:[%s4946_s5 + $0x3d0] ss:$8 sps:$4 sm:$0xff]  }
  0xe9   : > { %2970 = vmatpush2.bf16.msra.mxu0 %v3874_v3  ;;  %v3955_v3 = vld [vmem:[%s4946_s5 + $0x2c0] ss:$8 sps:$4 sm:$0xff]  }
  0xea   : > { %3011 = vmatpush2.bf16.msra.mxu1 %v3875_v4  ;;  %2971 = vmatprep.subr.bf16.mxu0 %v3876_v5  ;;  %v3958_v4 = vld [vmem:[%s4946_s5 + $0x3c0] ss:$8 sps:$4 sm:$0xff]   ;;  %v3963_v5 = vld [vmem:[%s4946_s5 + $0x2b4] ss:$8 sps:$4 sm:$0xff]  }
  0xeb   : > { %3012 = vmatprep.subr.bf16.mxu1 %v3878_v6  ;;  %v3966_v6 = vld [vmem:[%s4946_s5 + $0x3b4] ss:$8 sps:$4 sm:$0xff]  }
  0xed   : > { %2972 = vmatpush2.bf16.msra.mxu0 %v3880_v8  ;;  %v3961_v8 = vld [vmem:[%s4946_s5 + $0x2b0] ss:$8 sps:$4 sm:$0xff]  }
  0xee   : > { %3013 = vmatpush2.bf16.msra.mxu1 %v3881_v9  ;;  %2973 = vmatprep.subr.bf16.mxu0 %v3882_v10  ;;  %v3964_v9 = vld [vmem:[%s4946_s5 + $0x3b0] ss:$8 sps:$4 sm:$0xff]   ;;  %v3969_v10 = vld [vmem:[%s4946_s5 + $0x2a4] ss:$8 sps:$4 sm:$0xff]  }
  0xef   : > { %3014 = vmatprep.subr.bf16.mxu1 %v3884_v11  ;;  %v3972_v11 = vld [vmem:[%s4946_s5 + $0x3a4] ss:$8 sps:$4 sm:$0xff]  }
  0xf1   : > { %2974 = vmatpush2.bf16.msra.mxu0 %v3886_v13  ;;  %v3970_v13 = vld [vmem:[%s4946_s5 + $0x3a0] ss:$8 sps:$4 sm:$0xff]  }
  0xf2   : > { %3015 = vmatpush2.bf16.msra.mxu1 %v3887_v15  ;;  %3025 = vmatprep.subr.bf16.mxu0 %v3891_v16  ;;  %v3978_v15 = vld [vmem:[%s4946_s5 + $0x394] ss:$8 sps:$4 sm:$0xff]   ;;  %v3973_v16 = vld [vmem:[%s4946_s5 + $0x290] ss:$8 sps:$4 sm:$0xff]  }
  0xf3   : > { %3066 = vmatprep.subr.bf16.mxu1 %v3894_v17  ;;  %v3976_v17 = vld [vmem:[%s4946_s5 + $0x390] ss:$8 sps:$4 sm:$0xff]  }
  0xf4   : > { %2976 = vmatmul.mubr.bf16.vlgmr.msra.gmra.mxu0 %v1572_v14  ;;  %v3975_v14 = vld [vmem:[%s4946_s5 + $0x294] ss:$8 sps:$4 sm:$0xff]  }
  0xf5   : > { %3017 = vmatmul.mubr.bf16.vlgmr.msra.gmra.mxu1 %v1594_v19  ;;  %3026 = vmatpush1.bf16.msra.mxu0 %v3889_v20  ;;  %v3984_v19 = vld [vmem:[%s4946_s5 + $0x384] ss:$8 sps:$4 sm:$0xff]   ;;  %v3979_v20 = vld [vmem:[%s4946_s5 + $0x280] ss:$8 sps:$4 sm:$0xff]  }
  0xf6   : > { %3067 = vmatpush1.bf16.msra.mxu1 %v3892_v21  ;;  %3027 = vmatprep.subr.bf16.mxu0 %v3897_v22  ;;  %v1579_v21 = vrot.slane %v5019_v7, %v4999_v50  ;;  %v3982_v22 = vld [vmem:[%s4946_s5 + $0x380] ss:$8 sps:$4 sm:$0xff]   ;;  %v3993_v7 = vld [vmem:[%s4946_s5 + $0x464] ss:$8 sps:$4 sm:$0xff]  }
  0xf7   : > { %3068 = vmatprep.subr.bf16.mxu1 %v3900_v23  ;;  %3057 = vmatprep.mubr.bf16.mxu0 %v1593_v18  ;;  %v3981_v18 = vld [vmem:[%s4946_s5 + $0x284] ss:$8 sps:$4 sm:$0xff]   ;;  %v3987_v23 = vld [vmem:[%s4946_s5 + $0x474] ss:$8 sps:$4 sm:$0xff]  }
  0xf8   : > { %3098 = vmatprep.mubr.bf16.mxu1 %v1597_v24  ;;  %v3990_v24 = vld [vmem:[%s4946_s5 + $0x574] ss:$8 sps:$4 sm:$0xff]  }
  0xf9   : > { %3028 = vmatpush1.bf16.msra.mxu0 %v3895_v25  ;;  %v1595_v25 = vcombine.high %v1579_v21, %v1579_v21 }
  0xfa   : > { %3069 = vmatpush1.bf16.msra.mxu1 %v3898_v26  ;;  %3029 = vmatprep.subr.bf16.mxu0 %v3903_v27  ;;  %v3985_v26 = vld [vmem:[%s4946_s5 + $0x470] ss:$8 sps:$4 sm:$0xff]  }
  0xfb   : > { %3070 = vmatprep.subr.bf16.mxu1 %v3906_v28  ;;  %v3988_v27 = vld [vmem:[%s4946_s5 + $0x570] ss:$8 sps:$4 sm:$0xff]   ;;  %v5102_v28 = vld [vmem:[%s4940_s29 + $0x8] sm:$0xff] }
  0xfd   : > { %3030 = vmatpush1.bf16.msra.mxu0 %v3901_v29  ;;  %v3996_v29 = vld [vmem:[%s4946_s5 + $0x564] ss:$8 sps:$4 sm:$0xff]  }
  0xfe   : > { %3071 = vmatpush1.bf16.msra.mxu1 %v3904_v30  ;;  %3031 = vmatprep.subr.bf16.mxu0 %v3909_v31  ;;  %v5108_v30 = vrot.slane %v5102_v28, %v4999_v50 }
  0xff   : > { %3072 = vmatprep.subr.bf16.mxu1 %v3912_v32  ;;  %v3991_v32 = vld [vmem:[%s4946_s5 + $0x460] ss:$8 sps:$4 sm:$0xff]  }
 0x100   : > { %v1613_v31 = vcombine.high %v5108_v30, %v5108_v30 }
 0x101   : > { %3032 = vmatpush1.bf16.msra.mxu0 %v3907_v33  ;;  %v3994_v33 = vld [vmem:[%s4946_s5 + $0x560] ss:$8 sps:$4 sm:$0xff]  }
 0x102   : > { %3073 = vmatpush1.bf16.msra.mxu1 %v3910_v34  ;;  %3033 = vmatprep.subr.bf16.mxu0 %v3915_v35  ;;  %v3999_v34 = vld [vmem:[%s4946_s5 + $0x454] ss:$8 sps:$4 sm:$0xff]  }
 0x103   : > { %3074 = vmatprep.subr.bf16.mxu1 %v3918_v36  ;;  %v4002_v35 = vld [vmem:[%s4946_s5 + $0x554] ss:$8 sps:$4 sm:$0xff]   ;;  %v1635_v36 = vrot.slane %v1613_v31, %v4999_v50 }
 0x105   : > { %3034 = vmatpush1.bf16.msra.mxu0 %v3913_v37  ;;  %v1645_v37 = vcombine.high %v1635_v36, %v1635_v36 }
 0x106   : > { %3075 = vmatpush1.bf16.msra.mxu1 %v3916_v38  ;;  %3035 = vmatprep.subr.bf16.mxu0 %v3921_v39  ;;  %v3997_v38 = vld [vmem:[%s4946_s5 + $0x450] ss:$8 sps:$4 sm:$0xff]  }
 0x107   : > { %3076 = vmatprep.subr.bf16.mxu1 %v3924_v40  ;;  %v4000_v39 = vld [vmem:[%s4946_s5 + $0x550] ss:$8 sps:$4 sm:$0xff]   ;;  %v4005_v40 = vld [vmem:[%s4946_s5 + $0x444] ss:$8 sps:$4 sm:$0xff]  }
 0x109   : > { %3036 = vmatpush1.bf16.msra.mxu0 %v3919_v41  ;;  %v4008_v41 = vld [vmem:[%s4946_s5 + $0x544] ss:$8 sps:$4 sm:$0xff]  }
 0x10a   : > { %3077 = vmatpush1.bf16.msra.mxu1 %v3922_v42  ;;  %3037 = vmatprep.subr.bf16.mxu0 %v3927_v43  ;;  %v4003_v42 = vld [vmem:[%s4946_s5 + $0x440] ss:$8 sps:$4 sm:$0xff]  }
 0x10b   : > { %3078 = vmatprep.subr.bf16.mxu1 %v3930_v45  ;;  %v4006_v43 = vld [vmem:[%s4946_s5 + $0x540] ss:$8 sps:$4 sm:$0xff]   ;;  %v4011_v45 = vld [vmem:[%s4946_s5 + $0x434] ss:$8 sps:$4 sm:$0xff]  }
 0x10d   : > { %3038 = vmatpush1.bf16.msra.mxu0 %v3925_v46  ;;  %v4014_v46 = vld [vmem:[%s4946_s5 + $0x534] ss:$8 sps:$4 sm:$0xff]  }
 0x10e   : > { %3079 = vmatpush1.bf16.msra.mxu1 %v3928_v47  ;;  %3039 = vmatprep.subr.bf16.mxu0 %v3933_v48  ;;  %v4009_v47 = vld [vmem:[%s4946_s5 + $0x430] ss:$8 sps:$4 sm:$0xff]  }
 0x10f   : > { %3080 = vmatprep.subr.bf16.mxu1 %v3936_v49  ;;  %v4012_v48 = vld [vmem:[%s4946_s5 + $0x530] ss:$8 sps:$4 sm:$0xff]   ;;  %v4017_v49 = vld [vmem:[%s4946_s5 + $0x424] ss:$8 sps:$4 sm:$0xff]  }
 0x111   : > { %3040 = vmatpush1.bf16.msra.mxu0 %v3931_v51  ;;  %v4020_v51 = vld [vmem:[%s4946_s5 + $0x524] ss:$8 sps:$4 sm:$0xff]  }
 0x112   : > { %3081 = vmatpush1.bf16.msra.mxu1 %v3934_v52  ;;  %3041 = vmatprep.subr.bf16.mxu0 %v3939_v53  ;;  %v4015_v52 = vld [vmem:[%s4946_s5 + $0x420] ss:$8 sps:$4 sm:$0xff]  }
 0x113   : > { %3082 = vmatprep.subr.bf16.mxu1 %v3942_v54  ;;  %v4018_v53 = vld [vmem:[%s4946_s5 + $0x520] ss:$8 sps:$4 sm:$0xff]   ;;  %v4023_v54 = vld [vmem:[%s4946_s5 + $0x414] ss:$8 sps:$4 sm:$0xff]  }
 0x115   : > { %3042 = vmatpush2.bf16.msra.mxu0 %v3937_v55  ;;  %v4026_v55 = vld [vmem:[%s4946_s5 + $0x514] ss:$8 sps:$4 sm:$0xff]  }
 0x116   : > { %3083 = vmatpush2.bf16.msra.mxu1 %v3940_v56  ;;  %3043 = vmatprep.subr.bf16.mxu0 %v3945_v57  ;;  %v4021_v56 = vld [vmem:[%s4946_s5 + $0x410] ss:$8 sps:$4 sm:$0xff]  }
 0x117   : > { %3084 = vmatprep.subr.bf16.mxu1 %v3948_v58  ;;  %v4024_v57 = vld [vmem:[%s4946_s5 + $0x510] ss:$8 sps:$4 sm:$0xff]   ;;  %v4029_v58 = vld [vmem:[%s4946_s5 + $0x404] ss:$8 sps:$4 sm:$0xff]  }
 0x119   : > { %3044 = vmatpush2.bf16.msra.mxu0 %v3943_v59  ;;  %v4032_v59 = vld [vmem:[%s4946_s5 + $0x504] ss:$8 sps:$4 sm:$0xff]  }
 0x11a   : > { %3085 = vmatpush2.bf16.msra.mxu1 %v3946_v60  ;;  %3045 = vmatprep.subr.bf16.mxu0 %v3951_v61  ;;  %v4027_v60 = vld [vmem:[%s4946_s5 + $0x400] ss:$8 sps:$4 sm:$0xff]  }
 0x11b   : > { %3086 = vmatprep.subr.bf16.mxu1 %v3954_v62  ;;  %v4030_v61 = vld [vmem:[%s4946_s5 + $0x500] ss:$8 sps:$4 sm:$0xff]   ;;  %v4035_v62 = vld [vmem:[%s4946_s5 + $0x4f4] ss:$8 sps:$4 sm:$0xff]  }
 0x11d   : > { %3046 = vmatpush2.bf16.msra.mxu0 %v3949_v63  ;;  %v4038_v63 = vld [vmem:[%s4946_s5 + $0x5f4] ss:$8 sps:$4 sm:$0xff]  }
 0x11e   : > { %3087 = vmatpush2.bf16.msra.mxu1 %v3952_v0  ;;  %3047 = vmatprep.subr.bf16.mxu0 %v3957_v1  ;;  %v4033_v0 = vld [vmem:[%s4946_s5 + $0x4f0] ss:$8 sps:$4 sm:$0xff]  }
 0x11f   : > { %3088 = vmatprep.subr.bf16.mxu1 %v3960_v2  ;;  %v4036_v1 = vld [vmem:[%s4946_s5 + $0x5f0] ss:$8 sps:$4 sm:$0xff]   ;;  %v4041_v2 = vld [vmem:[%s4946_s5 + $0x4e4] ss:$8 sps:$4 sm:$0xff]  }
 0x121   : > { %3048 = vmatpush2.bf16.msra.mxu0 %v3955_v3  ;;  %v4044_v3 = vld [vmem:[%s4946_s5 + $0x5e4] ss:$8 sps:$4 sm:$0xff]  }
 0x122   : > { %3089 = vmatpush2.bf16.msra.mxu1 %v3958_v4  ;;  %3049 = vmatprep.subr.bf16.mxu0 %v3963_v5  ;;  %v4039_v4 = vld [vmem:[%s4946_s5 + $0x4e0] ss:$8 sps:$4 sm:$0xff]  }
 0x123   : > { %3090 = vmatprep.subr.bf16.mxu1 %v3966_v6  ;;  %v4042_v5 = vld [vmem:[%s4946_s5 + $0x5e0] ss:$8 sps:$4 sm:$0xff]   ;;  %v4047_v6 = vld [vmem:[%s4946_s5 + $0x4d4] ss:$8 sps:$4 sm:$0xff]  }
 0x125   : > { %3050 = vmatpush2.bf16.msra.mxu0 %v3961_v8  ;;  %v4050_v8 = vld [vmem:[%s4946_s5 + $0x5d4] ss:$8 sps:$4 sm:$0xff]  }
 0x126   : > { %3091 = vmatpush2.bf16.msra.mxu1 %v3964_v9  ;;  %3051 = vmatprep.subr.bf16.mxu0 %v3969_v10  ;;  %v4045_v9 = vld [vmem:[%s4946_s5 + $0x4d0] ss:$8 sps:$4 sm:$0xff]  }
 0x127   : > { %3092 = vmatprep.subr.bf16.mxu1 %v3972_v11  ;;  %v4048_v10 = vld [vmem:[%s4946_s5 + $0x5d0] ss:$8 sps:$4 sm:$0xff]   ;;  %v4053_v11 = vld [vmem:[%s4946_s5 + $0x4c4] ss:$8 sps:$4 sm:$0xff]  }
 0x129   : > { %3052 = vmatpush2.bf16.msra.mxu0 %v3967_v12  ;;  %v4056_v12 = vld [vmem:[%s4946_s5 + $0x5c4] ss:$8 sps:$4 sm:$0xff]  }
 0x12a   : > { %3093 = vmatpush2.bf16.msra.mxu1 %v3970_v13  ;;  %3053 = vmatprep.subr.bf16.mxu0 %v3975_v14  ;;  %v4051_v13 = vld [vmem:[%s4946_s5 + $0x4c0] ss:$8 sps:$4 sm:$0xff]  }
 0x12b   : > { %3094 = vmatprep.subr.bf16.mxu1 %v3978_v15  ;;  %v4054_v14 = vld [vmem:[%s4946_s5 + $0x5c0] ss:$8 sps:$4 sm:$0xff]   ;;  %v4059_v15 = vld [vmem:[%s4946_s5 + $0x4b4] ss:$8 sps:$4 sm:$0xff]  }
 0x12d   : > { %3054 = vmatpush2.bf16.msra.mxu0 %v3973_v16  ;;  %v4062_v16 = vld [vmem:[%s4946_s5 + $0x5b4] ss:$8 sps:$4 sm:$0xff]  }
 0x12e   : > { %3095 = vmatpush2.bf16.msra.mxu1 %v3976_v17  ;;  %3055 = vmatprep.subr.bf16.mxu0 %v3981_v18  ;;  %v4057_v17 = vld [vmem:[%s4946_s5 + $0x4b0] ss:$8 sps:$4 sm:$0xff]  }
 0x12f   : > { %3096 = vmatprep.subr.bf16.mxu1 %v3984_v19  ;;  %v4060_v18 = vld [vmem:[%s4946_s5 + $0x5b0] ss:$8 sps:$4 sm:$0xff]   ;;  %v4065_v19 = vld [vmem:[%s4946_s5 + $0x4a4] ss:$8 sps:$4 sm:$0xff]  }
 0x131   : > { %3056 = vmatpush2.bf16.msra.mxu0 %v3979_v20  ;;  %v4068_v20 = vld [vmem:[%s4946_s5 + $0x5a4] ss:$8 sps:$4 sm:$0xff]  }
 0x132   : > { %3097 = vmatpush2.bf16.msra.mxu1 %v3982_v22  ;;  %3107 = vmatprep.subr.bf16.mxu0 %v3987_v23  ;;  %v4063_v22 = vld [vmem:[%s4946_s5 + $0x4a0] ss:$8 sps:$4 sm:$0xff]  }
 0x133   : > { %3148 = vmatprep.subr.bf16.mxu1 %v3990_v24  ;;  %v4066_v23 = vld [vmem:[%s4946_s5 + $0x5a0] ss:$8 sps:$4 sm:$0xff]   ;;  %v4071_v24 = vld [vmem:[%s4946_s5 + $0x494] ss:$8 sps:$4 sm:$0xff]  }
 0x134   : > { %3058 = vmatmul.mubr.bf16.vlgmr.msra.gmra.mxu0 %v1579_v21  ;;  %v1598_v21 = vcombine.high %v5102_v28, %v5102_v28  ;;  %v4072_v28 = vld [vmem:[%s4946_s5 + $0x590] ss:$8 sps:$4 sm:$0xff]  }
 0x135   : > { %3099 = vmatmul.mubr.bf16.vlgmr.msra.gmra.mxu1 %v1595_v25  ;;  %3108 = vmatpush1.bf16.msra.mxu0 %v3985_v26  ;;  %v4074_v25 = vld [vmem:[%s4946_s5 + $0x594] ss:$8 sps:$4 sm:$0xff]  }
 0x136   : > { %3149 = vmatpush1.bf16.msra.mxu1 %v3988_v27  ;;  %3109 = vmatprep.subr.bf16.mxu0 %v3993_v7  ;;  %v5168_v26 = vrot.slane %v1598_v21, %v4999_v50  ;;  %v4069_v27 = vld [vmem:[%s4946_s5 + $0x490] ss:$8 sps:$4 sm:$0xff]   ;;  %v4077_v7 = vld [vmem:[%s4946_s5 + $0x484] ss:$8 sps:$4 sm:$0xff]  }
 0x137   : > { %3150 = vmatprep.subr.bf16.mxu1 %v3996_v29  ;;  %3139 = vmatprep.mubr.bf16.mxu0 %v1635_v36  ;;  %v4080_v29 = vld [vmem:[%s4946_s5 + $0x584] ss:$8 sps:$4 sm:$0xff]   ;;  %v4086_v36 = vld [vmem:[%s4946_s5 + $0x774] ss:$8 sps:$4 sm:$0xff]  }
 0x138   : > { %3180 = vmatprep.mubr.bf16.mxu1 %v1645_v37  ;;  %v1614_v31 = vcombine.high %v5168_v26, %v5168_v26  ;;  %v4152_v21 = vld [vmem:[%s4946_s5 + $0x7c4] ss:$8 sps:$4 sm:$0xff]  }
 0x139   : > { %3110 = vmatpush1.bf16.msra.mxu0 %v3991_v32  ;;  %v1621_v32 = vrot.slane %v5108_v30, %v4999_v50  ;;  %v4084_v30 = vld [vmem:[%s4946_s5 + $0x770] ss:$8 sps:$4 sm:$0xff]  }
 0x13a   : > { %3151 = vmatpush1.bf16.msra.mxu1 %v3994_v33  ;;  %3111 = vmatprep.subr.bf16.mxu0 %v3999_v34  ;;  %v4075_v33 = vld [vmem:[%s4946_s5 + $0x480] ss:$8 sps:$4 sm:$0xff]   ;;  %v1642_v37 = vrot.slane %v1614_v31, %v4999_v50 }
 0x13b   : > { %3152 = vmatprep.subr.bf16.mxu1 %v4002_v35  ;;  %v4078_v34 = vld [vmem:[%s4946_s5 + $0x580] ss:$8 sps:$4 sm:$0xff]   ;;  %v4083_v35 = vld [vmem:[%s4946_s5 + $0x674] ss:$8 sps:$4 sm:$0xff]  }
 0x13c   : > { %v4159_v31 = vld [vmem:[%s4946_s5 + $0x6a0] ss:$8 sps:$4 sm:$0xff]  }
 0x13d   : > { %3112 = vmatpush1.bf16.msra.mxu0 %v3997_v38  ;;  %v1643_v38 = vcombine.high %v1621_v32, %v1621_v32 }
 0x13e   : > { %3153 = vmatpush1.bf16.msra.mxu1 %v4000_v39  ;;  %3113 = vmatprep.subr.bf16.mxu0 %v4005_v40  ;;  %v4081_v39 = vld [vmem:[%s4946_s5 + $0x670] ss:$8 sps:$4 sm:$0xff]   ;;  %v4089_v40 = vld [vmem:[%s4946_s5 + $0x664] ss:$8 sps:$4 sm:$0xff]  }
 0x13f   : > { %3154 = vmatprep.subr.bf16.mxu1 %v4008_v41  ;;  %v4092_v41 = vld [vmem:[%s4946_s5 + $0x764] ss:$8 sps:$4 sm:$0xff]  }
 0x141   : > { %3114 = vmatpush1.bf16.msra.mxu0 %v4003_v42  ;;  %v1646_v42 = vcombine.high %v1642_v37, %v1642_v37 }
 0x142   : > { %3155 = vmatpush1.bf16.msra.mxu1 %v4006_v43  ;;  %3115 = vmatprep.subr.bf16.mxu0 %v4011_v45  ;;  %v4087_v43 = vld [vmem:[%s4946_s5 + $0x660] ss:$8 sps:$4 sm:$0xff]  }
 0x143   : > { %3156 = vmatprep.subr.bf16.mxu1 %v4014_v46  ;;  %v4090_v45 = vld [vmem:[%s4946_s5 + $0x760] ss:$8 sps:$4 sm:$0xff]   ;;  %v4095_v46 = vld [vmem:[%s4946_s5 + $0x654] ss:$8 sps:$4 sm:$0xff]  }
 0x145   : > { %3116 = vmatpush1.bf16.msra.mxu0 %v4009_v47  ;;  %v4098_v47 = vld [vmem:[%s4946_s5 + $0x754] ss:$8 sps:$4 sm:$0xff]  }
 0x146   : > { %3157 = vmatpush1.bf16.msra.mxu1 %v4012_v48  ;;  %3117 = vmatprep.subr.bf16.mxu0 %v4017_v49  ;;  %v4093_v48 = vld [vmem:[%s4946_s5 + $0x650] ss:$8 sps:$4 sm:$0xff]  }
 0x147   : > { %3158 = vmatprep.subr.bf16.mxu1 %v4020_v51  ;;  %v4096_v49 = vld [vmem:[%s4946_s5 + $0x750] ss:$8 sps:$4 sm:$0xff]   ;;  %v4101_v51 = vld [vmem:[%s4946_s5 + $0x644] ss:$8 sps:$4 sm:$0xff]  }
 0x149   : > { %3118 = vmatpush1.bf16.msra.mxu0 %v4015_v52  ;;  %v4104_v52 = vld [vmem:[%s4946_s5 + $0x744] ss:$8 sps:$4 sm:$0xff]  }
 0x14a   : > { %3159 = vmatpush1.bf16.msra.mxu1 %v4018_v53  ;;  %3119 = vmatprep.subr.bf16.mxu0 %v4023_v54  ;;  %v4099_v53 = vld [vmem:[%s4946_s5 + $0x640] ss:$8 sps:$4 sm:$0xff]  }
 0x14b   : > { %3160 = vmatprep.subr.bf16.mxu1 %v4026_v55  ;;  %v4102_v54 = vld [vmem:[%s4946_s5 + $0x740] ss:$8 sps:$4 sm:$0xff]   ;;  %v4107_v55 = vld [vmem:[%s4946_s5 + $0x634] ss:$8 sps:$4 sm:$0xff]  }
 0x14d   : > { %3120 = vmatpush1.bf16.msra.mxu0 %v4021_v56  ;;  %v4110_v56 = vld [vmem:[%s4946_s5 + $0x734] ss:$8 sps:$4 sm:$0xff]  }
 0x14e   : > { %3161 = vmatpush1.bf16.msra.mxu1 %v4024_v57  ;;  %3121 = vmatprep.subr.bf16.mxu0 %v4029_v58  ;;  %v4105_v57 = vld [vmem:[%s4946_s5 + $0x630] ss:$8 sps:$4 sm:$0xff]  }
 0x14f   : > { %3162 = vmatprep.subr.bf16.mxu1 %v4032_v59  ;;  %v4108_v58 = vld [vmem:[%s4946_s5 + $0x730] ss:$8 sps:$4 sm:$0xff]   ;;  %v4113_v59 = vld [vmem:[%s4946_s5 + $0x624] ss:$8 sps:$4 sm:$0xff]  }
 0x151   : > { %3122 = vmatpush1.bf16.msra.mxu0 %v4027_v60  ;;  %v4116_v60 = vld [vmem:[%s4946_s5 + $0x724] ss:$8 sps:$4 sm:$0xff]  }
 0x152   : > { %3163 = vmatpush1.bf16.msra.mxu1 %v4030_v61  ;;  %3123 = vmatprep.subr.bf16.mxu0 %v4035_v62  ;;  %v4111_v61 = vld [vmem:[%s4946_s5 + $0x620] ss:$8 sps:$4 sm:$0xff]  }
 0x153   : > { %3164 = vmatprep.subr.bf16.mxu1 %v4038_v63  ;;  %v4114_v62 = vld [vmem:[%s4946_s5 + $0x720] ss:$8 sps:$4 sm:$0xff]   ;;  %v4119_v63 = vld [vmem:[%s4946_s5 + $0x614] ss:$8 sps:$4 sm:$0xff]  }
 0x155   : > { %3124 = vmatpush2.bf16.msra.mxu0 %v4033_v0  ;;  %v4122_v0 = vld [vmem:[%s4946_s5 + $0x714] ss:$8 sps:$4 sm:$0xff]  }
 0x156   : > { %3165 = vmatpush2.bf16.msra.mxu1 %v4036_v1  ;;  %3125 = vmatprep.subr.bf16.mxu0 %v4041_v2  ;;  %v4117_v1 = vld [vmem:[%s4946_s5 + $0x610] ss:$8 sps:$4 sm:$0xff]  }
 0x157   : > { %3166 = vmatprep.subr.bf16.mxu1 %v4044_v3  ;;  %v4120_v2 = vld [vmem:[%s4946_s5 + $0x710] ss:$8 sps:$4 sm:$0xff]   ;;  %v4125_v3 = vld [vmem:[%s4946_s5 + $0x604] ss:$8 sps:$4 sm:$0xff]  }
 0x159   : > { %3126 = vmatpush2.bf16.msra.mxu0 %v4039_v4  ;;  %v4128_v4 = vld [vmem:[%s4946_s5 + $0x704] ss:$8 sps:$4 sm:$0xff]  }
 0x15a   : > { %3167 = vmatpush2.bf16.msra.mxu1 %v4042_v5  ;;  %3127 = vmatprep.subr.bf16.mxu0 %v4047_v6  ;;  %v4123_v5 = vld [vmem:[%s4946_s5 + $0x600] ss:$8 sps:$4 sm:$0xff]  }
 0x15b   : > { %3168 = vmatprep.subr.bf16.mxu1 %v4050_v8  ;;  %v4126_v6 = vld [vmem:[%s4946_s5 + $0x700] ss:$8 sps:$4 sm:$0xff]   ;;  %v4131_v8 = vld [vmem:[%s4946_s5 + $0x6f4] ss:$8 sps:$4 sm:$0xff]  }
 0x15d   : > { %3128 = vmatpush2.bf16.msra.mxu0 %v4045_v9  ;;  %v4134_v9 = vld [vmem:[%s4946_s5 + $0x7f4] ss:$8 sps:$4 sm:$0xff]  }
 0x15e   : > { %3169 = vmatpush2.bf16.msra.mxu1 %v4048_v10  ;;  %3129 = vmatprep.subr.bf16.mxu0 %v4053_v11  ;;  %v4129_v10 = vld [vmem:[%s4946_s5 + $0x6f0] ss:$8 sps:$4 sm:$0xff]  }
 0x15f   : > { %3170 = vmatprep.subr.bf16.mxu1 %v4056_v12  ;;  %v4132_v11 = vld [vmem:[%s4946_s5 + $0x7f0] ss:$8 sps:$4 sm:$0xff]   ;;  %v4137_v12 = vld [vmem:[%s4946_s5 + $0x6e4] ss:$8 sps:$4 sm:$0xff]  }
 0x161   : > { %3130 = vmatpush2.bf16.msra.mxu0 %v4051_v13  ;;  %v4140_v13 = vld [vmem:[%s4946_s5 + $0x7e4] ss:$8 sps:$4 sm:$0xff]  }
 0x162   : > { %3171 = vmatpush2.bf16.msra.mxu1 %v4054_v14  ;;  %3131 = vmatprep.subr.bf16.mxu0 %v4059_v15  ;;  %v4135_v14 = vld [vmem:[%s4946_s5 + $0x6e0] ss:$8 sps:$4 sm:$0xff]  }
 0x163   : > { %3172 = vmatprep.subr.bf16.mxu1 %v4062_v16  ;;  %v4138_v15 = vld [vmem:[%s4946_s5 + $0x7e0] ss:$8 sps:$4 sm:$0xff]   ;;  %v4143_v16 = vld [vmem:[%s4946_s5 + $0x6d4] ss:$8 sps:$4 sm:$0xff]  }
 0x165   : > { %3132 = vmatpush2.bf16.msra.mxu0 %v4057_v17  ;;  %v4146_v17 = vld [vmem:[%s4946_s5 + $0x7d4] ss:$8 sps:$4 sm:$0xff]  }
 0x166   : > { %3173 = vmatpush2.bf16.msra.mxu1 %v4060_v18  ;;  %3133 = vmatprep.subr.bf16.mxu0 %v4065_v19  ;;  %v4141_v18 = vld [vmem:[%s4946_s5 + $0x6d0] ss:$8 sps:$4 sm:$0xff]  }
 0x167   : > { %3174 = vmatprep.subr.bf16.mxu1 %v4068_v20  ;;  %v4144_v19 = vld [vmem:[%s4946_s5 + $0x7d0] ss:$8 sps:$4 sm:$0xff]   ;;  %v4149_v20 = vld [vmem:[%s4946_s5 + $0x6c4] ss:$8 sps:$4 sm:$0xff]  }
 0x169   : > { %3134 = vmatpush2.bf16.msra.mxu0 %v4063_v22  ;;  %v4147_v22 = vld [vmem:[%s4946_s5 + $0x6c0] ss:$8 sps:$4 sm:$0xff]  }
 0x16a   : > { %3175 = vmatpush2.bf16.msra.mxu1 %v4066_v23  ;;  %3135 = vmatprep.subr.bf16.mxu0 %v4071_v24  ;;  %v4150_v23 = vld [vmem:[%s4946_s5 + $0x7c0] ss:$8 sps:$4 sm:$0xff]   ;;  %v4155_v24 = vld [vmem:[%s4946_s5 + $0x6b4] ss:$8 sps:$4 sm:$0xff]  }
 0x16b   : > { %3176 = vmatprep.subr.bf16.mxu1 %v4074_v25  ;;  %v4158_v25 = vld [vmem:[%s4946_s5 + $0x7b4] ss:$8 sps:$4 sm:$0xff]  }
 0x16d   : > { %3136 = vmatpush2.bf16.msra.mxu0 %v4069_v27  ;;  %v4153_v27 = vld [vmem:[%s4946_s5 + $0x6b0] ss:$8 sps:$4 sm:$0xff]  }
 0x16e   : > { %3177 = vmatpush2.bf16.msra.mxu1 %v4072_v28  ;;  %3137 = vmatprep.subr.bf16.mxu0 %v4077_v7  ;;  %v4156_v28 = vld [vmem:[%s4946_s5 + $0x7b0] ss:$8 sps:$4 sm:$0xff]   ;;  %v4161_v7 = vld [vmem:[%s4946_s5 + $0x6a4] ss:$8 sps:$4 sm:$0xff]  }
 0x16f   : > { %3178 = vmatprep.subr.bf16.mxu1 %v4080_v29  ;;  %v4164_v29 = vld [vmem:[%s4946_s5 + $0x7a4] ss:$8 sps:$4 sm:$0xff]  }
 0x171   : > { %3138 = vmatpush2.bf16.msra.mxu0 %v4075_v33  ;;  %v4167_v33 = vld [vmem:[%s4946_s5 + $0x694] ss:$8 sps:$4 sm:$0xff]  }
 0x172   : > { %3179 = vmatpush2.bf16.msra.mxu1 %v4078_v34  ;;  %3189 = vmatprep.subr.bf16.mxu0 %v4083_v35  ;;  %v4170_v34 = vld [vmem:[%s4946_s5 + $0x794] ss:$8 sps:$4 sm:$0xff]   ;;  %v4165_v35 = vld [vmem:[%s4946_s5 + $0x690] ss:$8 sps:$4 sm:$0xff]  }
 0x173   : > { %3230 = vmatprep.subr.bf16.mxu1 %v4086_v36  ;;  %v4168_v36 = vld [vmem:[%s4946_s5 + $0x790] ss:$8 sps:$4 sm:$0xff]  }
 0x174   : > { %3140 = vmatmul.mubr.bf16.vlgmr.msra.gmra.mxu0 %v1621_v32  ;;  %v4162_v32 = vld [vmem:[%s4946_s5 + $0x7a0] ss:$8 sps:$4 sm:$0xff]  }
 0x175   : > { %3181 = vmatmul.mubr.bf16.vlgmr.msra.gmra.mxu1 %v1643_v38  ;;  %3190 = vmatpush1.bf16.msra.mxu0 %v4081_v39  ;;  %v4176_v38 = vld [vmem:[%s4946_s5 + $0x784] ss:$8 sps:$4 sm:$0xff]   ;;  %v1628_v39 = vrot.slane %v5168_v26, %v4999_v50 }
 0x176   : > { %3231 = vmatpush1.bf16.msra.mxu1 %v4084_v30  ;;  %3191 = vmatprep.subr.bf16.mxu0 %v4089_v40  ;;  %v4171_v30 = vld [vmem:[%s4946_s5 + $0x680] ss:$8 sps:$4 sm:$0xff]  }
 0x177   : > { %3232 = vmatprep.subr.bf16.mxu1 %v4092_v41  ;;  %3221 = vmatprep.mubr.bf16.mxu0 %v1642_v37  ;;  %v4173_v37 = vld [vmem:[%s4946_s5 + $0x684] ss:$8 sps:$4 sm:$0xff]   ;;  %v4174_v40 = vld [vmem:[%s4946_s5 + $0x780] ss:$8 sps:$4 sm:$0xff]   ;;  %v1644_v41 = vcombine.high %v1628_v39, %v1628_v39 }
 0x178   : > { %3262 = vmatprep.mubr.bf16.mxu1 %v1646_v42 }
 0x179   : > { %3192 = vmatpush1.bf16.msra.mxu0 %v4087_v43 }
 0x17a   : > { %3233 = vmatpush1.bf16.msra.mxu1 %v4090_v45  ;;  %3193 = vmatprep.subr.bf16.mxu0 %v4095_v46 }
 0x17b   : > { %3234 = vmatprep.subr.bf16.mxu1 %v4098_v47 }
 0x17d   : > { %3194 = vmatpush1.bf16.msra.mxu0 %v4093_v48 }
 0x17e   : > { %3235 = vmatpush1.bf16.msra.mxu1 %v4096_v49  ;;  %3195 = vmatprep.subr.bf16.mxu0 %v4101_v51 }
 0x17f   : > { %3236 = vmatprep.subr.bf16.mxu1 %v4104_v52 }
 0x181   : > { %3196 = vmatpush1.bf16.msra.mxu0 %v4099_v53 }
 0x182   : > { %3237 = vmatpush1.bf16.msra.mxu1 %v4102_v54  ;;  %3197 = vmatprep.subr.bf16.mxu0 %v4107_v55 }
 0x183   : > { %3238 = vmatprep.subr.bf16.mxu1 %v4110_v56 }
 0x185   : > { %3198 = vmatpush1.bf16.msra.mxu0 %v4105_v57 }
 0x186   : > { %3239 = vmatpush1.bf16.msra.mxu1 %v4108_v58  ;;  %3199 = vmatprep.subr.bf16.mxu0 %v4113_v59 }
 0x187   : > { %3240 = vmatprep.subr.bf16.mxu1 %v4116_v60 }
 0x189   : > { %3200 = vmatpush1.bf16.msra.mxu0 %v4111_v61 }
 0x18a   : > { %3241 = vmatpush1.bf16.msra.mxu1 %v4114_v62  ;;  %3201 = vmatprep.subr.bf16.mxu0 %v4119_v63 }
 0x18b   : > { %3242 = vmatprep.subr.bf16.mxu1 %v4122_v0 }
 0x18d   : > { %3202 = vmatpush1.bf16.msra.mxu0 %v4117_v1 }
 0x18e   : > { %3243 = vmatpush1.bf16.msra.mxu1 %v4120_v2  ;;  %3203 = vmatprep.subr.bf16.mxu0 %v4125_v3 }
 0x18f   : > { %3244 = vmatprep.subr.bf16.mxu1 %v4128_v4 }
 0x191   : > { %3204 = vmatpush1.bf16.msra.mxu0 %v4123_v5 }
 0x192   : > { %3245 = vmatpush1.bf16.msra.mxu1 %v4126_v6  ;;  %3205 = vmatprep.subr.bf16.mxu0 %v4131_v8 }
 0x193   : > { %3246 = vmatprep.subr.bf16.mxu1 %v4134_v9 }
 0x195   : > { %3206 = vmatpush2.bf16.msra.mxu0 %v4129_v10 }
 0x196   : > { %3247 = vmatpush2.bf16.msra.mxu1 %v4132_v11  ;;  %3207 = vmatprep.subr.bf16.mxu0 %v4137_v12  ;;  %v4290_v12 = vmov 1983009808  }
 0x197   : > { %3248 = vmatprep.subr.bf16.mxu1 %v4140_v13  ;;  %v3275_v13 = vunpack.c.l.s4 %v4290_v12 }
 0x199   : > { %3208 = vmatpush2.bf16.msra.mxu0 %v4135_v14 }
 0x19a   : > { %3249 = vmatpush2.bf16.msra.mxu1 %v4138_v15  ;;  %3209 = vmatprep.subr.bf16.mxu0 %v4143_v16 }
 0x19b   : > { %3250 = vmatprep.subr.bf16.mxu1 %v4146_v17 }
 0x19d   : > { %3210 = vmatpush2.bf16.msra.mxu0 %v4141_v18  ;;  %v3276_v18 = vunpack.c.0.s8 %v3275_v13 }
 0x19e   : > { %3251 = vmatpush2.bf16.msra.mxu1 %v4144_v19  ;;  %3211 = vmatprep.subr.bf16.mxu0 %v4149_v20 }
 0x19f   : > { %3252 = vmatprep.subr.bf16.mxu1 %v4152_v21 }
 0x1a1   : > { %3212 = vmatpush2.bf16.msra.mxu0 %v4147_v22 }
 0x1a2   : > { %3253 = vmatpush2.bf16.msra.mxu1 %v4150_v23  ;;  %3213 = vmatprep.subr.bf16.mxu0 %v4155_v24 }
 0x1a3   : > { %3254 = vmatprep.subr.bf16.mxu1 %v4158_v25 }
 0x1a5   : > { %3214 = vmatpush2.bf16.msra.mxu0 %v4153_v27  ;;  %v3279_v27 = vsub.s32 %v3276_v18, %v4991_v44 }
 0x1a6   : > { %3255 = vmatpush2.bf16.msra.mxu1 %v4156_v28  ;;  %3215 = vmatprep.subr.bf16.mxu0 %v4161_v7 }
 0x1a7   : > { %3256 = vmatprep.subr.bf16.mxu1 %v4164_v29 }
 0x1a9   : > { %3216 = vmatpush2.bf16.msra.mxu0 %v4159_v31  ;;  %v1288_v31 = vld [vmem:[%s4948_s9] sm:$0xf] }
 0x1aa   : > { %3257 = vmatpush2.bf16.msra.mxu1 %v4162_v32  ;;  %3217 = vmatprep.subr.bf16.mxu0 %v4167_v33 }
 0x1ab   : > { %3258 = vmatprep.subr.bf16.mxu1 %v4170_v34 }
 0x1ad   : > { %3218 = vmatpush2.bf16.msra.mxu0 %v4165_v35 }
 0x1ae   : > { %3259 = vmatpush2.bf16.msra.mxu1 %v4168_v36  ;;  %3219 = vmatprep.subr.bf16.mxu0 %v4173_v37 }
 0x1af   : > { %3260 = vmatprep.subr.bf16.mxu1 %v4176_v38 }
 0x1b1   : > { %3220 = vmatpush2.bf16.msra.mxu0 %v4171_v30 }
 0x1b2   : > { %3261 = vmatpush2.bf16.msra.mxu1 %v4174_v40 }
 0x1b4   : > { %v2977_v42 = vpop.f32.mrf.mxu0  ;;  %3222 = vmatmul.mubr.bf16.vlgmr.msra.gmra.mxu0 %v1628_v39 }
 0x1b5   : > { %v3018_v43 = vpop.f32.mrf.mxu1  ;;  %3263 = vmatmul.mubr.bf16.vlgmr.msra.gmra.mxu1 %v1644_v41 }
 0x1b6   : > { %v3019_v45 = vadd.f32 %v3018_v43, %v2977_v42  ;;  %v2979_v46 = vpop.f32.mrf.mxu0 }
 0x1b7   : > { %v3020_v47 = vpop.f32.mrf.mxu1 }
 0x1b8   : > { %v3021_v48 = vadd.f32 %v3020_v47, %v2979_v46  ;;  %v2981_v49 = vpop.f32.mrf.mxu0 }
 0x1b9   : > { %v3022_v51 = vpop.f32.mrf.mxu1 }
 0x1ba   : > { %v2982_v50 = vpop.f32.mrf.mxu0 }
 0x1bb   : > { %v3023_v26 = vpop.f32.mrf.mxu1 }
 0x1f4   : > { %v3059_v52 = vpop.f32.mrf.mxu0 }
 0x1f5   : > { %v3100_v53 = vpop.f32.mrf.mxu1  ;;  %v3060_v54 = vadd.f32 %v3059_v52, %v3019_v45 }
 0x1f6   : > { %v3061_v55 = vpop.f32.mrf.mxu0 }
 0x1f7   : > { %v3102_v56 = vpop.f32.mrf.mxu1  ;;  %v3101_v57 = vadd.f32 %v3100_v53, %v3060_v54  ;;  %v3062_v58 = vadd.f32 %v3061_v55, %v3021_v48 }
 0x1f8   : > { %v3063_v59 = vpop.f32.mrf.mxu0 }
 0x1f9   : > { %v3104_v60 = vpop.f32.mrf.mxu1  ;;  %v3103_v61 = vadd.f32 %v3102_v56, %v3062_v58 }
 0x1fa   : > { %v3064_v62 = vpop.f32.mrf.mxu0 }
 0x1fb   : > { %v3105_v63 = vpop.f32.mrf.mxu1 }
 0x234   : > { %v3141_v0 = vpop.f32.mrf.mxu0 }
 0x235   : > { %v3182_v1 = vpop.f32.mrf.mxu1  ;;  %v3142_v2 = vadd.f32 %v3141_v0, %v3101_v57 }
 0x236   : > { %v3143_v3 = vpop.f32.mrf.mxu0 }
 0x237   : > { %v3184_v4 = vpop.f32.mrf.mxu1  ;;  %v3183_v5 = vadd.f32 %v3182_v1, %v3142_v2  ;;  %v3144_v11 = vadd.f32 %v3143_v3, %v3103_v61 }
 0x238   : > { %v3145_v6 = vpop.f32.mrf.mxu0 }
 0x239   : > { %v3186_v8 = vpop.f32.mrf.mxu1  ;;  %v3185_v16 = vadd.f32 %v3184_v4, %v3144_v11 }
 0x23a   : > { %v3146_v9 = vpop.f32.mrf.mxu0 }
 0x23b   : > { %v3187_v10 = vpop.f32.mrf.mxu1 }
 0x274   : > { %v3223_v14 = vpop.f32.mrf.mxu0 }
 0x275   : > { %v3264_v15 = vpop.f32.mrf.mxu1  ;;  %v3224_v17 = vadd.f32 %v3223_v14, %v3183_v5 }
 0x276   : > { %v3225_v19 = vpop.f32.mrf.mxu0 }
 0x277   : > { %v3266_v20 = vpop.f32.mrf.mxu1  ;;  %v3226_v21 = vadd.f32 %v3225_v19, %v3185_v16  ;;  %v3265_v24 = vadd.f32 %v3264_v15, %v3224_v17 }
 0x278   : > { %v3227_v22 = vpop.f32.mrf.mxu0 }
 0x279   : > { %v3268_v23 = vpop.f32.mrf.mxu1  ;;  %v3267_v25 = vadd.f32 %v3266_v20, %v3226_v21 }
 0x27a   : > { %v3228_v28 = vpop.f32.mrf.mxu0 }
 0x27b   : > { %v3269_v7 = vpop.f32.mrf.mxu1  ;;  %v3273_v29 = vcombine.low %v3265_v24, %v3267_v25 }
 0x27d   : > { %v3280_v32 = vrot.slane %v3273_v29, %v3279_v27  ;;  %3287 = sbr.rel (%p3694_p6) target bundleno = 655 (0x28f), region = 78 }
 0x27f   : > { %v3282_v33 = vadd.f32 %v3280_v32, %v1288_v31 }
 0x281   : > { %3283 = vst [vmem:[%s4948_s9] sm:$0xf] %v3282_v33 }
 0x282   : > { %v3289_v34 = vld [vmem:[%s1280_s15] sm:$0x3]  ;;  %v3293_v35 = vsub.s32 0, %v4991_v44  ;;  %v3297_v36 = vsub.s32 1, %v4991_v44 }
 0x284   : > { %v3294_v37 = vrot.slane %v3289_v34, %v3293_v35  ;;  %v3298_v38 = vrot.slane %v3289_v34, %v3297_v36 }
 0x286   : > { %v3299_v39 = vcombine.low %v3294_v37, %v3298_v38 }
 0x288   : > { %v3288_v30 = vld [vmem:[%s4948_s9] sm:$0xf]  ;;  %v3306_v40 = vrot.slane %v3299_v39, %v3279_v27 }
 0x28a   : > { %v3308_v41 = vadd.f32 %v3306_v40, %v3288_v30 }
 0x28c   : > { %v3309_v42 = vmax.f32 %v3308_v41, 0.0 }
 0x28e   : > { %3310 = vst [vmem:[%s4948_s9] sm:$0xf] %v3309_v42 }
 0x28f PF: > { %s3701_s17 = sshll.u32 %s4274_s18, 6  ;;  %s3326_s4 = sshll.u32 %s4948_s9, 4  ;;  %s3327_s4 = int_to_ptr.vmem [resolvable:$true] %s3326_s4 }
 0x290   : > { %s3324_s27 = scalar_lea.hbm %s5316_s3, %s3701_s17  ;;  %s5321_s29 = sand.u32 1, %s4254_s13  }
 0x291   : > { %s3312_s26 = scalar_lea.sflag [#allocation4], %s5321_s29  ;;  %s4178_s28 = scalar_lea.vmem %s3327_s4, 64 }
 0x292   : > { %p4179_p8 = scmp.ne.s32.totalorder %s3327_s4, %s4178_s28  ;;  %s4291_s15 = smov [#allocation3]  }
 0x293   : > { %s4182_s5 = sshll.u32 %s4291_s15, 4  ;;  %s4183_s5 = int_to_ptr.vmem [resolvable:$false] %s4182_s5 }
 0x294   : > { %p4180_p9 = pnand %p4179_p8, %p4384_p7  ;;  %s4184_s10 = scalar_lea.vmem %s4183_s5, 128 }
 0x295   : > { %p4185_p11 = scmp.lt.s32.totalorder %s3327_s4, %s4183_s5  ;;  %p4186_p13 = scmp.lt.s32.totalorder %s4184_s10, %s4178_s28 }
 0x296   : > { %p4181_p10 = pneg %p4180_p9 }
 0x297   : > { %p4187_p0 = por %p4186_p13, %p4185_p11 }
 0x299   : > { %p4188_p1 = pnand %p4187_p0, %p4181_p10 }
 0x29b   : > { %4191 = shalt.err (!%p4188_p1)
}
 0x29c   : > { %s4192_s18 = scalar_lea.hbm %s3324_s27, 64  ;;  %s4196_s17 = scalar_lea.hbm %s5316_s3, 128 }
 0x29d   : > { %p4193_p2 = scmp.ne.s32.totalorder %s3324_s27, %s4192_s18  ;;  %p4197_p5 = scmp.lt.s32.totalorder %s3324_s27, %s5316_s3 }
 0x29e   : > { %p4198_p6 = scmp.lt.s32.totalorder %s4196_s17, %s4192_s18 }
 0x29f   : > { %p4194_p3 = pnand %p4193_p2, %p4384_p7 }
 0x2a0   : > { %p4199_p8 = por %p4198_p6, %p4197_p5 }
 0x2a1   : > { %p4195_p4 = pneg %p4194_p3 }
 0x2a3   : > { %p4200_p9 = pnand %p4199_p8, %p4195_p4 }
 0x2a5   : > { %4203 = shalt.err (!%p4200_p9)
}
 0x2a6   : > { %3702 = dma.vmem_to_hbm [thread:$0]  (%p4384_p7), %s3327_s4, 64, %s3324_s27, %s3312_s26  }
 0x2a7 PF: > { %p3708_p10 = scmp.ge.s32.totalorder %s4286_s21, 2  ;;  %s3338_s29 = sand.u32 1, %s4250_s12  }
 0x2a8   : > { %s3339_s28 = scalar_lea.sflag [#allocation4], %s3338_s29 }
 0x2a9   : > { %p3705_p11 = pnand %p3708_p10, %p4392_p12 }
 0x2ab   : > { %p3706_p13 = pneg %p3705_p11 }
 0x2ad   : > { %4245 = dma.done.wait (%p3706_p13), %s3339_s28, 64  }
 0x2ae   : > { %4247 = vsyncadd (%p3706_p13), %s3339_s28, 4294967232  ;;  %s16_s21 = sadd.s32 1, %s4286_s21   ;;  %s5322_s12 = smov %s4254_s13 }
 0x2af   : > { %p13_p0 = scmp.ge.s32.totalorder %s16_s21, 6   ;;  %s5323_s13 = smov %s4258_s14 }
 0x2b0   : > { %s5324_s14 = smov %s4397_s7  ;;  %s5325_s15 = smov %s4266_s16 }
 0x2b1   : > { %s5326_s16 = smov %s4400_s8  ;;  %s5327_s17 = smov %s4278_s19 }
 0x2b2   : > { %s5328_s18 = smov %s4282_s20  ;;  %s5329_s19 = smov %s5332_s24 }
 0x2b3   : > { %s5330_s20 = smov %s5336_s25  ;;  %15 = sbr.rel (!%p13_p0) target bundleno = 6 (0x6), region = 124 }
 0x2b8   :  { %3344 = vsyncpa [#allocation4], 1 }
 0x2b9   :  { %3346 = vsyncpa [#allocation4 + $0x1], 1 }

</bundles_post_ra>
